<compile_context>
chip_gen: v6e
topology: v6e:2x2x1
jax: 0.10.0
libtpu: 0.0.40
codegen_flags: <defaults>
</compile_context>

<pallas_src>
import jax
import jax.numpy as jnp
from jax.experimental import pallas as pl
from jax.experimental.pallas import tpu as pltpu


IN_SIZE = (4, 16, 16)        # (C, H, W)
Z_DIM = 32
FEATURES_SHAPE = (16, 4, 4)  # encoder output (C, H, W)
N_FEATURES = 16 * 4 * 4      # 256
ENC2_SHAPE = (8, 8, 8)       # shape after conv1
DEC2_SHAPE = (8, 8, 8)       # shape after convT1
N_IN = IN_SIZE[0] * IN_SIZE[1] * IN_SIZE[2]   # 1024
MULS_PAD = 128               # mu | log_sigma2, zero-padded to a lane-dense width


# ----------------------------------------------------------------------------
# Single fused Pallas kernel: whole VAE forward, intermediates never leave VMEM
# ----------------------------------------------------------------------------
def _vae_fused_kernel(
    x_ref, eps_ref,
    w1_ref, b1_ref, w2_ref, b2_ref,
    wmuls_ref, bmuls_ref,
    wz_ref, bz_ref,
    wd1_ref, bd1_ref, wd2_ref, bd2_ref,
    xr_ref, muls_ref,
):
    def mm_bf16(a, w_ref, b_ref):
        # bf16 MXU inputs, f32 accumulation; bias broadcast happens exactly once
        # (no K-reduction grid axis -> no per-step re-broadcast / double-add trap).
        y = jnp.dot(a.astype(jnp.bfloat16), w_ref[...],
                    preferred_element_type=jnp.float32)
        return y + b_ref[...]

    x = x_ref[...]                                        # (bb, 1024) f32
    h = jnp.maximum(mm_bf16(x, w1_ref, b1_ref), 0.0)      # conv1 + ReLU   -> (bb, 512)
    h = jnp.maximum(mm_bf16(h, w2_ref, b2_ref), 0.0)      # conv2 + ReLU   -> (bb, 256)

    # mu_layer and log_sigma_layer fused into ONE lane-dense f32 matmul:
    # columns [0:32] = mu, [32:64] = log_sigma2, [64:128] = zero padding.
    y = (jnp.dot(h, wmuls_ref[...], preferred_element_type=jnp.float32)
         + bmuls_ref[...])                                # (bb, 128)
    mu = y[:, :Z_DIM]
    ls = y[:, Z_DIM:2 * Z_DIM]
    z = mu + jnp.exp(0.5 * ls) * eps_ref[...]             # reparameterize -> (bb, 32)

    hd = mm_bf16(z, wz_ref, bz_ref)                       # z_to_h         -> (bb, 256)
    d = jnp.maximum(mm_bf16(hd, wd1_ref, bd1_ref), 0.0)   # convT1 + ReLU  -> (bb, 512)
    xr = jnp.tanh(mm_bf16(d, wd2_ref, bd2_ref))           # convT2 + tanh  -> (bb, 1024)

    xr_ref[...] = xr                                      # lane-dense 1024-wide store
    muls_ref[...] = y                                     # lane-dense 128-wide store


def _batch_tile(b_pad):
    """Batch tile: largest multiple of 8 dividing b_pad, capped at 512 rows
    (fits v7x's 64 MiB VMEM with headroom); when b_pad >= 16 also capped so the
    grid has >= 2 steps and both v7x TensorCores receive work."""
    cap = 512
    if b_pad >= 16:
        cap = min(cap, (b_pad // 2) // 8 * 8)
    bb = 8
    for cand in range(8, cap + 1, 8):
        if b_pad % cand == 0:
            bb = cand
    return bb


def vae_forward(dense, x, eps):
    """Mirrors VAE.forward: returns (x_rec, mu, log_sigma2)."""
    B = x.shape[0]
    C, H, W = IN_SIZE
    x_flat = x.reshape(B, N_IN).astype(jnp.float32)   # NCHW flatten == torch .view
    eps = eps.astype(jnp.float32)

    # Pad batch to a multiple of 8 (sublane alignment); padded rows are sliced off.
    b_pad = max(8, -(-B // 8) * 8)
    if b_pad != B:
        x_flat = jnp.pad(x_flat, ((0, b_pad - B), (0, 0)))
        eps = jnp.pad(eps, ((0, b_pad - B), (0, 0)))

    bb = _batch_tile(b_pad)
    grid = (b_pad // bb,)

    def row_spec(n):                         # batch-tiled arrays
        return pl.BlockSpec((bb, n), lambda i: (i, 0))

    def weight_spec(arr):                    # grid-invariant weights / biases:
        # constant index_map -> never re-DMA'd; single-buffer to free VMEM.
        return pl.BlockSpec(arr.shape, lambda i: (0, 0),
                            pipeline_mode=pl.Buffered(1))

    weight_args = (
        dense["w1"], dense["b1"], dense["w2"], dense["b2"],
        dense["wmuls"], dense["bmuls"],
        dense["wz"], dense["bz"],
        dense["wd1"], dense["bd1"], dense["wd2"], dense["bd2"],
    )
    in_specs = [row_spec(N_IN), row_spec(Z_DIM)] + [weight_spec(a) for a in weight_args]
    out_specs = (row_spec(N_IN), row_spec(MULS_PAD))
    out_shape = (
        jax.ShapeDtypeStruct((b_pad, N_IN), jnp.float32),
        jax.ShapeDtypeStruct((b_pad, MULS_PAD), jnp.float32),
    )

    xr_flat, muls = pl.pallas_call(
        _vae_fused_kernel,
        out_shape=out_shape,
        grid=grid,
        in_specs=in_specs,
        out_specs=out_specs,
        compiler_params=pltpu.CompilerParams(
            dimension_semantics=("parallel",),       # shard grid steps over v7x TCs
            vmem_limit_bytes=48 * 1024 * 1024),      # > scoped default, < v7x physical
    )(x_flat, eps, *weight_args)

    x_rec = xr_flat[:B].reshape(B, C, H, W)
    mu = muls[:B, :Z_DIM]
    log_sigma2 = muls[:B, Z_DIM:2 * Z_DIM]
    return x_rec, mu, log_sigma2


# ----------------------------------------------------------------------------
# One-time param packing: lower every layer to an MXU-friendly dense matrix.
# (Init-time only; the per-forward hot path never runs im2col / conv / reshapes.)
# ----------------------------------------------------------------------------
def _conv2d_as_matrix(w, b, in_shape, stride, pad):
    """torch Conv2d (w:(O,C,k,k), b:(O,)) on a fixed input size -> dense matmul.
    Returns ([C*H*W, O*Ho*Wo] matrix, [1, O*Ho*Wo] bias) using NCHW flattening."""
    C, H, W = in_shape
    eye = jnp.eye(C * H * W, dtype=jnp.float32).reshape(C * H * W, C, H, W)
    out = jax.lax.conv_general_dilated(
        eye, w, window_strides=(stride, stride),
        padding=[(pad, pad), (pad, pad)],
        dimension_numbers=("NCHW", "OIHW", "NCHW"))
    O, Ho, Wo = out.shape[1:]
    wmat = out.reshape(C * H * W, O * Ho * Wo)
    bvec = jnp.broadcast_to(b[:, None, None], (O, Ho, Wo)).reshape(1, O * Ho * Wo)
    return wmat, bvec


def _conv_transpose2d_as_matrix(w, b, in_shape, stride, pad, out_pad):
    """torch ConvTranspose2d (w:(C_in,O,k,k), b:(O,)) -> dense matmul.
    Equivalent direct conv: zero-dilate by `stride`, pad (k-1-pad, k-1-pad+out_pad),
    stride-1 conv with spatially flipped, channel-swapped weights."""
    C, H, W = in_shape
    k = w.shape[-1]
    w_conv = jnp.flip(w, axis=(2, 3)).transpose(1, 0, 2, 3)   # (O, C, k, k)
    lo = k - 1 - pad
    hi = k - 1 - pad + out_pad
    eye = jnp.eye(C * H * W, dtype=jnp.float32).reshape(C * H * W, C, H, W)
    out = jax.lax.conv_general_dilated(
        eye, w_conv, window_strides=(1, 1),
        padding=[(lo, hi), (lo, hi)],
        lhs_dilation=(stride, stride),
        dimension_numbers=("NCHW", "OIHW", "NCHW"))
    O, Ho, Wo = out.shape[1:]
    wmat = out.reshape(C * H * W, O * Ho * Wo)
    bvec = jnp.broadcast_to(b[:, None, None], (O, Ho, Wo)).reshape(1, O * Ho * Wo)
    return wmat, bvec


def init_params(key):
    """Raw params in PyTorch layouts (Conv2d: (O,C,k,k); ConvT2d: (C_in,O,k,k); Linear: (out,in))."""
    def randn(k, shape, fan_in):
        return (jax.random.normal(k, shape, jnp.float32) / jnp.sqrt(fan_in)) * 0.5

    ks = jax.random.split(key, 14)
    p = {}
    p["enc1_w"] = randn(ks[0], (8, 4, 3, 3), 4 * 9)
    p["enc1_b"] = randn(ks[1], (8,), 4 * 9)
    p["enc2_w"] = randn(ks[2], (16, 8, 3, 3), 8 * 9)
    p["enc2_b"] = randn(ks[3], (16,), 8 * 9)
    p["mu_w"] = randn(ks[4], (Z_DIM, N_FEATURES), N_FEATURES)
    p["mu_b"] = randn(ks[5], (Z_DIM,), N_FEATURES)
    p["ls_w"] = randn(ks[6], (Z_DIM, N_FEATURES), N_FEATURES)
    p["ls_b"] = randn(ks[7], (Z_DIM,), N_FEATURES)
    p["z2h_w"] = randn(ks[8], (N_FEATURES, Z_DIM), Z_DIM)
    p["z2h_b"] = randn(ks[9], (N_FEATURES,), Z_DIM)
    p["dec1_w"] = randn(ks[10], (16, 8, 3, 3), 16 * 9)
    p["dec1_b"] = randn(ks[11], (8,), 16 * 9)
    p["dec2_w"] = randn(ks[12], (8, 4, 3, 3), 8 * 9)
    p["dec2_b"] = randn(ks[13], (4,), 8 * 9)
    return p


def pack_params(p):
    """Precompute dense layer matrices once.
    Large conv matrices -> bf16 for the MXU; the mu|log_sigma2 head stays f32
    (feeds exp(0.5*ls) in the reparameterization) and is fused + zero-padded to
    a single lane-dense (256, 128) matrix."""
    w1, b1 = _conv2d_as_matrix(p["enc1_w"], p["enc1_b"], IN_SIZE, stride=2, pad=1)        # (1024, 512)
    w2, b2 = _conv2d_as_matrix(p["enc2_w"], p["enc2_b"], ENC2_SHAPE, stride=2, pad=1)     # (512, 256)
    wd1, bd1 = _conv_transpose2d_as_matrix(p["dec1_w"], p["dec1_b"], FEATURES_SHAPE,
                                           stride=2, pad=1, out_pad=1)                    # (256, 512)
    wd2, bd2 = _conv_transpose2d_as_matrix(p["dec2_w"], p["dec2_b"], DEC2_SHAPE,
                                           stride=2, pad=1, out_pad=1)                    # (512, 1024)

    wmuls = jnp.concatenate([p["mu_w"].T, p["ls_w"].T], axis=1)                # (256, 64)
    wmuls = jnp.pad(wmuls, ((0, 0), (0, MULS_PAD - 2 * Z_DIM)))                # (256, 128)
    bmuls = jnp.concatenate([p["mu_b"], p["ls_b"]]).reshape(1, 2 * Z_DIM)
    bmuls = jnp.pad(bmuls, ((0, 0), (0, MULS_PAD - 2 * Z_DIM)))                # (1, 128)

    bf = jnp.bfloat16
    return {
        "w1": w1.astype(bf), "b1": b1,
        "w2": w2.astype(bf), "b2": b2,
        "wmuls": wmuls.astype(jnp.float32), "bmuls": bmuls.astype(jnp.float32),
        "wz": p["z2h_w"].T.astype(bf), "bz": p["z2h_b"].reshape(1, -1),
        "wd1": wd1.astype(bf), "bd1": bd1,
        "wd2": wd2.astype(bf), "bd2": bd2,
    }


# ----------------------------------------------------------------------------
# Pure-JAX reference (same dense matrices, all f32) for a sanity tolerance check
# ----------------------------------------------------------------------------
def _reference_forward(dense, x, eps):
    B = x.shape[0]
    xf = x.reshape(B, N_IN).astype(jnp.float32)

    def mm(a, w, b):
        return a @ w.astype(jnp.float32) + b

    h = jax.nn.relu(mm(xf, dense["w1"], dense["b1"]))
    h = jax.nn.relu(mm(h, dense["w2"], dense["b2"]))
    y = mm(h, dense["wmuls"], dense["bmuls"])
    mu, ls = y[:, :Z_DIM], y[:, Z_DIM:2 * Z_DIM]
    z = mu + jnp.exp(0.5 * ls) * eps
    hd = mm(z, dense["wz"], dense["bz"])
    d = jax.nn.relu(mm(hd, dense["wd1"], dense["bd1"]))
    xr = jnp.tanh(mm(d, dense["wd2"], dense["bd2"]))
    return xr.reshape(B, *IN_SIZE), mu, ls


if __name__ == "__main__":
    key = jax.random.PRNGKey(0)
    k_param, k_x, k_eps = jax.random.split(key, 3)

    params = init_params(k_param)
    dense = pack_params(params)          # one-time; not part of the forward hot path

    x = jax.random.normal(k_x, (2, *IN_SIZE), jnp.float32)     # (2, 4, 16, 16) NCHW
    eps = jax.random.normal(k_eps, (2, Z_DIM), jnp.float32)    # torch.randn_like(mu)

    fwd = jax.jit(vae_forward)
    x_rec, mu, log_sigma2 = fwd(dense, x, eps)
    jax.block_until_ready((x_rec, mu, log_sigma2))

    assert x_rec.shape == x.shape
    assert mu.shape == (2, Z_DIM) and log_sigma2.shape == (2, Z_DIM)
    assert bool(jnp.all(jnp.isfinite(x_rec)))

    # Loose-tolerance check vs. f32 reference (bf16 MXU weights -> small rounding).
    xr_ref, mu_ref, ls_ref = _reference_forward(dense, x, eps)
    assert float(jnp.max(jnp.abs(x_rec - xr_ref))) < 0.1
    assert float(jnp.max(jnp.abs(mu - mu_ref))) < 0.1
    assert float(jnp.max(jnp.abs(log_sigma2 - ls_ref))) < 0.1

    print("KERNEL_OK")
</pallas_src>

<mosaic_0001>
module attributes {stable_mosaic.version = 11 : i64} {
  func.func @_vae_fused_kernel(%arg0: i32, %arg1: memref<8x1024xf32, #tpu.memory_space<vmem>>, %arg2: memref<8x32xf32, #tpu.memory_space<vmem>>, %arg3: memref<1024x512xbf16, #tpu.memory_space<vmem>>, %arg4: memref<1x512xf32, #tpu.memory_space<vmem>>, %arg5: memref<512x256xbf16, #tpu.memory_space<vmem>>, %arg6: memref<1x256xf32, #tpu.memory_space<vmem>>, %arg7: memref<256x128xf32, #tpu.memory_space<vmem>>, %arg8: memref<1x128xf32, #tpu.memory_space<vmem>>, %arg9: memref<32x256xbf16, #tpu.memory_space<vmem>>, %arg10: memref<1x256xf32, #tpu.memory_space<vmem>>, %arg11: memref<256x512xbf16, #tpu.memory_space<vmem>>, %arg12: memref<1x512xf32, #tpu.memory_space<vmem>>, %arg13: memref<512x1024xbf16, #tpu.memory_space<vmem>>, %arg14: memref<1x1024xf32, #tpu.memory_space<vmem>>, %arg15: memref<8x1024xf32, #tpu.memory_space<vmem>>, %arg16: memref<8x128xf32, #tpu.memory_space<vmem>>) attributes {dimension_semantics = [#tpu.dimension_semantics<parallel>], iteration_bounds = array<i64: 1>, scalar_prefetch = 0 : i64, scratch_operands = 0 : i64, tpu.core_type = #tpu.core_type<tc>, window_params = [{transform_indices = @transform_0, window_bounds = array<i64: 8, 1024>}, {transform_indices = @transform_1, window_bounds = array<i64: 8, 32>}, {pipeline_mode = #tpu.pipeline_mode<synchronous>, transform_indices = @transform_2, window_bounds = array<i64: 1024, 512>}, {pipeline_mode = #tpu.pipeline_mode<synchronous>, transform_indices = @transform_3, window_bounds = array<i64: 1, 512>}, {pipeline_mode = #tpu.pipeline_mode<synchronous>, transform_indices = @transform_4, window_bounds = array<i64: 512, 256>}, {pipeline_mode = #tpu.pipeline_mode<synchronous>, transform_indices = @transform_5, window_bounds = array<i64: 1, 256>}, {pipeline_mode = #tpu.pipeline_mode<synchronous>, transform_indices = @transform_6, window_bounds = array<i64: 256, 128>}, {pipeline_mode = #tpu.pipeline_mode<synchronous>, transform_indices = @transform_7, window_bounds = array<i64: 1, 128>}, {pipeline_mode = #tpu.pipeline_mode<synchronous>, transform_indices = @transform_8, window_bounds = array<i64: 32, 256>}, {pipeline_mode = #tpu.pipeline_mode<synchronous>, transform_indices = @transform_9, window_bounds = array<i64: 1, 256>}, {pipeline_mode = #tpu.pipeline_mode<synchronous>, transform_indices = @transform_10, window_bounds = array<i64: 256, 512>}, {pipeline_mode = #tpu.pipeline_mode<synchronous>, transform_indices = @transform_11, window_bounds = array<i64: 1, 512>}, {pipeline_mode = #tpu.pipeline_mode<synchronous>, transform_indices = @transform_12, window_bounds = array<i64: 512, 1024>}, {pipeline_mode = #tpu.pipeline_mode<synchronous>, transform_indices = @transform_13, window_bounds = array<i64: 1, 1024>}, {transform_indices = @transform_14, window_bounds = array<i64: 8, 1024>}, {transform_indices = @transform_15, window_bounds = array<i64: 8, 128>}]} {
    %c0 = arith.constant 0 : index
    %c0_0 = arith.constant 0 : index
    %0 = vector.load %arg1[%c0, %c0_0] : memref<8x1024xf32, #tpu.memory_space<vmem>>, vector<8x1024xf32>
    %1 = arith.truncf %0 : vector<8x1024xf32> to vector<8x1024xbf16>
    %c0_1 = arith.constant 0 : index
    %c0_2 = arith.constant 0 : index
    %2 = vector.load %arg3[%c0_1, %c0_2] : memref<1024x512xbf16, #tpu.memory_space<vmem>>, vector<1024x512xbf16>
    %cst = arith.constant dense<0.000000e+00> : vector<8x512xf32>
    %3 = tpu.matmul %1, %2, %cst {dimension_numbers = #tpu.dot_dimension_numbers<[1], [0], [0], [1], [0, 0, 1, 1], [], []>} : vector<8x1024xbf16>, vector<1024x512xbf16>, vector<8x512xf32> -> vector<8x512xf32>
    %c0_3 = arith.constant 0 : index
    %c0_4 = arith.constant 0 : index
    %4 = vector.load %arg4[%c0_3, %c0_4] : memref<1x512xf32, #tpu.memory_space<vmem>>, vector<1x512xf32>
    %5 = vector.broadcast %4 : vector<1x512xf32> to vector<8x512xf32>
    %6 = arith.addf %3, %5 : vector<8x512xf32>
    %cst_5 = arith.constant 0.000000e+00 : f32
    %7 = vector.broadcast %cst_5 : f32 to vector<8x512xf32>
    %8 = arith.maximumf %6, %7 : vector<8x512xf32>
    %9 = arith.truncf %8 : vector<8x512xf32> to vector<8x512xbf16>
    %c0_6 = arith.constant 0 : index
    %c0_7 = arith.constant 0 : index
    %10 = vector.load %arg5[%c0_6, %c0_7] : memref<512x256xbf16, #tpu.memory_space<vmem>>, vector<512x256xbf16>
    %cst_8 = arith.constant dense<0.000000e+00> : vector<8x256xf32>
    %11 = tpu.matmul %9, %10, %cst_8 {dimension_numbers = #tpu.dot_dimension_numbers<[1], [0], [0], [1], [0, 0, 1, 1], [], []>} : vector<8x512xbf16>, vector<512x256xbf16>, vector<8x256xf32> -> vector<8x256xf32>
    %c0_9 = arith.constant 0 : index
    %c0_10 = arith.constant 0 : index
    %12 = vector.load %arg6[%c0_9, %c0_10] : memref<1x256xf32, #tpu.memory_space<vmem>>, vector<1x256xf32>
    %13 = vector.broadcast %12 : vector<1x256xf32> to vector<8x256xf32>
    %14 = arith.addf %11, %13 : vector<8x256xf32>
    %cst_11 = arith.constant 0.000000e+00 : f32
    %15 = vector.broadcast %cst_11 : f32 to vector<8x256xf32>
    %16 = arith.maximumf %14, %15 : vector<8x256xf32>
    %c0_12 = arith.constant 0 : index
    %c0_13 = arith.constant 0 : index
    %17 = vector.load %arg7[%c0_12, %c0_13] : memref<256x128xf32, #tpu.memory_space<vmem>>, vector<256x128xf32>
    %cst_14 = arith.constant dense<0.000000e+00> : vector<8x128xf32>
    %18 = tpu.matmul %16, %17, %cst_14 {dimension_numbers = #tpu.dot_dimension_numbers<[1], [0], [0], [1], [0, 0, 1, 1], [], []>} : vector<8x256xf32>, vector<256x128xf32>, vector<8x128xf32> -> vector<8x128xf32>
    %c0_15 = arith.constant 0 : index
    %c0_16 = arith.constant 0 : index
    %19 = vector.load %arg8[%c0_15, %c0_16] : memref<1x128xf32, #tpu.memory_space<vmem>>, vector<1x128xf32>
    %20 = vector.broadcast %19 : vector<1x128xf32> to vector<8x128xf32>
    %21 = arith.addf %18, %20 : vector<8x128xf32>
    %22 = vector.extract_strided_slice %21 {offsets = [0, 0], sizes = [8, 32], strides = [1, 1]} : vector<8x128xf32> to vector<8x32xf32>
    %23 = vector.extract_strided_slice %21 {offsets = [0, 32], sizes = [8, 32], strides = [1, 1]} : vector<8x128xf32> to vector<8x32xf32>
    %cst_17 = arith.constant 5.000000e-01 : f32
    %24 = vector.broadcast %cst_17 : f32 to vector<8x32xf32>
    %25 = arith.mulf %24, %23 : vector<8x32xf32>
    %26 = math.exp %25 : vector<8x32xf32>
    %c0_18 = arith.constant 0 : index
    %c0_19 = arith.constant 0 : index
    %27 = vector.load %arg2[%c0_18, %c0_19] : memref<8x32xf32, #tpu.memory_space<vmem>>, vector<8x32xf32>
    %28 = arith.mulf %26, %27 : vector<8x32xf32>
    %29 = arith.addf %22, %28 : vector<8x32xf32>
    %30 = arith.truncf %29 : vector<8x32xf32> to vector<8x32xbf16>
    %c0_20 = arith.constant 0 : index
    %c0_21 = arith.constant 0 : index
    %31 = vector.load %arg9[%c0_20, %c0_21] : memref<32x256xbf16, #tpu.memory_space<vmem>>, vector<32x256xbf16>
    %cst_22 = arith.constant dense<0.000000e+00> : vector<8x256xf32>
    %32 = tpu.matmul %30, %31, %cst_22 {dimension_numbers = #tpu.dot_dimension_numbers<[1], [0], [0], [1], [0, 0, 1, 1], [], []>} : vector<8x32xbf16>, vector<32x256xbf16>, vector<8x256xf32> -> vector<8x256xf32>
    %c0_23 = arith.constant 0 : index
    %c0_24 = arith.constant 0 : index
    %33 = vector.load %arg10[%c0_23, %c0_24] : memref<1x256xf32, #tpu.memory_space<vmem>>, vector<1x256xf32>
    %34 = vector.broadcast %33 : vector<1x256xf32> to vector<8x256xf32>
    %35 = arith.addf %32, %34 : vector<8x256xf32>
    %36 = arith.truncf %35 : vector<8x256xf32> to vector<8x256xbf16>
    %c0_25 = arith.constant 0 : index
    %c0_26 = arith.constant 0 : index
    %37 = vector.load %arg11[%c0_25, %c0_26] : memref<256x512xbf16, #tpu.memory_space<vmem>>, vector<256x512xbf16>
    %cst_27 = arith.constant dense<0.000000e+00> : vector<8x512xf32>
    %38 = tpu.matmul %36, %37, %cst_27 {dimension_numbers = #tpu.dot_dimension_numbers<[1], [0], [0], [1], [0, 0, 1, 1], [], []>} : vector<8x256xbf16>, vector<256x512xbf16>, vector<8x512xf32> -> vector<8x512xf32>
    %c0_28 = arith.constant 0 : index
    %c0_29 = arith.constant 0 : index
    %39 = vector.load %arg12[%c0_28, %c0_29] : memref<1x512xf32, #tpu.memory_space<vmem>>, vector<1x512xf32>
    %40 = vector.broadcast %39 : vector<1x512xf32> to vector<8x512xf32>
    %41 = arith.addf %38, %40 : vector<8x512xf32>
    %cst_30 = arith.constant 0.000000e+00 : f32
    %42 = vector.broadcast %cst_30 : f32 to vector<8x512xf32>
    %43 = arith.maximumf %41, %42 : vector<8x512xf32>
    %44 = arith.truncf %43 : vector<8x512xf32> to vector<8x512xbf16>
    %c0_31 = arith.constant 0 : index
    %c0_32 = arith.constant 0 : index
    %45 = vector.load %arg13[%c0_31, %c0_32] : memref<512x1024xbf16, #tpu.memory_space<vmem>>, vector<512x1024xbf16>
    %cst_33 = arith.constant dense<0.000000e+00> : vector<8x1024xf32>
    %46 = tpu.matmul %44, %45, %cst_33 {dimension_numbers = #tpu.dot_dimension_numbers<[1], [0], [0], [1], [0, 0, 1, 1], [], []>} : vector<8x512xbf16>, vector<512x1024xbf16>, vector<8x1024xf32> -> vector<8x1024xf32>
    %c0_34 = arith.constant 0 : index
    %c0_35 = arith.constant 0 : index
    %47 = vector.load %arg14[%c0_34, %c0_35] : memref<1x1024xf32, #tpu.memory_space<vmem>>, vector<1x1024xf32>
    %48 = vector.broadcast %47 : vector<1x1024xf32> to vector<8x1024xf32>
    %49 = arith.addf %46, %48 : vector<8x1024xf32>
    %50 = math.tanh %49 : vector<8x1024xf32>
    %c0_36 = arith.constant 0 : index
    %c0_37 = arith.constant 0 : index
    %51 = vector.load %arg15[%c0_36, %c0_37] : memref<8x1024xf32, #tpu.memory_space<vmem>>, vector<8x1024xf32>
    tpu.vector_store %arg15[%c0_36, %c0_37], %50 {strides = array<i32>} : memref<8x1024xf32, #tpu.memory_space<vmem>>, vector<8x1024xf32>,
    %c0_38 = arith.constant 0 : index
    %c0_39 = arith.constant 0 : index
    %52 = vector.load %arg16[%c0_38, %c0_39] : memref<8x128xf32, #tpu.memory_space<vmem>>, vector<8x128xf32>
    tpu.vector_store %arg16[%c0_38, %c0_39], %21 {strides = array<i32>} : memref<8x128xf32, #tpu.memory_space<vmem>>, vector<8x128xf32>,
    return
  }
  func.func @transform_0(%arg0: i32) -> (i32, i32) {
    %c0_i32 = arith.constant 0 : i32
    %c0_i32_0 = arith.constant 0 : i32
    return %arg0, %c0_i32 : i32, i32
  }
  func.func @transform_1(%arg0: i32) -> (i32, i32) {
    %c0_i32 = arith.constant 0 : i32
    %c0_i32_0 = arith.constant 0 : i32
    return %arg0, %c0_i32 : i32, i32
  }
  func.func @transform_2(%arg0: i32) -> (i32, i32) {
    %c0_i32 = arith.constant 0 : i32
    %c0_i32_0 = arith.constant 0 : i32
    %c0_i32_1 = arith.constant 0 : i32
    return %c0_i32, %c0_i32_0 : i32, i32
  }
  func.func @transform_3(%arg0: i32) -> (i32, i32) {
    %c0_i32 = arith.constant 0 : i32
    %c0_i32_0 = arith.constant 0 : i32
    %c0_i32_1 = arith.constant 0 : i32
    return %c0_i32, %c0_i32_0 : i32, i32
  }
  func.func @transform_4(%arg0: i32) -> (i32, i32) {
    %c0_i32 = arith.constant 0 : i32
    %c0_i32_0 = arith.constant 0 : i32
    %c0_i32_1 = arith.constant 0 : i32
    return %c0_i32, %c0_i32_0 : i32, i32
  }
  func.func @transform_5(%arg0: i32) -> (i32, i32) {
    %c0_i32 = arith.constant 0 : i32
    %c0_i32_0 = arith.constant 0 : i32
    %c0_i32_1 = arith.constant 0 : i32
    return %c0_i32, %c0_i32_0 : i32, i32
  }
  func.func @transform_6(%arg0: i32) -> (i32, i32) {
    %c0_i32 = arith.constant 0 : i32
    %c0_i32_0 = arith.constant 0 : i32
    %c0_i32_1 = arith.constant 0 : i32
    return %c0_i32, %c0_i32_0 : i32, i32
  }
  func.func @transform_7(%arg0: i32) -> (i32, i32) {
    %c0_i32 = arith.constant 0 : i32
    %c0_i32_0 = arith.constant 0 : i32
    %c0_i32_1 = arith.constant 0 : i32
    return %c0_i32, %c0_i32_0 : i32, i32
  }
  func.func @transform_8(%arg0: i32) -> (i32, i32) {
    %c0_i32 = arith.constant 0 : i32
    %c0_i32_0 = arith.constant 0 : i32
    %c0_i32_1 = arith.constant 0 : i32
    return %c0_i32, %c0_i32_0 : i32, i32
  }
  func.func @transform_9(%arg0: i32) -> (i32, i32) {
    %c0_i32 = arith.constant 0 : i32
    %c0_i32_0 = arith.constant 0 : i32
    %c0_i32_1 = arith.constant 0 : i32
    return %c0_i32, %c0_i32_0 : i32, i32
  }
  func.func @transform_10(%arg0: i32) -> (i32, i32) {
    %c0_i32 = arith.constant 0 : i32
    %c0_i32_0 = arith.constant 0 : i32
    %c0_i32_1 = arith.constant 0 : i32
    return %c0_i32, %c0_i32_0 : i32, i32
  }
  func.func @transform_11(%arg0: i32) -> (i32, i32) {
    %c0_i32 = arith.constant 0 : i32
    %c0_i32_0 = arith.constant 0 : i32
    %c0_i32_1 = arith.constant 0 : i32
    return %c0_i32, %c0_i32_0 : i32, i32
  }
  func.func @transform_12(%arg0: i32) -> (i32, i32) {
    %c0_i32 = arith.constant 0 : i32
    %c0_i32_0 = arith.constant 0 : i32
    %c0_i32_1 = arith.constant 0 : i32
    return %c0_i32, %c0_i32_0 : i32, i32
  }
  func.func @transform_13(%arg0: i32) -> (i32, i32) {
    %c0_i32 = arith.constant 0 : i32
    %c0_i32_0 = arith.constant 0 : i32
    %c0_i32_1 = arith.constant 0 : i32
    return %c0_i32, %c0_i32_0 : i32, i32
  }
  func.func @transform_14(%arg0: i32) -> (i32, i32) {
    %c0_i32 = arith.constant 0 : i32
    %c0_i32_0 = arith.constant 0 : i32
    return %arg0, %c0_i32 : i32, i32
  }
  func.func @transform_15(%arg0: i32) -> (i32, i32) {
    %c0_i32 = arith.constant 0 : i32
    %c0_i32_0 = arith.constant 0 : i32
    return %arg0, %c0_i32 : i32, i32
  }
}

</mosaic_0001>

<bundles_post_ra>
// kernel: vae_forward.1
= control target key start
LH: loop header
LB: loop body
LE: loop exit
PB: predicated region body
PF: predicated region fallthrough
CT: control target
= control target key end

     0   :  { %21 = vsyncpa [#allocation3], 0  ;;  %s6868_s0 = inlined_call_operand.vmem [shape: f32[8,1024], index: 0, kind: input, shape index: {}]   ;;  %s6869_s1 = inlined_call_operand.vmem [shape: f32[8,32], index: 1, kind: input, shape index: {}]   ;;  %s6870_s2 = inlined_call_operand.hbm [shape: bf16[1024,512], index: 2, kind: input, shape index: {}]   ;;  %s6871_s3 = inlined_call_operand.vmem [shape: f32[1,512], index: 3, kind: input, shape index: {}]   ;;  %s6872_s4 = inlined_call_operand.hbm [shape: bf16[512,256], index: 4, kind: input, shape index: {}]   ;;  %s6873_s5 = inlined_call_operand.vmem [shape: f32[1,256], index: 5, kind: input, shape index: {}]   ;;  %s6874_s6 = inlined_call_operand.hbm [shape: f32[256,128], index: 6, kind: input, shape index: {}]   ;;  %s6875_s7 = inlined_call_operand.vmem [shape: f32[1,128], index: 7, kind: input, shape index: {}]   ;;  %s6876_s8 = inlined_call_operand.vmem [shape: bf16[32,256], index: 8, kind: input, shape index: {}]   ;;  %s6877_s9 = inlined_call_operand.vmem [shape: f32[1,256], index: 9, kind: input, shape index: {}]   ;;  %s6878_s10 = inlined_call_operand.hbm [shape: bf16[256,512], index: 10, kind: input, shape index: {}]   ;;  %s6879_s11 = inlined_call_operand.vmem [shape: f32[1,512], index: 11, kind: input, shape index: {}]   ;;  %s6880_s12 = inlined_call_operand.hbm [shape: bf16[512,1024], index: 12, kind: input, shape index: {}]   ;;  %s6881_s13 = inlined_call_operand.vmem [shape: f32[1,1024], index: 13, kind: input, shape index: {}]   ;;  %s6882_s14 = inlined_call_operand.vmem [shape: f32[8,1024], index: 14, kind: output, shape index: {0}]   ;;  %s6883_s15 = inlined_call_operand.vmem [shape: f32[8,128], index: 15, kind: output, shape index: {1}]  }
   0x1   :  { %22 = vsyncpa [#allocation5], 0 }
   0x2   :  { %23 = vsyncpa [#allocation8], 0  ;;  %s6545_s18 = smov [#allocation4]  }
   0x3   :  { %s47_s19 = sshll.u32 %s6545_s18, 4  ;;  %s48_s19 = int_to_ptr.vmem [resolvable:$true] %s47_s19 }
   0x4   :  { %s6447_s20 = scalar_lea.vmem %s48_s19, 8192  ;;  %p6452_p1 = scmp.lt.s32.totalorder %s48_s19, %s48_s19 }
   0x5   :  { %p6448_p0 = scmp.ne.s32.totalorder %s48_s19, %s6447_s20  ;;  %p6453_p2 = scmp.lt.s32.totalorder %s6447_s20, %s6447_s20 }
   0x7   :  { %p6454_p3 = por %p6453_p2, %p6452_p1 }
   0x9   :  { %p6455_p4 = pnand %p6454_p3, %p6448_p0 }
   0xb   :  { %6458 = shalt.err (!%p6455_p4)
}
   0xc   :  { %s6546_s21 = smov 128   ;;  %s6547_s22 = smov 8  }
   0xd   :  { %53 = dma.hbm_to_vmem [thread:$0]  %s6872_s4, 8192, %s48_s19, [#allocation5], %s6546_s21, %s6546_s21, %s6547_s22  }
   0xe   :  { %s6548_s25 = smov [#allocation7]   ;;  %s6549_s27 = smov [#allocation2]  }
   0xf   :  { %s79_s26 = sshll.u32 %s6548_s25, 4  ;;  %s33_s28 = sshll.u32 %s6549_s27, 4  ;;  %s80_s26 = int_to_ptr.vmem [resolvable:$true] %s79_s26  ;;  %s34_s28 = int_to_ptr.vmem [resolvable:$true] %s33_s28 }
  0x10   :  { %s6467_s29 = scalar_lea.vmem %s80_s26, 8192  ;;  %p6472_p6 = scmp.lt.s32.totalorder %s80_s26, %s80_s26 }
  0x11   :  { %p6468_p5 = scmp.ne.s32.totalorder %s80_s26, %s6467_s29  ;;  %p6473_p7 = scmp.lt.s32.totalorder %s6467_s29, %s6467_s29 }
  0x13   :  { %p6474_p8 = por %p6473_p7, %p6472_p6 }
  0x15   :  { %p6475_p9 = pnand %p6474_p8, %p6468_p5 }
  0x17   :  { %6478 = shalt.err (!%p6475_p9)
}
  0x18   :  { %s6550_s30 = smov 256   ;;  %s6551_s16 = smov 16  }
  0x19   :  { %85 = dma.hbm_to_vmem [thread:$0]  %s6878_s10, 8192, %s80_s26, [#allocation8], %s6550_s30, %s6550_s30, %s6551_s16  }
  0x1a   :  { %s6487_s4 = scalar_lea.vmem %s34_s28, 32768  ;;  %p6492_p11 = scmp.lt.s32.totalorder %s34_s28, %s34_s28 }
  0x1b   :  { %p6488_p10 = scmp.ne.s32.totalorder %s34_s28, %s6487_s4  ;;  %p6493_p12 = scmp.lt.s32.totalorder %s6487_s4, %s6487_s4 }
  0x1d   :  { %p6494_p13 = por %p6493_p12, %p6492_p11 }
  0x1f   :  { %p6495_p0 = pnand %p6494_p13, %p6488_p10 }
  0x21   :  { %6498 = shalt.err (!%p6495_p0)
}
  0x22   :  { %39 = dma.hbm_to_vmem [thread:$0]  %s6870_s2, 32768, %s34_s28, [#allocation3], %s6550_s30, %s6550_s30, %s6551_s16  }
  0x23   :  { %s6552_s23 = smov [#allocation6]   ;;  %s6553_s25 = smov [#allocation9]  }
  0x24   :  { %s61_s24 = sshll.u32 %s6552_s23, 4  ;;  %s93_s27 = sshll.u32 %s6553_s25, 4  ;;  %s62_s24 = int_to_ptr.vmem [resolvable:$true] %s61_s24  ;;  %s94_s27 = int_to_ptr.vmem [resolvable:$true] %s93_s27 }
  0x25   :  { %s6507_s29 = scalar_lea.vmem %s62_s24, 4096  ;;  %p6512_p2 = scmp.lt.s32.totalorder %s62_s24, %s62_s24 }
  0x26   :  { %p6508_p1 = scmp.ne.s32.totalorder %s62_s24, %s6507_s29  ;;  %p6513_p3 = scmp.lt.s32.totalorder %s6507_s29, %s6507_s29 }
  0x28   :  { %p6514_p4 = por %p6513_p3, %p6512_p2 }
  0x2a   :  { %p6515_p5 = pnand %p6514_p4, %p6508_p1 }
  0x2c   :  { %6518 = shalt.err (!%p6515_p5)
}
  0x2d   :  { %67 = dma.hbm_to_vmem [thread:$0]  %s6874_s6, 4096, %s62_s24, [#allocation5], %s6546_s21, %s6546_s21, %s6547_s22  }
  0x2e   :  { %s6527_s2 = scalar_lea.vmem %s94_s27, 32768  ;;  %p6532_p7 = scmp.lt.s32.totalorder %s94_s27, %s94_s27 }
  0x2f   :  { %p6528_p6 = scmp.ne.s32.totalorder %s94_s27, %s6527_s2  ;;  %p6533_p8 = scmp.lt.s32.totalorder %s6527_s2, %s6527_s2 }
  0x31   :  { %p6534_p9 = por %p6533_p8, %p6532_p7 }
  0x33   :  { %p6535_p10 = pnand %p6534_p9, %p6528_p6 }
  0x35   :  { %6538 = shalt.err (!%p6535_p10)
}
  0x36   :  { %s6554_s28 = smov 512   ;;  %s6555_s30 = smov 32  }
  0x37   :  { %99 = dma.hbm_to_vmem [thread:$0]  %s6880_s12, 32768, %s94_s27, [#allocation8], %s6554_s28, %s6554_s28, %s6555_s30  }
  0x38   :  { %6539 = dma.done.wait [#allocation3], 32768  }
  0x39   :  { %6540 = vsyncadd [#allocation3], 4294934528 }
  0x3a   :  { %6541 = dma.done.wait [#allocation5], 12288  }
  0x3b   :  { %6542 = vsyncadd [#allocation5], 4294955008 }
  0x3c   :  { %6543 = dma.done.wait [#allocation8], 40960  }
  0x3d   :  { %6544 = vsyncadd [#allocation8], 4294926336  ;;  %v5839_v0 = vld [vmem:[#allocation2 + $0xe4] ss:$16 sps:$4 sm:$0xff]   ;;  %v5843_v2 = vld [vmem:[#allocation2 + $0xe0] ss:$16 sps:$4 sm:$0xff]  }
  0x3e   :  { %v5841_v1 = vld [vmem:[#allocation2 + $0x2e4] ss:$16 sps:$4 sm:$0xff]   ;;  %1692 = vmatprep.subr.bf16.mxu0 %v5839_v0  ;;  %v5844_v3 = vld [vmem:[#allocation2 + $0x2e0] ss:$16 sps:$4 sm:$0xff]   ;;  %v119_v46 = vld [vmem:[%s6868_s0 + $0x8] sm:$0xff]  ;;  %vm2668_vm0 = vcmask 261120  }
  0x3f   :  { %1733 = vmatprep.subr.bf16.mxu1 %v5841_v1  ;;  %v5845_v4 = vld [vmem:[#allocation2 + $0xc4] ss:$16 sps:$4 sm:$0xff]   ;;  %1693 = vmatpush1.bf16.msra.mxu0 %v5843_v2  ;;  %v5849_v6 = vld [vmem:[#allocation2 + $0xc0] ss:$16 sps:$4 sm:$0xff]   ;;  %v6663_v49 = vpack.c.bf16 %v119_v46, %v119_v46  ;;  %v121_v50 = vld [vmem:[%s6868_s0 + $0x18] sm:$0xff] }
  0x40   :  { %1734 = vmatpush1.bf16.msra.mxu1 %v5844_v3  ;;  %v5847_v5 = vld [vmem:[#allocation2 + $0x2c4] ss:$16 sps:$4 sm:$0xff]   ;;  %1694 = vmatprep.subr.bf16.mxu0 %v5845_v4  ;;  %v5850_v7 = vld [vmem:[#allocation2 + $0x2c0] ss:$16 sps:$4 sm:$0xff]   ;;  %v6668_v52 = vpack.c.bf16 %v121_v50, %v121_v50 }
  0x41   :  { %1735 = vmatprep.subr.bf16.mxu1 %v5847_v5  ;;  %v5851_v8 = vld [vmem:[#allocation2 + $0xa4] ss:$16 sps:$4 sm:$0xff]   ;;  %v5855_v10 = vld [vmem:[#allocation2 + $0xa0] ss:$16 sps:$4 sm:$0xff]   ;;  %1724 = vmatprep.mubr.bf16.mxu0 %v6663_v49 }
  0x42   :  { %v5853_v9 = vld [vmem:[#allocation2 + $0x2a4] ss:$16 sps:$4 sm:$0xff]   ;;  %v5856_v11 = vld [vmem:[#allocation2 + $0x2a0] ss:$16 sps:$4 sm:$0xff]   ;;  %1765 = vmatprep.mubr.bf16.mxu1 %v6668_v52 }
  0x43   :  { %1695 = vmatpush1.bf16.msra.mxu0 %v5849_v6  ;;  %v5857_v12 = vld [vmem:[#allocation2 + $0x84] ss:$16 sps:$4 sm:$0xff]   ;;  %v5861_v14 = vld [vmem:[#allocation2 + $0x80] ss:$16 sps:$4 sm:$0xff]  }
  0x44   :  { %1736 = vmatpush1.bf16.msra.mxu1 %v5850_v7  ;;  %1696 = vmatprep.subr.bf16.mxu0 %v5851_v8  ;;  %v5859_v13 = vld [vmem:[#allocation2 + $0x284] ss:$16 sps:$4 sm:$0xff]   ;;  %v5862_v15 = vld [vmem:[#allocation2 + $0x280] ss:$16 sps:$4 sm:$0xff]  }
  0x45   :  { %1737 = vmatprep.subr.bf16.mxu1 %v5853_v9  ;;  %v5863_v16 = vld [vmem:[#allocation2 + $0x64] ss:$16 sps:$4 sm:$0xff]   ;;  %v5867_v18 = vld [vmem:[#allocation2 + $0x60] ss:$16 sps:$4 sm:$0xff]  }
  0x46   :  { %v5865_v17 = vld [vmem:[#allocation2 + $0x264] ss:$16 sps:$4 sm:$0xff]   ;;  %v5868_v19 = vld [vmem:[#allocation2 + $0x260] ss:$16 sps:$4 sm:$0xff]  }
  0x47   :  { %1697 = vmatpush1.bf16.msra.mxu0 %v5855_v10  ;;  %v5869_v20 = vld [vmem:[#allocation2 + $0x44] ss:$16 sps:$4 sm:$0xff]   ;;  %v5873_v22 = vld [vmem:[#allocation2 + $0x40] ss:$16 sps:$4 sm:$0xff]  }
  0x48   :  { %1738 = vmatpush1.bf16.msra.mxu1 %v5856_v11  ;;  %1698 = vmatprep.subr.bf16.mxu0 %v5857_v12  ;;  %v5871_v21 = vld [vmem:[#allocation2 + $0x244] ss:$16 sps:$4 sm:$0xff]   ;;  %v5874_v23 = vld [vmem:[#allocation2 + $0x240] ss:$16 sps:$4 sm:$0xff]  }
  0x49   :  { %1739 = vmatprep.subr.bf16.mxu1 %v5859_v13  ;;  %v5875_v24 = vld [vmem:[#allocation2 + $0x24] ss:$16 sps:$4 sm:$0xff]   ;;  %v5879_v26 = vld [vmem:[#allocation2 + $0x20] ss:$16 sps:$4 sm:$0xff]  }
  0x4a   :  { %v5877_v25 = vld [vmem:[#allocation2 + $0x224] ss:$16 sps:$4 sm:$0xff]   ;;  %v5880_v27 = vld [vmem:[#allocation2 + $0x220] ss:$16 sps:$4 sm:$0xff]  }
  0x4b   :  { %1699 = vmatpush1.bf16.msra.mxu0 %v5861_v14  ;;  %v5881_v28 = vld [vmem:[#allocation2 + $0x4] ss:$16 sps:$4 sm:$0xff]   ;;  %v5885_v30 = vld [vmem:[#allocation2] ss:$16 sps:$4 sm:$0xff]  }
  0x4c   :  { %1740 = vmatpush1.bf16.msra.mxu1 %v5862_v15  ;;  %1700 = vmatprep.subr.bf16.mxu0 %v5863_v16  ;;  %v5883_v29 = vld [vmem:[#allocation2 + $0x204] ss:$16 sps:$4 sm:$0xff]   ;;  %v5886_v31 = vld [vmem:[#allocation2 + $0x200] ss:$16 sps:$4 sm:$0xff]  }
  0x4d   :  { %1741 = vmatprep.subr.bf16.mxu1 %v5865_v17  ;;  %v5887_v32 = vld [vmem:[#allocation2 + $0x1e4] ss:$16 sps:$4 sm:$0xff]   ;;  %v5891_v34 = vld [vmem:[#allocation2 + $0x1e0] ss:$16 sps:$4 sm:$0xff]  }
  0x4e   :  { %v5889_v33 = vld [vmem:[#allocation2 + $0x3e4] ss:$16 sps:$4 sm:$0xff]   ;;  %v5892_v35 = vld [vmem:[#allocation2 + $0x3e0] ss:$16 sps:$4 sm:$0xff]  }
  0x4f   :  { %1701 = vmatpush1.bf16.msra.mxu0 %v5867_v18  ;;  %v5893_v36 = vld [vmem:[#allocation2 + $0x1c4] ss:$16 sps:$4 sm:$0xff]   ;;  %v5897_v38 = vld [vmem:[#allocation2 + $0x1c0] ss:$16 sps:$4 sm:$0xff]  }
  0x50   :  { %1742 = vmatpush1.bf16.msra.mxu1 %v5868_v19  ;;  %1702 = vmatprep.subr.bf16.mxu0 %v5869_v20  ;;  %v5895_v37 = vld [vmem:[#allocation2 + $0x3c4] ss:$16 sps:$4 sm:$0xff]   ;;  %v5898_v39 = vld [vmem:[#allocation2 + $0x3c0] ss:$16 sps:$4 sm:$0xff]  }
  0x51   :  { %1743 = vmatprep.subr.bf16.mxu1 %v5871_v21  ;;  %v5899_v40 = vld [vmem:[#allocation2 + $0x1a4] ss:$16 sps:$4 sm:$0xff]   ;;  %v5903_v42 = vld [vmem:[#allocation2 + $0x1a0] ss:$16 sps:$4 sm:$0xff]  }
  0x52   :  { %v5901_v41 = vld [vmem:[#allocation2 + $0x3a4] ss:$16 sps:$4 sm:$0xff]   ;;  %v5904_v43 = vld [vmem:[#allocation2 + $0x3a0] ss:$16 sps:$4 sm:$0xff]  }
  0x53   :  { %1703 = vmatpush1.bf16.msra.mxu0 %v5873_v22  ;;  %v5905_v44 = vld [vmem:[#allocation2 + $0x184] ss:$16 sps:$4 sm:$0xff]   ;;  %v5909_v47 = vld [vmem:[#allocation2 + $0x180] ss:$16 sps:$4 sm:$0xff]  }
  0x54   :  { %1744 = vmatpush1.bf16.msra.mxu1 %v5874_v23  ;;  %1704 = vmatprep.subr.bf16.mxu0 %v5875_v24  ;;  %v5907_v45 = vld [vmem:[#allocation2 + $0x384] ss:$16 sps:$4 sm:$0xff]   ;;  %v5910_v48 = vld [vmem:[#allocation2 + $0x380] ss:$16 sps:$4 sm:$0xff]  }
  0x55   :  { %1745 = vmatprep.subr.bf16.mxu1 %v5877_v25  ;;  %v5911_v51 = vld [vmem:[#allocation2 + $0x164] ss:$16 sps:$4 sm:$0xff]   ;;  %v5915_v54 = vld [vmem:[#allocation2 + $0x160] ss:$16 sps:$4 sm:$0xff]  }
  0x56   :  { %v5913_v53 = vld [vmem:[#allocation2 + $0x364] ss:$16 sps:$4 sm:$0xff]   ;;  %v5916_v55 = vld [vmem:[#allocation2 + $0x360] ss:$16 sps:$4 sm:$0xff]  }
  0x57   :  { %1705 = vmatpush1.bf16.msra.mxu0 %v5879_v26  ;;  %v5917_v56 = vld [vmem:[#allocation2 + $0x144] ss:$16 sps:$4 sm:$0xff]   ;;  %v5921_v58 = vld [vmem:[#allocation2 + $0x140] ss:$16 sps:$4 sm:$0xff]  }
  0x58   :  { %1746 = vmatpush1.bf16.msra.mxu1 %v5880_v27  ;;  %1706 = vmatprep.subr.bf16.mxu0 %v5881_v28  ;;  %v5919_v57 = vld [vmem:[#allocation2 + $0x344] ss:$16 sps:$4 sm:$0xff]   ;;  %v5922_v59 = vld [vmem:[#allocation2 + $0x340] ss:$16 sps:$4 sm:$0xff]  }
  0x59   :  { %1747 = vmatprep.subr.bf16.mxu1 %v5883_v29  ;;  %v5923_v60 = vld [vmem:[#allocation2 + $0x124] ss:$16 sps:$4 sm:$0xff]   ;;  %v5927_v62 = vld [vmem:[#allocation2 + $0x120] ss:$16 sps:$4 sm:$0xff]  }
  0x5a   :  { %v5925_v61 = vld [vmem:[#allocation2 + $0x324] ss:$16 sps:$4 sm:$0xff]   ;;  %v5928_v63 = vld [vmem:[#allocation2 + $0x320] ss:$16 sps:$4 sm:$0xff]  }
  0x5b   :  { %1707 = vmatpush1.bf16.msra.mxu0 %v5885_v30  ;;  %v5929_v0 = vld [vmem:[#allocation2 + $0x104] ss:$16 sps:$4 sm:$0xff]   ;;  %v5933_v2 = vld [vmem:[#allocation2 + $0x100] ss:$16 sps:$4 sm:$0xff]  }
  0x5c   :  { %1748 = vmatpush1.bf16.msra.mxu1 %v5886_v31  ;;  %1708 = vmatprep.subr.bf16.mxu0 %v5887_v32  ;;  %v5931_v1 = vld [vmem:[#allocation2 + $0x304] ss:$16 sps:$4 sm:$0xff]   ;;  %v5934_v3 = vld [vmem:[#allocation2 + $0x300] ss:$16 sps:$4 sm:$0xff]  }
  0x5d   :  { %1749 = vmatprep.subr.bf16.mxu1 %v5889_v33  ;;  %v118_v4 = vld [vmem:[%s6868_s0] sm:$0xff]  ;;  %v120_v5 = vld [vmem:[%s6868_s0 + $0x10] sm:$0xff] }
  0x5e   :  { %v5937_v6 = vld [vmem:[#allocation2 + $0x4e4] ss:$16 sps:$4 sm:$0xff]   ;;  %v6678_v8 = vpack.c.bf16 %v118_v4, %v118_v4  ;;  %v6680_v9 = vpack.c.bf16 %v120_v5, %v120_v5  ;;  %v5935_v10 = vld [vmem:[#allocation2 + $0x4e0] ss:$16 sps:$4 sm:$0xff]  }
  0x5f   :  { %1709 = vmatpush2.bf16.msra.mxu0 %v5891_v34  ;;  %v5940_v7 = vld [vmem:[#allocation2 + $0x6e4] ss:$16 sps:$4 sm:$0xff]   ;;  %v5938_v11 = vld [vmem:[#allocation2 + $0x6e0] ss:$16 sps:$4 sm:$0xff]   ;;  %v123_v34 = vld [vmem:[%s6868_s0 + $0x28] sm:$0xff] }
  0x60   :  { %1750 = vmatpush2.bf16.msra.mxu1 %v5892_v35  ;;  %1710 = vmatprep.subr.bf16.mxu0 %v5893_v36  ;;  %v5943_v12 = vld [vmem:[#allocation2 + $0x4c4] ss:$16 sps:$4 sm:$0xff]   ;;  %v5941_v14 = vld [vmem:[#allocation2 + $0x4c0] ss:$16 sps:$4 sm:$0xff]  }
  0x61   :  { %1751 = vmatprep.subr.bf16.mxu1 %v5895_v37  ;;  %v5946_v13 = vld [vmem:[#allocation2 + $0x6c4] ss:$16 sps:$4 sm:$0xff]   ;;  %v5944_v15 = vld [vmem:[#allocation2 + $0x6c0] ss:$16 sps:$4 sm:$0xff]   ;;  %v6687_v37 = vpack.c.bf16 %v123_v34, %v123_v34  ;;  %v6049_v34 = vld [vmem:[#allocation2 + $0x88] ss:$16 sps:$4 sm:$0xff]  }
  0x62   :  { %v5949_v16 = vld [vmem:[#allocation2 + $0x4a4] ss:$16 sps:$4 sm:$0xff]   ;;  %v5947_v18 = vld [vmem:[#allocation2 + $0x4a0] ss:$16 sps:$4 sm:$0xff]  }
  0x63   :  { %1711 = vmatpush2.bf16.msra.mxu0 %v5897_v38  ;;  %v5952_v17 = vld [vmem:[#allocation2 + $0x6a4] ss:$16 sps:$4 sm:$0xff]   ;;  %v5950_v19 = vld [vmem:[#allocation2 + $0x6a0] ss:$16 sps:$4 sm:$0xff]   ;;  %v125_v38 = vld [vmem:[%s6868_s0 + $0x38] sm:$0xff] }
  0x64   :  { %1752 = vmatpush2.bf16.msra.mxu1 %v5898_v39  ;;  %1712 = vmatprep.subr.bf16.mxu0 %v5899_v40  ;;  %v5955_v20 = vld [vmem:[#allocation2 + $0x484] ss:$16 sps:$4 sm:$0xff]   ;;  %v5953_v22 = vld [vmem:[#allocation2 + $0x480] ss:$16 sps:$4 sm:$0xff]   ;;  %v6692_v40 = vpack.c.bf16 %v125_v38, %v125_v38  ;;  %v6060_v38 = vld [vmem:[#allocation2 + $0x26c] ss:$16 sps:$4 sm:$0xff]  }
  0x65   :  { %1753 = vmatprep.subr.bf16.mxu1 %v5901_v41  ;;  %v5958_v21 = vld [vmem:[#allocation2 + $0x684] ss:$16 sps:$4 sm:$0xff]   ;;  %v5956_v23 = vld [vmem:[#allocation2 + $0x680] ss:$16 sps:$4 sm:$0xff]  }
  0x66   :  { %v5961_v24 = vld [vmem:[#allocation2 + $0x464] ss:$16 sps:$4 sm:$0xff]   ;;  %v5959_v26 = vld [vmem:[#allocation2 + $0x460] ss:$16 sps:$4 sm:$0xff]  }
  0x67   :  { %1713 = vmatpush2.bf16.msra.mxu0 %v5903_v42  ;;  %v5964_v25 = vld [vmem:[#allocation2 + $0x664] ss:$16 sps:$4 sm:$0xff]   ;;  %v5962_v27 = vld [vmem:[#allocation2 + $0x660] ss:$16 sps:$4 sm:$0xff]  }
  0x68   :  { %1754 = vmatpush2.bf16.msra.mxu1 %v5904_v43  ;;  %1714 = vmatprep.subr.bf16.mxu0 %v5905_v44  ;;  %v5967_v28 = vld [vmem:[#allocation2 + $0x444] ss:$16 sps:$4 sm:$0xff]   ;;  %v5965_v30 = vld [vmem:[#allocation2 + $0x440] ss:$16 sps:$4 sm:$0xff]  }
  0x69   :  { %1755 = vmatprep.subr.bf16.mxu1 %v5907_v45  ;;  %v5970_v29 = vld [vmem:[#allocation2 + $0x644] ss:$16 sps:$4 sm:$0xff]   ;;  %v5968_v31 = vld [vmem:[#allocation2 + $0x640] ss:$16 sps:$4 sm:$0xff]  }
  0x6a   :  { %v5973_v32 = vld [vmem:[#allocation2 + $0x424] ss:$16 sps:$4 sm:$0xff]   ;;  %v5971_v35 = vld [vmem:[#allocation2 + $0x420] ss:$16 sps:$4 sm:$0xff]  }
  0x6b   :  { %1715 = vmatpush2.bf16.msra.mxu0 %v5909_v47  ;;  %v5976_v33 = vld [vmem:[#allocation2 + $0x624] ss:$16 sps:$4 sm:$0xff]   ;;  %v5974_v36 = vld [vmem:[#allocation2 + $0x620] ss:$16 sps:$4 sm:$0xff]  }
  0x6c   :  { %1756 = vmatpush2.bf16.msra.mxu1 %v5910_v48  ;;  %1716 = vmatprep.subr.bf16.mxu0 %v5911_v51  ;;  %v5979_v39 = vld [vmem:[#allocation2 + $0x404] ss:$16 sps:$4 sm:$0xff]   ;;  %v5977_v42 = vld [vmem:[#allocation2 + $0x400] ss:$16 sps:$4 sm:$0xff]  }
  0x6d   :  { %1757 = vmatprep.subr.bf16.mxu1 %v5913_v53  ;;  %v5982_v41 = vld [vmem:[#allocation2 + $0x604] ss:$16 sps:$4 sm:$0xff]   ;;  %v5980_v43 = vld [vmem:[#allocation2 + $0x600] ss:$16 sps:$4 sm:$0xff]  }
  0x6e   :  { %v5985_v44 = vld [vmem:[#allocation2 + $0x5e4] ss:$16 sps:$4 sm:$0xff]   ;;  %v5983_v46 = vld [vmem:[#allocation2 + $0x5e0] ss:$16 sps:$4 sm:$0xff]  }
  0x6f   :  { %1717 = vmatpush2.bf16.msra.mxu0 %v5915_v54  ;;  %v5988_v45 = vld [vmem:[#allocation2 + $0x7e4] ss:$16 sps:$4 sm:$0xff]   ;;  %v5986_v47 = vld [vmem:[#allocation2 + $0x7e0] ss:$16 sps:$4 sm:$0xff]  }
  0x70   :  { %1758 = vmatpush2.bf16.msra.mxu1 %v5916_v55  ;;  %1718 = vmatprep.subr.bf16.mxu0 %v5917_v56  ;;  %v5991_v48 = vld [vmem:[#allocation2 + $0x5c4] ss:$16 sps:$4 sm:$0xff]   ;;  %v5989_v51 = vld [vmem:[#allocation2 + $0x5c0] ss:$16 sps:$4 sm:$0xff]  }
  0x71   :  { %1759 = vmatprep.subr.bf16.mxu1 %v5919_v57  ;;  %v5994_v50 = vld [vmem:[#allocation2 + $0x7c4] ss:$16 sps:$4 sm:$0xff]   ;;  %v5992_v53 = vld [vmem:[#allocation2 + $0x7c0] ss:$16 sps:$4 sm:$0xff]  }
  0x72   :  { %v5997_v54 = vld [vmem:[#allocation2 + $0x5a4] ss:$16 sps:$4 sm:$0xff]   ;;  %v5995_v56 = vld [vmem:[#allocation2 + $0x5a0] ss:$16 sps:$4 sm:$0xff]  }
  0x73   :  { %1719 = vmatpush2.bf16.msra.mxu0 %v5921_v58  ;;  %v6000_v55 = vld [vmem:[#allocation2 + $0x7a4] ss:$16 sps:$4 sm:$0xff]   ;;  %v5998_v57 = vld [vmem:[#allocation2 + $0x7a0] ss:$16 sps:$4 sm:$0xff]  }
  0x74   :  { %1760 = vmatpush2.bf16.msra.mxu1 %v5922_v59  ;;  %1720 = vmatprep.subr.bf16.mxu0 %v5923_v60  ;;  %v6003_v58 = vld [vmem:[#allocation2 + $0x584] ss:$16 sps:$4 sm:$0xff]   ;;  %v6001_v60 = vld [vmem:[#allocation2 + $0x580] ss:$16 sps:$4 sm:$0xff]  }
  0x75   :  { %1761 = vmatprep.subr.bf16.mxu1 %v5925_v61  ;;  %v6006_v59 = vld [vmem:[#allocation2 + $0x784] ss:$16 sps:$4 sm:$0xff]   ;;  %v6004_v61 = vld [vmem:[#allocation2 + $0x780] ss:$16 sps:$4 sm:$0xff]  }
  0x76   :  { %v6013_v4 = vld [vmem:[#allocation2 + $0x540] ss:$16 sps:$4 sm:$0xff]  }
  0x77   :  { %1721 = vmatpush2.bf16.msra.mxu0 %v5927_v62  ;;  %v6009_v62 = vld [vmem:[#allocation2 + $0x564] ss:$16 sps:$4 sm:$0xff]   ;;  %v6016_v5 = vld [vmem:[#allocation2 + $0x740] ss:$16 sps:$4 sm:$0xff]  }
  0x78   :  { %1762 = vmatpush2.bf16.msra.mxu1 %v5928_v63  ;;  %1722 = vmatprep.subr.bf16.mxu0 %v5929_v0  ;;  %v6012_v63 = vld [vmem:[#allocation2 + $0x764] ss:$16 sps:$4 sm:$0xff]   ;;  %v6007_v0 = vld [vmem:[#allocation2 + $0x560] ss:$16 sps:$4 sm:$0xff]  }
  0x79   :  { %1763 = vmatprep.subr.bf16.mxu1 %v5931_v1  ;;  %v6010_v1 = vld [vmem:[#allocation2 + $0x760] ss:$16 sps:$4 sm:$0xff]  }
  0x7b   :  { %1723 = vmatpush2.bf16.msra.mxu0 %v5933_v2  ;;  %v6015_v2 = vld [vmem:[#allocation2 + $0x544] ss:$16 sps:$4 sm:$0xff]  }
  0x7c   :  { %1764 = vmatpush2.bf16.msra.mxu1 %v5934_v3  ;;  %1774 = vmatprep.subr.bf16.mxu0 %v5937_v6  ;;  %v6018_v3 = vld [vmem:[#allocation2 + $0x744] ss:$16 sps:$4 sm:$0xff]  }
  0x7d   :  { %1815 = vmatprep.subr.bf16.mxu1 %v5940_v7  ;;  %v6021_v6 = vld [vmem:[#allocation2 + $0x524] ss:$16 sps:$4 sm:$0xff]  }
  0x7e   :  { %1725 = vmatmul.mubr.bf16.vlgmr.msra.gmra.mxu0 %v6678_v8  ;;  %v6024_v7 = vld [vmem:[#allocation2 + $0x724] ss:$16 sps:$4 sm:$0xff]  }
  0x7f   :  { %1766 = vmatmul.mubr.bf16.vlgmr.msra.gmra.mxu1 %v6680_v9  ;;  %1775 = vmatpush1.bf16.msra.mxu0 %v5935_v10  ;;  %v6019_v10 = vld [vmem:[#allocation2 + $0x520] ss:$16 sps:$4 sm:$0xff]  }
  0x80   :  { %1816 = vmatpush1.bf16.msra.mxu1 %v5938_v11  ;;  %1776 = vmatprep.subr.bf16.mxu0 %v5943_v12  ;;  %v6022_v11 = vld [vmem:[#allocation2 + $0x720] ss:$16 sps:$4 sm:$0xff]   ;;  %v6027_v12 = vld [vmem:[#allocation2 + $0x504] ss:$16 sps:$4 sm:$0xff]  }
  0x81   :  { %1817 = vmatprep.subr.bf16.mxu1 %v5946_v13  ;;  %1806 = vmatprep.mubr.bf16.mxu0 %v6687_v37  ;;  %v6030_v13 = vld [vmem:[#allocation2 + $0x704] ss:$16 sps:$4 sm:$0xff]  }
  0x82   :  { %1847 = vmatprep.mubr.bf16.mxu1 %v6692_v40 }
  0x83   :  { %1777 = vmatpush1.bf16.msra.mxu0 %v5941_v14  ;;  %v6025_v14 = vld [vmem:[#allocation2 + $0x500] ss:$16 sps:$4 sm:$0xff]  }
  0x84   :  { %1818 = vmatpush1.bf16.msra.mxu1 %v5944_v15  ;;  %1778 = vmatprep.subr.bf16.mxu0 %v5949_v16  ;;  %v6028_v15 = vld [vmem:[#allocation2 + $0x700] ss:$16 sps:$4 sm:$0xff]  }
  0x85   :  { %1819 = vmatprep.subr.bf16.mxu1 %v5952_v17  ;;  %v122_v16 = vld [vmem:[%s6868_s0 + $0x20] sm:$0xff]  ;;  %v124_v17 = vld [vmem:[%s6868_s0 + $0x30] sm:$0xff] }
  0x87   :  { %1779 = vmatpush1.bf16.msra.mxu0 %v5947_v18  ;;  %v6033_v18 = vld [vmem:[#allocation2 + $0xec] ss:$16 sps:$4 sm:$0xff]  }
  0x88   :  { %1820 = vmatpush1.bf16.msra.mxu1 %v5950_v19  ;;  %1780 = vmatprep.subr.bf16.mxu0 %v5955_v20  ;;  %v6036_v19 = vld [vmem:[#allocation2 + $0x2ec] ss:$16 sps:$4 sm:$0xff]   ;;  %v6702_v20 = vpack.c.bf16 %v122_v16, %v122_v16 }
  0x89   :  { %1821 = vmatprep.subr.bf16.mxu1 %v5958_v21  ;;  %v6704_v21 = vpack.c.bf16 %v124_v17, %v124_v17  ;;  %v6117_v16 = vld [vmem:[#allocation2 + $0x12c] ss:$16 sps:$4 sm:$0xff]  }
  0x8a   :  { %v6120_v17 = vld [vmem:[#allocation2 + $0x32c] ss:$16 sps:$4 sm:$0xff]  }
  0x8b   :  { %1781 = vmatpush1.bf16.msra.mxu0 %v5953_v22  ;;  %v6031_v22 = vld [vmem:[#allocation2 + $0xe8] ss:$16 sps:$4 sm:$0xff]  }
  0x8c   :  { %1822 = vmatpush1.bf16.msra.mxu1 %v5956_v23  ;;  %1782 = vmatprep.subr.bf16.mxu0 %v5961_v24  ;;  %v6034_v23 = vld [vmem:[#allocation2 + $0x2e8] ss:$16 sps:$4 sm:$0xff]   ;;  %v6039_v24 = vld [vmem:[#allocation2 + $0xcc] ss:$16 sps:$4 sm:$0xff]  }
  0x8d   :  { %1823 = vmatprep.subr.bf16.mxu1 %v5964_v25  ;;  %v6042_v25 = vld [vmem:[#allocation2 + $0x2cc] ss:$16 sps:$4 sm:$0xff]  }
  0x8f   :  { %1783 = vmatpush1.bf16.msra.mxu0 %v5959_v26  ;;  %v6037_v26 = vld [vmem:[#allocation2 + $0xc8] ss:$16 sps:$4 sm:$0xff]  }
  0x90   :  { %1824 = vmatpush1.bf16.msra.mxu1 %v5962_v27  ;;  %1784 = vmatprep.subr.bf16.mxu0 %v5967_v28  ;;  %v6040_v27 = vld [vmem:[#allocation2 + $0x2c8] ss:$16 sps:$4 sm:$0xff]   ;;  %v6045_v28 = vld [vmem:[#allocation2 + $0xac] ss:$16 sps:$4 sm:$0xff]  }
  0x91   :  { %1825 = vmatprep.subr.bf16.mxu1 %v5970_v29  ;;  %v6048_v29 = vld [vmem:[#allocation2 + $0x2ac] ss:$16 sps:$4 sm:$0xff]  }
  0x93   :  { %1785 = vmatpush1.bf16.msra.mxu0 %v5965_v30  ;;  %v6043_v30 = vld [vmem:[#allocation2 + $0xa8] ss:$16 sps:$4 sm:$0xff]  }
  0x94   :  { %1826 = vmatpush1.bf16.msra.mxu1 %v5968_v31  ;;  %1786 = vmatprep.subr.bf16.mxu0 %v5973_v32  ;;  %v6046_v31 = vld [vmem:[#allocation2 + $0x2a8] ss:$16 sps:$4 sm:$0xff]   ;;  %v6051_v32 = vld [vmem:[#allocation2 + $0x8c] ss:$16 sps:$4 sm:$0xff]  }
  0x95   :  { %1827 = vmatprep.subr.bf16.mxu1 %v5976_v33  ;;  %v6054_v33 = vld [vmem:[#allocation2 + $0x28c] ss:$16 sps:$4 sm:$0xff]  }
  0x97   :  { %1787 = vmatpush1.bf16.msra.mxu0 %v5971_v35  ;;  %v6052_v35 = vld [vmem:[#allocation2 + $0x288] ss:$16 sps:$4 sm:$0xff]  }
  0x98   :  { %1828 = vmatpush1.bf16.msra.mxu1 %v5974_v36  ;;  %1788 = vmatprep.subr.bf16.mxu0 %v5979_v39  ;;  %v6057_v36 = vld [vmem:[#allocation2 + $0x6c] ss:$16 sps:$4 sm:$0xff]   ;;  %v6055_v39 = vld [vmem:[#allocation2 + $0x68] ss:$16 sps:$4 sm:$0xff]  }
  0x99   :  { %1829 = vmatprep.subr.bf16.mxu1 %v5982_v41  ;;  %v6066_v41 = vld [vmem:[#allocation2 + $0x24c] ss:$16 sps:$4 sm:$0xff]  }
  0x9b   :  { %1789 = vmatpush1.bf16.msra.mxu0 %v5977_v42  ;;  %v6061_v42 = vld [vmem:[#allocation2 + $0x48] ss:$16 sps:$4 sm:$0xff]  }
  0x9c   :  { %1830 = vmatpush1.bf16.msra.mxu1 %v5980_v43  ;;  %1790 = vmatprep.subr.bf16.mxu0 %v5985_v44  ;;  %v6064_v43 = vld [vmem:[#allocation2 + $0x248] ss:$16 sps:$4 sm:$0xff]   ;;  %v6069_v44 = vld [vmem:[#allocation2 + $0x2c] ss:$16 sps:$4 sm:$0xff]  }
  0x9d   :  { %1831 = vmatprep.subr.bf16.mxu1 %v5988_v45  ;;  %v6072_v45 = vld [vmem:[#allocation2 + $0x22c] ss:$16 sps:$4 sm:$0xff]  }
  0x9f   :  { %1791 = vmatpush2.bf16.msra.mxu0 %v5983_v46  ;;  %v6067_v46 = vld [vmem:[#allocation2 + $0x28] ss:$16 sps:$4 sm:$0xff]  }
  0xa0   :  { %1832 = vmatpush2.bf16.msra.mxu1 %v5986_v47  ;;  %1792 = vmatprep.subr.bf16.mxu0 %v5991_v48  ;;  %v6070_v47 = vld [vmem:[#allocation2 + $0x228] ss:$16 sps:$4 sm:$0xff]   ;;  %v6075_v48 = vld [vmem:[#allocation2 + $0xc] ss:$16 sps:$4 sm:$0xff]  }
  0xa1   :  { %1833 = vmatprep.subr.bf16.mxu1 %v5994_v50  ;;  %v6078_v50 = vld [vmem:[#allocation2 + $0x20c] ss:$16 sps:$4 sm:$0xff]  }
  0xa3   :  { %1793 = vmatpush2.bf16.msra.mxu0 %v5989_v51  ;;  %v6073_v51 = vld [vmem:[#allocation2 + $0x8] ss:$16 sps:$4 sm:$0xff]  }
  0xa4   :  { %1834 = vmatpush2.bf16.msra.mxu1 %v5992_v53  ;;  %1794 = vmatprep.subr.bf16.mxu0 %v5997_v54  ;;  %v6076_v53 = vld [vmem:[#allocation2 + $0x208] ss:$16 sps:$4 sm:$0xff]   ;;  %v6081_v54 = vld [vmem:[#allocation2 + $0x1ec] ss:$16 sps:$4 sm:$0xff]  }
  0xa5   :  { %1835 = vmatprep.subr.bf16.mxu1 %v6000_v55  ;;  %v6084_v55 = vld [vmem:[#allocation2 + $0x3ec] ss:$16 sps:$4 sm:$0xff]  }
  0xa7   :  { %1795 = vmatpush2.bf16.msra.mxu0 %v5995_v56  ;;  %v6079_v56 = vld [vmem:[#allocation2 + $0x1e8] ss:$16 sps:$4 sm:$0xff]  }
  0xa8   :  { %1836 = vmatpush2.bf16.msra.mxu1 %v5998_v57  ;;  %1796 = vmatprep.subr.bf16.mxu0 %v6003_v58  ;;  %v6082_v57 = vld [vmem:[#allocation2 + $0x3e8] ss:$16 sps:$4 sm:$0xff]   ;;  %v6087_v58 = vld [vmem:[#allocation2 + $0x1cc] ss:$16 sps:$4 sm:$0xff]  }
  0xa9   :  { %1837 = vmatprep.subr.bf16.mxu1 %v6006_v59  ;;  %v6090_v59 = vld [vmem:[#allocation2 + $0x3cc] ss:$16 sps:$4 sm:$0xff]  }
  0xab   :  { %1797 = vmatpush2.bf16.msra.mxu0 %v6001_v60  ;;  %v6085_v60 = vld [vmem:[#allocation2 + $0x1c8] ss:$16 sps:$4 sm:$0xff]  }
  0xac   :  { %1838 = vmatpush2.bf16.msra.mxu1 %v6004_v61  ;;  %1798 = vmatprep.subr.bf16.mxu0 %v6009_v62  ;;  %v6088_v61 = vld [vmem:[#allocation2 + $0x3c8] ss:$16 sps:$4 sm:$0xff]   ;;  %v6093_v62 = vld [vmem:[#allocation2 + $0x1ac] ss:$16 sps:$4 sm:$0xff]  }
  0xad   :  { %1839 = vmatprep.subr.bf16.mxu1 %v6012_v63  ;;  %v6096_v63 = vld [vmem:[#allocation2 + $0x3ac] ss:$16 sps:$4 sm:$0xff]  }
  0xaf   :  { %1799 = vmatpush2.bf16.msra.mxu0 %v6007_v0  ;;  %v6091_v0 = vld [vmem:[#allocation2 + $0x1a8] ss:$16 sps:$4 sm:$0xff]  }
  0xb0   :  { %1840 = vmatpush2.bf16.msra.mxu1 %v6010_v1  ;;  %1800 = vmatprep.subr.bf16.mxu0 %v6015_v2  ;;  %v6094_v1 = vld [vmem:[#allocation2 + $0x3a8] ss:$16 sps:$4 sm:$0xff]   ;;  %v6099_v2 = vld [vmem:[#allocation2 + $0x18c] ss:$16 sps:$4 sm:$0xff]  }
  0xb1   :  { %1841 = vmatprep.subr.bf16.mxu1 %v6018_v3  ;;  %v6102_v3 = vld [vmem:[#allocation2 + $0x38c] ss:$16 sps:$4 sm:$0xff]  }
  0xb3   :  { %1801 = vmatpush2.bf16.msra.mxu0 %v6013_v4  ;;  %v6097_v4 = vld [vmem:[#allocation2 + $0x188] ss:$16 sps:$4 sm:$0xff]  }
  0xb4   :  { %1842 = vmatpush2.bf16.msra.mxu1 %v6016_v5  ;;  %1802 = vmatprep.subr.bf16.mxu0 %v6021_v6  ;;  %v6100_v5 = vld [vmem:[#allocation2 + $0x388] ss:$16 sps:$4 sm:$0xff]   ;;  %v6105_v6 = vld [vmem:[#allocation2 + $0x16c] ss:$16 sps:$4 sm:$0xff]  }
  0xb5   :  { %1843 = vmatprep.subr.bf16.mxu1 %v6024_v7  ;;  %v6108_v7 = vld [vmem:[#allocation2 + $0x36c] ss:$16 sps:$4 sm:$0xff]  }
  0xb7   :  { %1803 = vmatpush2.bf16.msra.mxu0 %v6019_v10  ;;  %v6103_v10 = vld [vmem:[#allocation2 + $0x168] ss:$16 sps:$4 sm:$0xff]  }
  0xb8   :  { %1844 = vmatpush2.bf16.msra.mxu1 %v6022_v11  ;;  %1804 = vmatprep.subr.bf16.mxu0 %v6027_v12  ;;  %v6106_v11 = vld [vmem:[#allocation2 + $0x368] ss:$16 sps:$4 sm:$0xff]   ;;  %v6111_v12 = vld [vmem:[#allocation2 + $0x14c] ss:$16 sps:$4 sm:$0xff]  }
  0xb9   :  { %1845 = vmatprep.subr.bf16.mxu1 %v6030_v13  ;;  %v6114_v13 = vld [vmem:[#allocation2 + $0x34c] ss:$16 sps:$4 sm:$0xff]  }
  0xbb   :  { %1805 = vmatpush2.bf16.msra.mxu0 %v6025_v14  ;;  %v6109_v14 = vld [vmem:[#allocation2 + $0x148] ss:$16 sps:$4 sm:$0xff]  }
  0xbc   :  { %1846 = vmatpush2.bf16.msra.mxu1 %v6028_v15  ;;  %1856 = vmatprep.subr.bf16.mxu0 %v6033_v18  ;;  %v6112_v15 = vld [vmem:[#allocation2 + $0x348] ss:$16 sps:$4 sm:$0xff]  }
  0xbd   :  { %1897 = vmatprep.subr.bf16.mxu1 %v6036_v19  ;;  %v6115_v18 = vld [vmem:[#allocation2 + $0x128] ss:$16 sps:$4 sm:$0xff]  }
  0xbe   :  { %1807 = vmatmul.mubr.bf16.vlgmr.msra.gmra.mxu0 %v6702_v20  ;;  %v6118_v19 = vld [vmem:[#allocation2 + $0x328] ss:$16 sps:$4 sm:$0xff]  }
  0xbf   :  { %1848 = vmatmul.mubr.bf16.vlgmr.msra.gmra.mxu1 %v6704_v21  ;;  %1857 = vmatpush1.bf16.msra.mxu0 %v6031_v22  ;;  %v6123_v22 = vld [vmem:[#allocation2 + $0x10c] ss:$16 sps:$4 sm:$0xff]  }
  0xc0   :  { %1898 = vmatpush1.bf16.msra.mxu1 %v6034_v23  ;;  %1858 = vmatprep.subr.bf16.mxu0 %v6039_v24  ;;  %v6126_v23 = vld [vmem:[#allocation2 + $0x30c] ss:$16 sps:$4 sm:$0xff]   ;;  %v6121_v24 = vld [vmem:[#allocation2 + $0x108] ss:$16 sps:$4 sm:$0xff]  }
  0xc1   :  { %1899 = vmatprep.subr.bf16.mxu1 %v6042_v25  ;;  %1888 = vmatprep.mubr.bf16.mxu0 %v6663_v49  ;;  %v6058_v49 = vld [vmem:[#allocation2 + $0x268] ss:$16 sps:$4 sm:$0xff]  }
  0xc2   :  { %1929 = vmatprep.mubr.bf16.mxu1 %v6668_v52  ;;  %v6063_v52 = vld [vmem:[#allocation2 + $0x4c] ss:$16 sps:$4 sm:$0xff]   ;;  %v6124_v25 = vld [vmem:[#allocation2 + $0x308] ss:$16 sps:$4 sm:$0xff]  }
  0xc3   :  { %1859 = vmatpush1.bf16.msra.mxu0 %v6037_v26  ;;  %v6129_v26 = vld [vmem:[#allocation2 + $0x4ec] ss:$16 sps:$4 sm:$0xff]  }
  0xc4   :  { %1900 = vmatpush1.bf16.msra.mxu1 %v6040_v27  ;;  %1860 = vmatprep.subr.bf16.mxu0 %v6045_v28  ;;  %v6132_v27 = vld [vmem:[#allocation2 + $0x6ec] ss:$16 sps:$4 sm:$0xff]   ;;  %v6127_v28 = vld [vmem:[#allocation2 + $0x4e8] ss:$16 sps:$4 sm:$0xff]  }
  0xc5   :  { %1901 = vmatprep.subr.bf16.mxu1 %v6048_v29  ;;  %v6130_v29 = vld [vmem:[#allocation2 + $0x6e8] ss:$16 sps:$4 sm:$0xff]  }
  0xc7   :  { %1861 = vmatpush1.bf16.msra.mxu0 %v6043_v30  ;;  %v6135_v30 = vld [vmem:[#allocation2 + $0x4cc] ss:$16 sps:$4 sm:$0xff]  }
  0xc8   :  { %1902 = vmatpush1.bf16.msra.mxu1 %v6046_v31  ;;  %1862 = vmatprep.subr.bf16.mxu0 %v6051_v32  ;;  %v6138_v31 = vld [vmem:[#allocation2 + $0x6cc] ss:$16 sps:$4 sm:$0xff]   ;;  %v6133_v32 = vld [vmem:[#allocation2 + $0x4c8] ss:$16 sps:$4 sm:$0xff]  }
  0xc9   :  { %1903 = vmatprep.subr.bf16.mxu1 %v6054_v33  ;;  %v6136_v33 = vld [vmem:[#allocation2 + $0x6c8] ss:$16 sps:$4 sm:$0xff]  }
  0xcb   :  { %1863 = vmatpush1.bf16.msra.mxu0 %v6049_v34  ;;  %v6141_v34 = vld [vmem:[#allocation2 + $0x4ac] ss:$16 sps:$4 sm:$0xff]  }
  0xcc   :  { %1904 = vmatpush1.bf16.msra.mxu1 %v6052_v35  ;;  %1864 = vmatprep.subr.bf16.mxu0 %v6057_v36  ;;  %v6144_v35 = vld [vmem:[#allocation2 + $0x6ac] ss:$16 sps:$4 sm:$0xff]   ;;  %v6139_v36 = vld [vmem:[#allocation2 + $0x4a8] ss:$16 sps:$4 sm:$0xff]  }
  0xcd   :  { %1905 = vmatprep.subr.bf16.mxu1 %v6060_v38  ;;  %v6142_v38 = vld [vmem:[#allocation2 + $0x6a8] ss:$16 sps:$4 sm:$0xff]  }
  0xcf   :  { %1865 = vmatpush1.bf16.msra.mxu0 %v6055_v39  ;;  %v6147_v39 = vld [vmem:[#allocation2 + $0x48c] ss:$16 sps:$4 sm:$0xff]  }
  0xd0   :  { %1906 = vmatpush1.bf16.msra.mxu1 %v6058_v49  ;;  %1866 = vmatprep.subr.bf16.mxu0 %v6063_v52  ;;  %v6145_v49 = vld [vmem:[#allocation2 + $0x488] ss:$16 sps:$4 sm:$0xff]   ;;  %v6153_v52 = vld [vmem:[#allocation2 + $0x46c] ss:$16 sps:$4 sm:$0xff]  }
  0xd1   :  { %1907 = vmatprep.subr.bf16.mxu1 %v6066_v41  ;;  %v6156_v41 = vld [vmem:[#allocation2 + $0x66c] ss:$16 sps:$4 sm:$0xff]  }
  0xd3   :  { %1867 = vmatpush1.bf16.msra.mxu0 %v6061_v42  ;;  %v6151_v42 = vld [vmem:[#allocation2 + $0x468] ss:$16 sps:$4 sm:$0xff]  }
  0xd4   :  { %1908 = vmatpush1.bf16.msra.mxu1 %v6064_v43  ;;  %1868 = vmatprep.subr.bf16.mxu0 %v6069_v44  ;;  %v6154_v43 = vld [vmem:[#allocation2 + $0x668] ss:$16 sps:$4 sm:$0xff]   ;;  %v6159_v44 = vld [vmem:[#allocation2 + $0x44c] ss:$16 sps:$4 sm:$0xff]  }
  0xd5   :  { %1909 = vmatprep.subr.bf16.mxu1 %v6072_v45  ;;  %v6160_v45 = vld [vmem:[#allocation2 + $0x648] ss:$16 sps:$4 sm:$0xff]  }
  0xd7   :  { %1869 = vmatpush1.bf16.msra.mxu0 %v6067_v46  ;;  %v6165_v46 = vld [vmem:[#allocation2 + $0x42c] ss:$16 sps:$4 sm:$0xff]  }
  0xd8   :  { %1910 = vmatpush1.bf16.msra.mxu1 %v6070_v47  ;;  %1870 = vmatprep.subr.bf16.mxu0 %v6075_v48  ;;  %v6168_v47 = vld [vmem:[#allocation2 + $0x62c] ss:$16 sps:$4 sm:$0xff]   ;;  %v6163_v48 = vld [vmem:[#allocation2 + $0x428] ss:$16 sps:$4 sm:$0xff]  }
  0xd9   :  { %1911 = vmatprep.subr.bf16.mxu1 %v6078_v50  ;;  %v6166_v50 = vld [vmem:[#allocation2 + $0x628] ss:$16 sps:$4 sm:$0xff]  }
  0xdb   :  { %1871 = vmatpush1.bf16.msra.mxu0 %v6073_v51  ;;  %v6171_v51 = vld [vmem:[#allocation2 + $0x40c] ss:$16 sps:$4 sm:$0xff]  }
  0xdc   :  { %1912 = vmatpush1.bf16.msra.mxu1 %v6076_v53  ;;  %1872 = vmatprep.subr.bf16.mxu0 %v6081_v54  ;;  %v6174_v53 = vld [vmem:[#allocation2 + $0x60c] ss:$16 sps:$4 sm:$0xff]   ;;  %v6169_v54 = vld [vmem:[#allocation2 + $0x408] ss:$16 sps:$4 sm:$0xff]  }
  0xdd   :  { %1913 = vmatprep.subr.bf16.mxu1 %v6084_v55  ;;  %v6172_v55 = vld [vmem:[#allocation2 + $0x608] ss:$16 sps:$4 sm:$0xff]  }
  0xdf   :  { %1873 = vmatpush2.bf16.msra.mxu0 %v6079_v56  ;;  %v6177_v56 = vld [vmem:[#allocation2 + $0x5ec] ss:$16 sps:$4 sm:$0xff]  }
  0xe0   :  { %1914 = vmatpush2.bf16.msra.mxu1 %v6082_v57  ;;  %1874 = vmatprep.subr.bf16.mxu0 %v6087_v58  ;;  %v6180_v57 = vld [vmem:[#allocation2 + $0x7ec] ss:$16 sps:$4 sm:$0xff]   ;;  %v6175_v58 = vld [vmem:[#allocation2 + $0x5e8] ss:$16 sps:$4 sm:$0xff]  }
  0xe1   :  { %1915 = vmatprep.subr.bf16.mxu1 %v6090_v59  ;;  %v6178_v59 = vld [vmem:[#allocation2 + $0x7e8] ss:$16 sps:$4 sm:$0xff]  }
  0xe3   :  { %1875 = vmatpush2.bf16.msra.mxu0 %v6085_v60  ;;  %v6183_v60 = vld [vmem:[#allocation2 + $0x5cc] ss:$16 sps:$4 sm:$0xff]  }
  0xe4   :  { %1916 = vmatpush2.bf16.msra.mxu1 %v6088_v61  ;;  %1876 = vmatprep.subr.bf16.mxu0 %v6093_v62  ;;  %v6186_v61 = vld [vmem:[#allocation2 + $0x7cc] ss:$16 sps:$4 sm:$0xff]   ;;  %v6181_v62 = vld [vmem:[#allocation2 + $0x5c8] ss:$16 sps:$4 sm:$0xff]  }
  0xe5   :  { %1917 = vmatprep.subr.bf16.mxu1 %v6096_v63  ;;  %v6184_v63 = vld [vmem:[#allocation2 + $0x7c8] ss:$16 sps:$4 sm:$0xff]  }
  0xe7   :  { %1877 = vmatpush2.bf16.msra.mxu0 %v6091_v0  ;;  %v6189_v0 = vld [vmem:[#allocation2 + $0x5ac] ss:$16 sps:$4 sm:$0xff]  }
  0xe8   :  { %1918 = vmatpush2.bf16.msra.mxu1 %v6094_v1  ;;  %1878 = vmatprep.subr.bf16.mxu0 %v6099_v2  ;;  %v6192_v1 = vld [vmem:[#allocation2 + $0x7ac] ss:$16 sps:$4 sm:$0xff]   ;;  %v6187_v2 = vld [vmem:[#allocation2 + $0x5a8] ss:$16 sps:$4 sm:$0xff]  }
  0xe9   :  { %1919 = vmatprep.subr.bf16.mxu1 %v6102_v3  ;;  %v6190_v3 = vld [vmem:[#allocation2 + $0x7a8] ss:$16 sps:$4 sm:$0xff]  }
  0xeb   :  { %1879 = vmatpush2.bf16.msra.mxu0 %v6097_v4  ;;  %v6195_v4 = vld [vmem:[#allocation2 + $0x58c] ss:$16 sps:$4 sm:$0xff]  }
  0xec   :  { %1920 = vmatpush2.bf16.msra.mxu1 %v6100_v5  ;;  %1880 = vmatprep.subr.bf16.mxu0 %v6105_v6  ;;  %v6198_v5 = vld [vmem:[#allocation2 + $0x78c] ss:$16 sps:$4 sm:$0xff]   ;;  %v6193_v6 = vld [vmem:[#allocation2 + $0x588] ss:$16 sps:$4 sm:$0xff]  }
  0xed   :  { %1921 = vmatprep.subr.bf16.mxu1 %v6108_v7  ;;  %v6196_v7 = vld [vmem:[#allocation2 + $0x788] ss:$16 sps:$4 sm:$0xff]  }
  0xef   :  { %1881 = vmatpush2.bf16.msra.mxu0 %v6103_v10  ;;  %v6201_v10 = vld [vmem:[#allocation2 + $0x56c] ss:$16 sps:$4 sm:$0xff]  }
  0xf0   :  { %1922 = vmatpush2.bf16.msra.mxu1 %v6106_v11  ;;  %1882 = vmatprep.subr.bf16.mxu0 %v6111_v12  ;;  %v6204_v11 = vld [vmem:[#allocation2 + $0x76c] ss:$16 sps:$4 sm:$0xff]   ;;  %v6199_v12 = vld [vmem:[#allocation2 + $0x568] ss:$16 sps:$4 sm:$0xff]  }
  0xf1   :  { %1923 = vmatprep.subr.bf16.mxu1 %v6114_v13  ;;  %v6202_v13 = vld [vmem:[#allocation2 + $0x768] ss:$16 sps:$4 sm:$0xff]  }
  0xf3   :  { %1883 = vmatpush2.bf16.msra.mxu0 %v6109_v14  ;;  %v6207_v14 = vld [vmem:[#allocation2 + $0x54c] ss:$16 sps:$4 sm:$0xff]  }
  0xf4   :  { %1924 = vmatpush2.bf16.msra.mxu1 %v6112_v15  ;;  %1884 = vmatprep.subr.bf16.mxu0 %v6117_v16  ;;  %v6210_v15 = vld [vmem:[#allocation2 + $0x74c] ss:$16 sps:$4 sm:$0xff]   ;;  %v6205_v16 = vld [vmem:[#allocation2 + $0x548] ss:$16 sps:$4 sm:$0xff]  }
  0xf5   :  { %1925 = vmatprep.subr.bf16.mxu1 %v6120_v17  ;;  %v6208_v17 = vld [vmem:[#allocation2 + $0x748] ss:$16 sps:$4 sm:$0xff]  }
  0xf7   :  { %1885 = vmatpush2.bf16.msra.mxu0 %v6115_v18  ;;  %v6213_v18 = vld [vmem:[#allocation2 + $0x52c] ss:$16 sps:$4 sm:$0xff]  }
  0xf8   :  { %1926 = vmatpush2.bf16.msra.mxu1 %v6118_v19  ;;  %1886 = vmatprep.subr.bf16.mxu0 %v6123_v22  ;;  %v6216_v19 = vld [vmem:[#allocation2 + $0x72c] ss:$16 sps:$4 sm:$0xff]   ;;  %v6211_v22 = vld [vmem:[#allocation2 + $0x528] ss:$16 sps:$4 sm:$0xff]  }
  0xf9   :  { %1927 = vmatprep.subr.bf16.mxu1 %v6126_v23  ;;  %v6214_v23 = vld [vmem:[#allocation2 + $0x728] ss:$16 sps:$4 sm:$0xff]  }
  0xfb   :  { %1887 = vmatpush2.bf16.msra.mxu0 %v6121_v24  ;;  %v6219_v24 = vld [vmem:[#allocation2 + $0x50c] ss:$16 sps:$4 sm:$0xff]  }
  0xfc   :  { %1928 = vmatpush2.bf16.msra.mxu1 %v6124_v25  ;;  %1938 = vmatprep.subr.bf16.mxu0 %v6129_v26  ;;  %v6222_v25 = vld [vmem:[#allocation2 + $0x70c] ss:$16 sps:$4 sm:$0xff]   ;;  %v6217_v26 = vld [vmem:[#allocation2 + $0x508] ss:$16 sps:$4 sm:$0xff]  }
  0xfd   :  { %1979 = vmatprep.subr.bf16.mxu1 %v6132_v27  ;;  %v6220_v27 = vld [vmem:[#allocation2 + $0x708] ss:$16 sps:$4 sm:$0xff]  }
  0xfe   :  { %1889 = vmatmul.mubr.bf16.vlgmr.msra.gmra.mxu0 %v6678_v8  ;;  %v6150_v8 = vld [vmem:[#allocation2 + $0x68c] ss:$16 sps:$4 sm:$0xff]  }
  0xff   :  { %1930 = vmatmul.mubr.bf16.vlgmr.msra.gmra.mxu1 %v6680_v9  ;;  %1939 = vmatpush1.bf16.msra.mxu0 %v6127_v28  ;;  %v6148_v9 = vld [vmem:[#allocation2 + $0x688] ss:$16 sps:$4 sm:$0xff]   ;;  %v6225_v28 = vld [vmem:[#allocation4 + $0x74] ss:$8 sps:$4 sm:$0xff]  }
 0x100   :  { %1980 = vmatpush1.bf16.msra.mxu1 %v6130_v29  ;;  %1940 = vmatprep.subr.bf16.mxu0 %v6135_v30  ;;  %v6223_v29 = vld [vmem:[#allocation4 + $0x70] ss:$8 sps:$4 sm:$0xff]   ;;  %v6228_v30 = vld [vmem:[#allocation4 + $0x64] ss:$8 sps:$4 sm:$0xff]  }
 0x101   :  { %1981 = vmatprep.subr.bf16.mxu1 %v6138_v31  ;;  %1970 = vmatprep.mubr.bf16.mxu0 %v6687_v37  ;;  %v6162_v37 = vld [vmem:[#allocation2 + $0x64c] ss:$16 sps:$4 sm:$0xff]  }
 0x102   :  { %2011 = vmatprep.mubr.bf16.mxu1 %v6692_v40  ;;  %v6157_v40 = vld [vmem:[#allocation2 + $0x448] ss:$16 sps:$4 sm:$0xff]  }
 0x103   :  { %1941 = vmatpush1.bf16.msra.mxu0 %v6133_v32 }
 0x104   :  { %1982 = vmatpush1.bf16.msra.mxu1 %v6136_v33  ;;  %1942 = vmatprep.subr.bf16.mxu0 %v6141_v34  ;;  %v6226_v33 = vld [vmem:[#allocation4 + $0x60] ss:$8 sps:$4 sm:$0xff]  }
 0x105   :  { %1983 = vmatprep.subr.bf16.mxu1 %v6144_v35 }
 0x107   :  { %1943 = vmatpush1.bf16.msra.mxu0 %v6139_v36  ;;  %v6231_v36 = vld [vmem:[#allocation4 + $0x54] ss:$8 sps:$4 sm:$0xff]  }
 0x108   :  { %1984 = vmatpush1.bf16.msra.mxu1 %v6142_v38  ;;  %1944 = vmatprep.subr.bf16.mxu0 %v6147_v39 }
 0x109   :  { %1985 = vmatprep.subr.bf16.mxu1 %v6150_v8  ;;  %v6229_v8 = vld [vmem:[#allocation4 + $0x50] ss:$8 sps:$4 sm:$0xff]  }
 0x10b   :  { %1945 = vmatpush1.bf16.msra.mxu0 %v6145_v49 }
 0x10c   :  { %1986 = vmatpush1.bf16.msra.mxu1 %v6148_v9  ;;  %1946 = vmatprep.subr.bf16.mxu0 %v6153_v52  ;;  %v6234_v52 = vld [vmem:[#allocation4 + $0x44] ss:$8 sps:$4 sm:$0xff]  }
 0x10d   :  { %1987 = vmatprep.subr.bf16.mxu1 %v6156_v41  ;;  %v6271_v41 = vld [vmem:[#allocation4 + $0x170] ss:$8 sps:$4 sm:$0xff]  }
 0x10f   :  { %1947 = vmatpush1.bf16.msra.mxu0 %v6151_v42  ;;  %v6276_v42 = vld [vmem:[#allocation4 + $0x164] ss:$8 sps:$4 sm:$0xff]  }
 0x110   :  { %1988 = vmatpush1.bf16.msra.mxu1 %v6154_v43  ;;  %1948 = vmatprep.subr.bf16.mxu0 %v6159_v44  ;;  %v6274_v43 = vld [vmem:[#allocation4 + $0x160] ss:$8 sps:$4 sm:$0xff]   ;;  %v6237_v44 = vld [vmem:[#allocation4 + $0x34] ss:$8 sps:$4 sm:$0xff]  }
 0x111   :  { %1989 = vmatprep.subr.bf16.mxu1 %v6162_v37  ;;  %v6279_v37 = vld [vmem:[#allocation4 + $0x154] ss:$8 sps:$4 sm:$0xff]  }
 0x113   :  { %1949 = vmatpush1.bf16.msra.mxu0 %v6157_v40  ;;  %v6235_v40 = vld [vmem:[#allocation4 + $0x30] ss:$8 sps:$4 sm:$0xff]  }
 0x114   :  { %1990 = vmatpush1.bf16.msra.mxu1 %v6160_v45  ;;  %1950 = vmatprep.subr.bf16.mxu0 %v6165_v46  ;;  %v6277_v45 = vld [vmem:[#allocation4 + $0x150] ss:$8 sps:$4 sm:$0xff]   ;;  %v6240_v46 = vld [vmem:[#allocation4 + $0x24] ss:$8 sps:$4 sm:$0xff]  }
 0x115   :  { %1991 = vmatprep.subr.bf16.mxu1 %v6168_v47  ;;  %v6282_v47 = vld [vmem:[#allocation4 + $0x144] ss:$8 sps:$4 sm:$0xff]  }
 0x117   :  { %1951 = vmatpush1.bf16.msra.mxu0 %v6163_v48  ;;  %v6238_v48 = vld [vmem:[#allocation4 + $0x20] ss:$8 sps:$4 sm:$0xff]  }
 0x118   :  { %1992 = vmatpush1.bf16.msra.mxu1 %v6166_v50  ;;  %1952 = vmatprep.subr.bf16.mxu0 %v6171_v51  ;;  %v6280_v50 = vld [vmem:[#allocation4 + $0x140] ss:$8 sps:$4 sm:$0xff]   ;;  %v6243_v51 = vld [vmem:[#allocation4 + $0x14] ss:$8 sps:$4 sm:$0xff]  }
 0x119   :  { %1993 = vmatprep.subr.bf16.mxu1 %v6174_v53  ;;  %v6285_v53 = vld [vmem:[#allocation4 + $0x134] ss:$8 sps:$4 sm:$0xff]  }
 0x11b   :  { %1953 = vmatpush1.bf16.msra.mxu0 %v6169_v54  ;;  %v6241_v54 = vld [vmem:[#allocation4 + $0x10] ss:$8 sps:$4 sm:$0xff]  }
 0x11c   :  { %1994 = vmatpush1.bf16.msra.mxu1 %v6172_v55  ;;  %1954 = vmatprep.subr.bf16.mxu0 %v6177_v56  ;;  %v6283_v55 = vld [vmem:[#allocation4 + $0x130] ss:$8 sps:$4 sm:$0xff]   ;;  %v6246_v56 = vld [vmem:[#allocation4 + $0x4] ss:$8 sps:$4 sm:$0xff]  }
 0x11d   :  { %1995 = vmatprep.subr.bf16.mxu1 %v6180_v57  ;;  %v6288_v57 = vld [vmem:[#allocation4 + $0x124] ss:$8 sps:$4 sm:$0xff]  }
 0x11f   :  { %1955 = vmatpush2.bf16.msra.mxu0 %v6175_v58  ;;  %v6244_v58 = vld [vmem:[#allocation4] ss:$8 sps:$4 sm:$0xff]  }
 0x120   :  { %1996 = vmatpush2.bf16.msra.mxu1 %v6178_v59  ;;  %1956 = vmatprep.subr.bf16.mxu0 %v6183_v60  ;;  %v6286_v59 = vld [vmem:[#allocation4 + $0x120] ss:$8 sps:$4 sm:$0xff]   ;;  %v6249_v60 = vld [vmem:[#allocation4 + $0xf4] ss:$8 sps:$4 sm:$0xff]  }
 0x121   :  { %1997 = vmatprep.subr.bf16.mxu1 %v6186_v61  ;;  %v6291_v61 = vld [vmem:[#allocation4 + $0x114] ss:$8 sps:$4 sm:$0xff]  }
 0x123   :  { %1957 = vmatpush2.bf16.msra.mxu0 %v6181_v62  ;;  %v6247_v62 = vld [vmem:[#allocation4 + $0xf0] ss:$8 sps:$4 sm:$0xff]  }
 0x124   :  { %1998 = vmatpush2.bf16.msra.mxu1 %v6184_v63  ;;  %1958 = vmatprep.subr.bf16.mxu0 %v6189_v0  ;;  %v6289_v63 = vld [vmem:[#allocation4 + $0x110] ss:$8 sps:$4 sm:$0xff]   ;;  %v6252_v0 = vld [vmem:[#allocation4 + $0xe4] ss:$8 sps:$4 sm:$0xff]  }
 0x125   :  { %1999 = vmatprep.subr.bf16.mxu1 %v6192_v1  ;;  %v6294_v1 = vld [vmem:[#allocation4 + $0x104] ss:$8 sps:$4 sm:$0xff]  }
 0x127   :  { %1959 = vmatpush2.bf16.msra.mxu0 %v6187_v2  ;;  %v6250_v2 = vld [vmem:[#allocation4 + $0xe0] ss:$8 sps:$4 sm:$0xff]  }
 0x128   :  { %2000 = vmatpush2.bf16.msra.mxu1 %v6190_v3  ;;  %1960 = vmatprep.subr.bf16.mxu0 %v6195_v4  ;;  %v6292_v3 = vld [vmem:[#allocation4 + $0x100] ss:$8 sps:$4 sm:$0xff]   ;;  %v6255_v4 = vld [vmem:[#allocation4 + $0xd4] ss:$8 sps:$4 sm:$0xff]  }
 0x129   :  { %2001 = vmatprep.subr.bf16.mxu1 %v6198_v5  ;;  %v6297_v5 = vld [vmem:[#allocation4 + $0x1f4] ss:$8 sps:$4 sm:$0xff]  }
 0x12b   :  { %1961 = vmatpush2.bf16.msra.mxu0 %v6193_v6  ;;  %v6253_v6 = vld [vmem:[#allocation4 + $0xd0] ss:$8 sps:$4 sm:$0xff]  }
 0x12c   :  { %2002 = vmatpush2.bf16.msra.mxu1 %v6196_v7  ;;  %1962 = vmatprep.subr.bf16.mxu0 %v6201_v10  ;;  %v6295_v7 = vld [vmem:[#allocation4 + $0x1f0] ss:$8 sps:$4 sm:$0xff]   ;;  %v6258_v10 = vld [vmem:[#allocation4 + $0xc4] ss:$8 sps:$4 sm:$0xff]  }
 0x12d   :  { %2003 = vmatprep.subr.bf16.mxu1 %v6204_v11  ;;  %v6300_v11 = vld [vmem:[#allocation4 + $0x1e4] ss:$8 sps:$4 sm:$0xff]  }
 0x12f   :  { %1963 = vmatpush2.bf16.msra.mxu0 %v6199_v12  ;;  %v6256_v12 = vld [vmem:[#allocation4 + $0xc0] ss:$8 sps:$4 sm:$0xff]  }
 0x130   :  { %2004 = vmatpush2.bf16.msra.mxu1 %v6202_v13  ;;  %1964 = vmatprep.subr.bf16.mxu0 %v6207_v14  ;;  %v6298_v13 = vld [vmem:[#allocation4 + $0x1e0] ss:$8 sps:$4 sm:$0xff]   ;;  %v6261_v14 = vld [vmem:[#allocation4 + $0xb4] ss:$8 sps:$4 sm:$0xff]  }
 0x131   :  { %2005 = vmatprep.subr.bf16.mxu1 %v6210_v15  ;;  %v6303_v15 = vld [vmem:[#allocation4 + $0x1d4] ss:$8 sps:$4 sm:$0xff]  }
 0x133   :  { %1965 = vmatpush2.bf16.msra.mxu0 %v6205_v16  ;;  %v392_v16 = vlaneseq }
 0x134   :  { %2006 = vmatpush2.bf16.msra.mxu1 %v6208_v17  ;;  %1966 = vmatprep.subr.bf16.mxu0 %v6213_v18  ;;  %v6259_v17 = vld [vmem:[#allocation4 + $0xb0] ss:$8 sps:$4 sm:$0xff]  }
 0x135   :  { %2007 = vmatprep.subr.bf16.mxu1 %v6216_v19  ;;  %v6301_v18 = vld [vmem:[#allocation4 + $0x1d0] ss:$8 sps:$4 sm:$0xff]   ;;  %v6264_v19 = vld [vmem:[#allocation4 + $0xa4] ss:$8 sps:$4 sm:$0xff]  }
 0x137   :  { %1967 = vmatpush2.bf16.msra.mxu0 %v6211_v22  ;;  %v6306_v22 = vld [vmem:[#allocation4 + $0x1c4] ss:$8 sps:$4 sm:$0xff]  }
 0x138   :  { %2008 = vmatpush2.bf16.msra.mxu1 %v6214_v23  ;;  %1968 = vmatprep.subr.bf16.mxu0 %v6219_v24  ;;  %v6724_v23 = vshrl.u32 %v392_v16, 7  ;;  %v6262_v24 = vld [vmem:[#allocation4 + $0xa0] ss:$8 sps:$4 sm:$0xff]   ;;  %v2518_v16 = vld [vmem:[#allocation6 + $0x50] sm:$0xff] }
 0x139   :  { %2009 = vmatprep.subr.bf16.mxu1 %v6222_v25  ;;  %v6304_v25 = vld [vmem:[#allocation4 + $0x1c0] ss:$8 sps:$4 sm:$0xff]  }
 0x13b   :  { %1969 = vmatpush2.bf16.msra.mxu0 %v6217_v26  ;;  %v6267_v26 = vld [vmem:[#allocation4 + $0x94] ss:$8 sps:$4 sm:$0xff]  }
 0x13c   :  { %2010 = vmatpush2.bf16.msra.mxu1 %v6220_v27  ;;  %2424 = vmatprep.subr.bf16.mxu0 %v6225_v28  ;;  %v6309_v27 = vld [vmem:[#allocation4 + $0x1b4] ss:$8 sps:$4 sm:$0xff]   ;;  %v6727_v28 = vsub.s32 0, %v6724_v23 }
 0x13e   :  { %v6714_v31 = vpop.f32.mrf.mxu0  ;;  %1971 = vmatmul.mubr.bf16.vlgmr.msra.gmra.mxu0 %v6702_v20  ;;  %v6273_v20 = vld [vmem:[#allocation4 + $0x174] ss:$8 sps:$4 sm:$0xff]  }
 0x13f   :  { %v6716_v32 = vpop.f32.mrf.mxu1  ;;  %2012 = vmatmul.mubr.bf16.vlgmr.msra.gmra.mxu1 %v6704_v21  ;;  %2425 = vmatpush1.bf16.msra.mxu0 %v6223_v29  ;;  %v6232_v21 = vld [vmem:[#allocation4 + $0x40] ss:$8 sps:$4 sm:$0xff]  }
 0x140   :  { %v6720_v34 = vpop.f32.mrf.mxu0  ;;  %2426 = vmatprep.subr.bf16.mxu0 %v6228_v30  ;;  %2465 = vmatprep.subr.bf16.mxu1 %v6273_v20  ;;  %v6732_v29 = vld [vmem:[%s6871_s3] sm:$0xf]  ;;  %v6735_v30 = vsub.s32 1, %v6724_v23 }
 0x141   :  { %v6722_v35 = vpop.f32.mrf.mxu1  ;;  %2466 = vmatpush1.bf16.msra.mxu1 %v6271_v41  ;;  %v6312_v41 = vld [vmem:[#allocation4 + $0x1a4] ss:$8 sps:$4 sm:$0xff]  }
 0x142   :  { %v1730_v38 = vpop.f32.mrf.mxu0  ;;  %2467 = vmatprep.subr.bf16.mxu1 %v6276_v42  ;;  %v6310_v42 = vld [vmem:[#allocation4 + $0x1a0] ss:$8 sps:$4 sm:$0xff]  }
 0x143   :  { %v1771_v39 = vpop.f32.mrf.mxu1  ;;  %2427 = vmatpush1.bf16.msra.mxu0 %v6226_v33  ;;  %v6265_v33 = vld [vmem:[#allocation4 + $0x90] ss:$8 sps:$4 sm:$0xff]   ;;  %v6270_v38 = vld [vmem:[#allocation4 + $0x84] ss:$8 sps:$4 sm:$0xff]  }
 0x144   :  { %v1731_v49 = vpop.f32.mrf.mxu0  ;;  %2428 = vmatprep.subr.bf16.mxu0 %v6231_v36  ;;  %v6307_v36 = vld [vmem:[#allocation4 + $0x1b0] ss:$8 sps:$4 sm:$0xff]   ;;  %v395_v39 = vrot.slane %v6732_v29, %v6727_v28 }
 0x145   :  { %v1772_v9 = vpop.f32.mrf.mxu1  ;;  %2468 = vmatpush1.bf16.msra.mxu1 %v6274_v43  ;;  %v6268_v49 = vld [vmem:[#allocation4 + $0x80] ss:$8 sps:$4 sm:$0xff]  }
 0x146   :  { %2469 = vmatprep.subr.bf16.mxu1 %v6279_v37  ;;  %v1727_v9 = vadd.f32 %v6714_v31, %v395_v39  ;;  %v6313_v31 = vld [vmem:[#allocation4 + $0x190] ss:$8 sps:$4 sm:$0xff]   ;;  %v2512_v39 = vld [vmem:[#allocation6 + $0x20] sm:$0xff] }
 0x147   :  { %2429 = vmatpush1.bf16.msra.mxu0 %v6229_v8  ;;  %v399_v8 = vrot.slane %v6732_v29, %v6735_v30 }
 0x148   :  { %2430 = vmatprep.subr.bf16.mxu0 %v6234_v52  ;;  %v1768_v20 = vadd.f32 %v6716_v32, %v1727_v9 }
 0x149   :  { %2470 = vmatpush1.bf16.msra.mxu1 %v6277_v45  ;;  %v1729_v52 = vadd.f32 %v6720_v34, %v399_v8  ;;  %v6746_v8 = vsub.s32 2, %v6724_v23 }
 0x14a   :  { %2471 = vmatprep.subr.bf16.mxu1 %v6282_v47 }
 0x14b   :  { %2431 = vmatpush1.bf16.msra.mxu0 %v6232_v21  ;;  %v403_v9 = vrot.slane %v6732_v29, %v6746_v8 }
 0x14c   :  { %2432 = vmatprep.subr.bf16.mxu0 %v6237_v44  ;;  %v1770_v44 = vadd.f32 %v6722_v35, %v1729_v52 }
 0x14d   :  { %2472 = vmatpush1.bf16.msra.mxu1 %v6280_v50 }
 0x14e   :  { %2473 = vmatprep.subr.bf16.mxu1 %v6285_v53 }
 0x14f   :  { %2433 = vmatpush1.bf16.msra.mxu0 %v6235_v40 }
 0x150   :  { %2434 = vmatprep.subr.bf16.mxu0 %v6240_v46  ;;  %v6315_v46 = vld [vmem:[#allocation4 + $0x194] ss:$8 sps:$4 sm:$0xff]  }
 0x151   :  { %2474 = vmatpush1.bf16.msra.mxu1 %v6283_v55  ;;  %v6318_v55 = vld [vmem:[#allocation4 + $0x184] ss:$8 sps:$4 sm:$0xff]  }
 0x152   :  { %2475 = vmatprep.subr.bf16.mxu1 %v6288_v57  ;;  %v6316_v57 = vld [vmem:[#allocation4 + $0x180] ss:$8 sps:$4 sm:$0xff]  }
 0x153   :  { %2435 = vmatpush1.bf16.msra.mxu0 %v6238_v48 }
 0x154   :  { %2436 = vmatprep.subr.bf16.mxu0 %v6243_v51 }
 0x155   :  { %2476 = vmatpush1.bf16.msra.mxu1 %v6286_v59 }
 0x156   :  { %2477 = vmatprep.subr.bf16.mxu1 %v6291_v61 }
 0x157   :  { %2437 = vmatpush1.bf16.msra.mxu0 %v6241_v54 }
 0x158   :  { %2438 = vmatprep.subr.bf16.mxu0 %v6246_v56 }
 0x159   :  { %2478 = vmatpush1.bf16.msra.mxu1 %v6289_v63 }
 0x15a   :  { %2479 = vmatprep.subr.bf16.mxu1 %v6294_v1 }
 0x15b   :  { %2439 = vmatpush1.bf16.msra.mxu0 %v6244_v58 }
 0x15c   :  { %2440 = vmatprep.subr.bf16.mxu0 %v6249_v60 }
 0x15d   :  { %2480 = vmatpush1.bf16.msra.mxu1 %v6292_v3  ;;  %v2539_v3 = vld [vmem:[#allocation6 + $0xf8] sm:$0xff] }
 0x15e   :  { %2481 = vmatprep.subr.bf16.mxu1 %v6297_v5  ;;  %v2538_v5 = vld [vmem:[#allocation6 + $0xf0] sm:$0xff] }
 0x15f   :  { %2441 = vmatpush2.bf16.msra.mxu0 %v6247_v62 }
 0x160   :  { %2442 = vmatprep.subr.bf16.mxu0 %v6252_v0 }
 0x161   :  { %2482 = vmatpush2.bf16.msra.mxu1 %v6295_v7  ;;  %v2537_v7 = vld [vmem:[#allocation6 + $0xe8] sm:$0xff] }
 0x162   :  { %2483 = vmatprep.subr.bf16.mxu1 %v6300_v11  ;;  %v2536_v11 = vld [vmem:[#allocation6 + $0xe0] sm:$0xff] }
 0x163   :  { %2443 = vmatpush2.bf16.msra.mxu0 %v6250_v2 }
 0x164   :  { %2444 = vmatprep.subr.bf16.mxu0 %v6255_v4  ;;  %v2523_v4 = vld [vmem:[#allocation6 + $0x78] sm:$0xff] }
 0x165   :  { %2484 = vmatpush2.bf16.msra.mxu1 %v6298_v13  ;;  %v2535_v13 = vld [vmem:[#allocation6 + $0xd8] sm:$0xff] }
 0x166   :  { %2485 = vmatprep.subr.bf16.mxu1 %v6303_v15  ;;  %v2534_v15 = vld [vmem:[#allocation6 + $0xd0] sm:$0xff] }
 0x167   :  { %2445 = vmatpush2.bf16.msra.mxu0 %v6253_v6  ;;  %v2522_v6 = vld [vmem:[#allocation6 + $0x70] sm:$0xff] }
 0x168   :  { %2446 = vmatprep.subr.bf16.mxu0 %v6258_v10  ;;  %v2521_v10 = vld [vmem:[#allocation6 + $0x68] sm:$0xff] }
 0x169   :  { %2486 = vmatpush2.bf16.msra.mxu1 %v6301_v18  ;;  %v2517_v18 = vld [vmem:[#allocation6 + $0x48] sm:$0xff] }
 0x16a   :  { %2487 = vmatprep.subr.bf16.mxu1 %v6306_v22  ;;  %v2516_v22 = vld [vmem:[#allocation6 + $0x40] sm:$0xff] }
 0x16b   :  { %2447 = vmatpush2.bf16.msra.mxu0 %v6256_v12  ;;  %v2520_v12 = vld [vmem:[#allocation6 + $0x60] sm:$0xff] }
 0x16c   :  { %2448 = vmatprep.subr.bf16.mxu0 %v6261_v14  ;;  %v2519_v14 = vld [vmem:[#allocation6 + $0x58] sm:$0xff] }
 0x16d   :  { %2488 = vmatpush2.bf16.msra.mxu1 %v6304_v25  ;;  %v2515_v25 = vld [vmem:[#allocation6 + $0x38] sm:$0xff] }
 0x16e   :  { %2489 = vmatprep.subr.bf16.mxu1 %v6309_v27  ;;  %v2514_v27 = vld [vmem:[#allocation6 + $0x30] sm:$0xff] }
 0x16f   :  { %2449 = vmatpush2.bf16.msra.mxu0 %v6259_v17  ;;  %v2533_v17 = vld [vmem:[#allocation6 + $0xc8] sm:$0xff] }
 0x170   :  { %2450 = vmatprep.subr.bf16.mxu0 %v6264_v19  ;;  %v2532_v19 = vld [vmem:[#allocation6 + $0xc0] sm:$0xff] }
 0x171   :  { %2490 = vmatpush2.bf16.msra.mxu1 %v6307_v36  ;;  %v2513_v36 = vld [vmem:[#allocation6 + $0x28] sm:$0xff] }
 0x172   :  { %2491 = vmatprep.subr.bf16.mxu1 %v6312_v41 }
 0x173   :  { %2451 = vmatpush2.bf16.msra.mxu0 %v6262_v24  ;;  %v2531_v24 = vld [vmem:[#allocation6 + $0xb8] sm:$0xff] }
 0x174   :  { %2452 = vmatprep.subr.bf16.mxu0 %v6267_v26  ;;  %v2530_v26 = vld [vmem:[#allocation6 + $0xb0] sm:$0xff] }
 0x175   :  { %2492 = vmatpush2.bf16.msra.mxu1 %v6310_v42 }
 0x176   :  { %2493 = vmatprep.subr.bf16.mxu1 %v6315_v46 }
 0x177   :  { %2453 = vmatpush2.bf16.msra.mxu0 %v6265_v33  ;;  %v2529_v33 = vld [vmem:[#allocation6 + $0xa8] sm:$0xff] }
 0x178   :  { %2454 = vmatprep.subr.bf16.mxu0 %v6270_v38  ;;  %v2528_v38 = vld [vmem:[#allocation6 + $0xa0] sm:$0xff] }
 0x179   :  { %2494 = vmatpush2.bf16.msra.mxu1 %v6313_v31 }
 0x17a   :  { %2495 = vmatprep.subr.bf16.mxu1 %v6318_v55  ;;  %v2527_v55 = vld [vmem:[#allocation6 + $0x98] sm:$0xff] }
 0x17b   :  { %2455 = vmatpush2.bf16.msra.mxu0 %v6268_v49  ;;  %v6749_v49 = vsub.s32 3, %v6724_v23 }
 0x17c   :  { %5791 = vmatprep.subr.mxu0 %v2539_v3  ;;  %v2092_v3 = vld [vmem:[%s6873_s5] sm:$0x3] }
 0x17d   :  { %2496 = vmatpush2.bf16.msra.mxu1 %v6316_v57  ;;  %v407_v52 = vrot.slane %v6732_v29, %v6749_v49  ;;  %v2511_v57 = vld [vmem:[#allocation6 + $0x18] sm:$0xff] }
 0x17e   :  { %v1808_v21 = vpop.f32.mrf.mxu0 }
 0x17f   :  { %v1849_v43 = vpop.f32.mrf.mxu1  ;;  %v1809_v37 = vadd.f32 %v1808_v21, %v1768_v20 }
 0x180   :  { %v1810_v40 = vpop.f32.mrf.mxu0 }
 0x181   :  { %v1851_v45 = vpop.f32.mrf.mxu1  ;;  %v1850_v47 = vadd.f32 %v1849_v43, %v1809_v37  ;;  %v1811_v48 = vadd.f32 %v1810_v40, %v1770_v44 }
 0x182   :  { %v1812_v50 = vpop.f32.mrf.mxu0 }
 0x183   :  { %v1853_v34 = vpop.f32.mrf.mxu1  ;;  %v1852_v51 = vadd.f32 %v1851_v45, %v1811_v48  ;;  %v2020_v32 = vmax.f32 %v1850_v47, 0.0 }
 0x184   :  { %v1813_v53 = vpop.f32.mrf.mxu0 }
 0x185   :  { %v1854_v54 = vpop.f32.mrf.mxu1  ;;  %v2021_v56 = vmax.f32 %v1852_v51, 0.0  ;;  %v2024_v58 = vpack.c.bf16 %v2020_v32, %v2020_v32 }
 0x187   :  { %v2025_v35 = vpack.c.bf16 %v2021_v56, %v2021_v56 }
 0x189   :  { %2456 = vmatprep.mubr.bf16.mxu0 %v2025_v35  ;;  %v2526_v35 = vld [vmem:[#allocation6 + $0x90] sm:$0xff] }
 0x18a   :  { %2457 = vmatmul.mubr.bf16.vlgmr.msra.gmra.mxu0 %v2024_v58 }
 0x18b   :  { %5792 = vmatpush3.msra.mxu0 %v2523_v4  ;;  %v2097_v4 = vrot.slane %v2092_v3, %v6727_v28 }
 0x18c   :  { %5793 = vmatprep.subr.mxu0 %v2538_v5  ;;  %v2101_v5 = vrot.slane %v2092_v3, %v6735_v30  ;;  %v6325_v3 = vld [vmem:[#allocation7 + $0xe0] ss:$16 sps:$4 sm:$0xff]  }
 0x18d   :  { %5794 = vmatpush3.msra.mxu0 %v2522_v6 }
 0x18e   :  { %5795 = vmatprep.subr.mxu0 %v2537_v7 }
 0x18f   :  { %5796 = vmatpush3.msra.mxu0 %v2521_v10 }
 0x190   :  { %5797 = vmatprep.subr.mxu0 %v2536_v11 }
 0x191   :  { %5798 = vmatpush3.msra.mxu0 %v2520_v12 }
 0x192   :  { %5799 = vmatprep.subr.mxu0 %v2535_v13 }
 0x193   :  { %5800 = vmatpush3.msra.mxu0 %v2519_v14 }
 0x194   :  { %5801 = vmatprep.subr.mxu0 %v2534_v15 }
 0x195   :  { %5802 = vmatpush3.msra.mxu0 %v2518_v16 }
 0x196   :  { %5803 = vmatprep.subr.mxu0 %v2533_v17 }
 0x197   :  { %5804 = vmatpush3.msra.mxu0 %v2517_v18  ;;  %v6319_v18 = vld [vmem:[%s6876_s8 + $0x10] ss:$8 sps:$4 sm:$0xff]  }
 0x198   :  { %5805 = vmatprep.subr.mxu0 %v2532_v19  ;;  %v6321_v19 = vld [vmem:[%s6876_s8 + $0x14] ss:$8 sps:$4 sm:$0xff]  }
 0x199   :  { %5806 = vmatpush3.msra.mxu0 %v2516_v22  ;;  %v6324_v22 = vld [vmem:[%s6876_s8 + $0x4] ss:$8 sps:$4 sm:$0xff]   ;;  %2684 = vmatprep.subr.bf16.mxu1 %v6321_v19 }
 0x19a   :  { %5807 = vmatprep.subr.mxu0 %v2531_v24  ;;  %v6322_v24 = vld [vmem:[%s6876_s8] ss:$8 sps:$4 sm:$0xff]   ;;  %v6369_v19 = vld [vmem:[#allocation7 + $0x4] ss:$16 sps:$4 sm:$0xff]  }
 0x19b   :  { %5808 = vmatpush3.msra.mxu0 %v2515_v25 }
 0x19c   :  { %5809 = vmatprep.subr.mxu0 %v2530_v26  ;;  %v5465_v26 = vld [vmem:[%s6875_s7] ss:$0 sm:$0xff]  ;;  %s6557_s7 = smov 96  }
 0x19d   :  { %5810 = vmatpush3.msra.mxu0 %v2514_v27 }
 0x19e   :  { %5811 = vmatprep.subr.mxu0 %v2529_v33 }
 0x19f   :  { %5812 = vmatpush3.msra.mxu0 %v2513_v36 }
 0x1a0   :  { %5813 = vmatprep.subr.mxu0 %v2528_v38 }
 0x1a1   :  { %5814 = vmatpush3.msra.mxu0 %v2512_v39 }
 0x1a2   :  { %5815 = vmatprep.subr.mxu0 %v2527_v55  ;;  %v6376_v55 = vld [vmem:[#allocation7 + $0x1e8] ss:$16 sps:$4 sm:$0xff]  }
 0x1a3   :  { %5816 = vmatpush3.msra.mxu0 %v2511_v57  ;;  %v6382_v57 = vld [vmem:[#allocation7 + $0x1c8] ss:$16 sps:$4 sm:$0xff]  }
 0x1a4   :  { %5817 = vmatprep.subr.mxu0 %v2526_v35  ;;  %v6390_v35 = vld [vmem:[#allocation7 + $0x1ac] ss:$16 sps:$4 sm:$0xff]  }
 0x1be   :  { %v1890_v59 = vpop.f32.mrf.mxu0 }
 0x1bf   :  { %v1931_v60 = vpop.f32.mrf.mxu1  ;;  %v1891_v41 = vadd.f32 %v1890_v59, %v403_v9  ;;  %v2510_v59 = vld [vmem:[#allocation6 + $0x10] sm:$0xff]  ;;  %v6556_v9 = vmov 0  }
 0x1c0   :  { %v1892_v61 = vpop.f32.mrf.mxu0  ;;  %5818 = vmatpush3.msra.mxu0 %v2510_v59  ;;  %v6396_v59 = vld [vmem:[#allocation7 + $0x18c] ss:$16 sps:$4 sm:$0xff]  }
 0x1c1   :  { %v1933_v62 = vpop.f32.mrf.mxu1  ;;  %v1893_v20 = vadd.f32 %v1892_v61, %v407_v52  ;;  %v1932_v42 = vadd.f32 %v1931_v60, %v1891_v41  ;;  %v2525_v60 = vld [vmem:[#allocation6 + $0x88] sm:$0xff]  ;;  %v6327_v52 = vld [vmem:[#allocation7 + $0xe4] ss:$16 sps:$4 sm:$0xff]  }
 0x1c2   :  { %v1894_v63 = vpop.f32.mrf.mxu0  ;;  %5819 = vmatprep.subr.mxu0 %v2525_v60  ;;  %v6328_v41 = vld [vmem:[#allocation7 + $0xe8] ss:$16 sps:$4 sm:$0xff]  }
 0x1c3   :  { %v1935_v0 = vpop.f32.mrf.mxu1  ;;  %v1934_v44 = vadd.f32 %v1933_v62, %v1893_v20  ;;  %v2509_v62 = vld [vmem:[#allocation6 + $0x8] sm:$0xff]  ;;  %v2524_v63 = vld [vmem:[#allocation6 + $0x80] sm:$0xff] }
 0x1c4   :  { %v1895_v1 = vpop.f32.mrf.mxu0  ;;  %5820 = vmatpush3.msra.mxu0 %v2509_v62  ;;  %v6330_v20 = vld [vmem:[#allocation7 + $0xec] ss:$16 sps:$4 sm:$0xff]   ;;  %v6394_v60 = vld [vmem:[#allocation7 + $0x188] ss:$16 sps:$4 sm:$0xff]  }
 0x1c5   :  { %v1936_v2 = vpop.f32.mrf.mxu1  ;;  %5821 = vmatprep.subr.mxu0 %v2524_v63  ;;  %v2508_v1 = vld [vmem:[#allocation6] sm:$0xff]  ;;  %v6400_v62 = vld [vmem:[#allocation7 + $0x168] ss:$16 sps:$4 sm:$0xff]   ;;  %v6408_v63 = vld [vmem:[#allocation7 + $0x14c] ss:$16 sps:$4 sm:$0xff]  }
 0x1c6   :  { %5822 = vmatpush3.msra.mxu0 %v2508_v1  ;;  %v2620_v2 = vld [vmem:[%s6869_s1] sm:$0xff] }
 0x1c7   :  { %2622 = vrot.lane.b32.xlu0 %v2620_v2, %s6555_s30  ;;  %3162 = vmatprep.subr.bf16.mxu0 %v6330_v20  ;;  %v6403_v20 = vld [vmem:[#allocation7 + $0x140] ss:$16 sps:$4 sm:$0xff]  }
 0x1fe   :  { %v1972_v21 = vpop.f32.mrf.mxu0 }
 0x1ff   :  { %v2013_v43 = vpop.f32.mrf.mxu1  ;;  %v1973_v37 = vadd.f32 %v1972_v21, %v1932_v42  ;;  %v6336_v42 = vld [vmem:[#allocation7 + $0xcc] ss:$16 sps:$4 sm:$0xff]  }
 0x200   :  { %v1974_v40 = vpop.f32.mrf.mxu0 }
 0x201   :  { %v2015_v45 = vpop.f32.mrf.mxu1  ;;  %v2014_v46 = vadd.f32 %v2013_v43, %v1973_v37  ;;  %v1975_v47 = vadd.f32 %v1974_v40, %v1934_v44  ;;  %v6334_v43 = vld [vmem:[#allocation7 + $0xc8] ss:$16 sps:$4 sm:$0xff]   ;;  %v6342_v37 = vld [vmem:[#allocation7 + $0xac] ss:$16 sps:$4 sm:$0xff]  }
 0x202   :  { %v1976_v48 = vpop.f32.mrf.mxu0 }
 0x203   :  { %v2017_v31 = vpop.f32.mrf.mxu1  ;;  %v2016_v50 = vadd.f32 %v2015_v45, %v1975_v47  ;;  %v2022_v34 = vmax.f32 %v2014_v46, 0.0  ;;  %v6340_v45 = vld [vmem:[#allocation7 + $0xa8] ss:$16 sps:$4 sm:$0xff]   ;;  %v6348_v46 = vld [vmem:[#allocation7 + $0x8c] ss:$16 sps:$4 sm:$0xff]  }
 0x204   :  { %v1977_v51 = vpop.f32.mrf.mxu0  ;;  %v6346_v47 = vld [vmem:[#allocation7 + $0x88] ss:$16 sps:$4 sm:$0xff]   ;;  %v6354_v48 = vld [vmem:[#allocation7 + $0x6c] ss:$16 sps:$4 sm:$0xff]  }
 0x205   :  { %v2018_v32 = vpop.f32.mrf.mxu1  ;;  %v2023_v53 = vmax.f32 %v2016_v50, 0.0  ;;  %v2026_v29 = vpack.c.bf16 %v2022_v34, %v2022_v34  ;;  %v6352_v31 = vld [vmem:[#allocation7 + $0x68] ss:$16 sps:$4 sm:$0xff]   ;;  %v6360_v50 = vld [vmem:[#allocation7 + $0x4c] ss:$16 sps:$4 sm:$0xff]  }
 0x206   :  { %v6358_v34 = vld [vmem:[#allocation7 + $0x48] ss:$16 sps:$4 sm:$0xff]   ;;  %v6366_v51 = vld [vmem:[#allocation7 + $0x2c] ss:$16 sps:$4 sm:$0xff]  }
 0x207   :  { %v2027_v54 = vpack.c.bf16 %v2023_v53, %v2023_v53  ;;  %v6364_v32 = vld [vmem:[#allocation7 + $0x28] ss:$16 sps:$4 sm:$0xff]   ;;  %v6372_v53 = vld [vmem:[#allocation7 + $0xc] ss:$16 sps:$4 sm:$0xff]  }
 0x209   :  { %2497 = vmatprep.mubr.bf16.mxu1 %v2027_v54  ;;  %v6370_v54 = vld [vmem:[#allocation7 + $0x8] ss:$16 sps:$4 sm:$0xff]  }
 0x20a   :  { %2498 = vmatmul.mubr.bf16.vlgmr.msra.gmra.mxu1 %v2026_v29  ;;  %v6378_v29 = vld [vmem:[#allocation7 + $0x1ec] ss:$16 sps:$4 sm:$0xff]  }
 0x20b   :  { %2685 = vmatpush1.bf16.msra.mxu1 %v6319_v18  ;;  %2704 = vmatprep.mubr.bf16.mxu1 %v6556_v9  ;;  %v6361_v18 = vld [vmem:[#allocation7 + $0x20] ss:$16 sps:$4 sm:$0xff]   ;;  %v6399_v9 = vld [vmem:[#allocation7 + $0x164] ss:$16 sps:$4 sm:$0xff]  }
 0x20c   :  { %2686 = vmatprep.subr.bf16.mxu1 %v6324_v22  ;;  %v6367_v22 = vld [vmem:[#allocation7] ss:$16 sps:$4 sm:$0xff]  }
 0x20f   :  { %2687 = vmatpush1.bf16.msra.mxu1 %v6322_v24  ;;  %v6375_v24 = vld [vmem:[#allocation7 + $0x1e4] ss:$16 sps:$4 sm:$0xff]  }
 0x210   :  { %3121 = vmatprep.subr.bf16.mxu1 %v6327_v52  ;;  %v6397_v52 = vld [vmem:[#allocation7 + $0x160] ss:$16 sps:$4 sm:$0xff]  }
 0x239   :  { %v2623_v21 = vpop.permute.xlu0 %2622 }
 0x24a   :  { %v2458_v56 = vpop.f32.mrf.mxu0 }
 0x24b   :  { %v2459_v6 = vadd.f32 %v2458_v56, %v2097_v4  ;;  %v6384_v56 = vld [vmem:[#allocation7 + $0x1cc] ss:$16 sps:$4 sm:$0xff]  }
 0x24c   :  { %v2460_v58 = vpop.f32.mrf.mxu0 }
 0x24d   :  { %v2461_v10 = vadd.f32 %v2460_v58, %v2101_v5  ;;  %v6388_v58 = vld [vmem:[#allocation7 + $0x1a8] ss:$16 sps:$4 sm:$0xff]   ;;  %v6333_v5 = vld [vmem:[#allocation7 + $0xc4] ss:$16 sps:$4 sm:$0xff]  }
 0x24e   :  { %v2462_v61 = vpop.f32.mrf.mxu0 }
 0x24f   :  { %v6402_v61 = vld [vmem:[#allocation7 + $0x16c] ss:$16 sps:$4 sm:$0xff]  }
 0x250   :  { %v2463_v0 = vpop.f32.mrf.mxu0 }
 0x251   :  { %v6406_v0 = vld [vmem:[#allocation7 + $0x148] ss:$16 sps:$4 sm:$0xff]  }
 0x2ca   :  { %v2499_v7 = vpop.f32.mrf.mxu1 }
 0x2cb   :  { %v2500_v11 = vadd.f32 %v2499_v7, %v2459_v6  ;;  %v6331_v6 = vld [vmem:[#allocation7 + $0xc0] ss:$16 sps:$4 sm:$0xff]   ;;  %v6339_v7 = vld [vmem:[#allocation7 + $0xa4] ss:$16 sps:$4 sm:$0xff]  }
 0x2cc   :  { %v2501_v12 = vpop.f32.mrf.mxu1 }
 0x2cd   :  { %v2502_v13 = vadd.f32 %v2501_v12, %v2461_v10  ;;  %v2506_v16 = vmax.f32 %v2500_v11, 0.0  ;;  %v6337_v10 = vld [vmem:[#allocation7 + $0xa0] ss:$16 sps:$4 sm:$0xff]   ;;  %v6345_v11 = vld [vmem:[#allocation7 + $0x84] ss:$16 sps:$4 sm:$0xff]  }
 0x2ce   :  { %v2503_v14 = vpop.f32.mrf.mxu1  ;;  %v6343_v12 = vld [vmem:[#allocation7 + $0x80] ss:$16 sps:$4 sm:$0xff]  }
 0x2cf   :  { %v2507_v15 = vmax.f32 %v2502_v13, 0.0  ;;  %v6351_v13 = vld [vmem:[#allocation7 + $0x64] ss:$16 sps:$4 sm:$0xff]   ;;  %v6349_v14 = vld [vmem:[#allocation7 + $0x60] ss:$16 sps:$4 sm:$0xff]  }
 0x2d0   :  { %v2504_v17 = vpop.f32.mrf.mxu1 }
 0x2d1   :  { %2611 = vmatprep.mubr.f32.mxu0 %v2507_v15  ;;  %v6357_v15 = vld [vmem:[#allocation7 + $0x44] ss:$16 sps:$4 sm:$0xff]  }
 0x2d2   :  { %2612 = vmatmul.mubr.f32.vlgmr.msra.gmra.mxu0 %v2506_v16  ;;  %v6355_v16 = vld [vmem:[#allocation7 + $0x40] ss:$16 sps:$4 sm:$0xff]   ;;  %v6363_v17 = vld [vmem:[#allocation7 + $0x24] ss:$16 sps:$4 sm:$0xff]  }
 0x2d3   :  { %3163 = vmatpush1.bf16.msra.mxu0 %v6328_v41  ;;  %v6405_v41 = vld [vmem:[#allocation7 + $0x144] ss:$16 sps:$4 sm:$0xff]  }
 0x2d4   :  { %3164 = vmatprep.subr.bf16.mxu0 %v6336_v42  ;;  %v6411_v42 = vld [vmem:[#allocation7 + $0x124] ss:$16 sps:$4 sm:$0xff]  }
 0x2d7   :  { %3165 = vmatpush1.bf16.msra.mxu0 %v6334_v43  ;;  %v6409_v43 = vld [vmem:[#allocation7 + $0x120] ss:$16 sps:$4 sm:$0xff]  }
 0x2d8   :  { %3166 = vmatprep.subr.bf16.mxu0 %v6342_v37  ;;  %v6417_v37 = vld [vmem:[#allocation7 + $0x104] ss:$16 sps:$4 sm:$0xff]  }
 0x2db   :  { %3167 = vmatpush1.bf16.msra.mxu0 %v6340_v45  ;;  %v6415_v45 = vld [vmem:[#allocation7 + $0x100] ss:$16 sps:$4 sm:$0xff]  }
 0x2dc   :  { %3168 = vmatprep.subr.bf16.mxu0 %v6348_v46  ;;  %v6418_v46 = vld [vmem:[#allocation7 + $0x108] ss:$16 sps:$4 sm:$0xff]  }
 0x2df   :  { %3169 = vmatpush1.bf16.msra.mxu0 %v6346_v47  ;;  %v3267_v47 = vld [vmem:[#allocation9 + $0x1c0] sm:$0xff] }
 0x2e0   :  { %3170 = vmatprep.subr.bf16.mxu0 %v6354_v48  ;;  %v3271_v48 = vld [vmem:[#allocation9 + $0x1e0] sm:$0xff] }
 0x2e3   :  { %3171 = vmatpush1.bf16.msra.mxu0 %v6352_v31  ;;  %v3395_v31 = vld [vmem:[#allocation9 + $0x5c0] sm:$0xff] }
 0x2e4   :  { %3172 = vmatprep.subr.bf16.mxu0 %v6360_v50  ;;  %v5591_v50 = vcombine.low %v3267_v47, %v3271_v48 }
 0x2e7   :  { %3173 = vmatpush1.bf16.msra.mxu0 %v6358_v34  ;;  %v5592_v34 = vcombine.high %v3267_v47, %v3271_v48  ;;  %v3347_v47 = vld [vmem:[#allocation9 + $0x440] sm:$0xff] }
 0x2e8   :  { %3174 = vmatprep.subr.bf16.mxu0 %v6366_v51  ;;  %v3399_v51 = vld [vmem:[#allocation9 + $0x5e0] sm:$0xff] }
 0x2e9   :  { %v3351_v48 = vld [vmem:[#allocation9 + $0x460] sm:$0xff] }
 0x2eb   :  { %3175 = vmatpush1.bf16.msra.mxu0 %v6364_v32  ;;  %v5719_v32 = vcombine.low %v3395_v31, %v3399_v51 }
 0x2ec   :  { %3176 = vmatprep.subr.bf16.mxu0 %v6372_v53  ;;  %v5720_v53 = vcombine.high %v3395_v31, %v3399_v51  ;;  %v5672_v51 = vcombine.high %v3347_v47, %v3351_v48 }
 0x2ef   :  { %3177 = vmatpush1.bf16.msra.mxu0 %v6370_v54  ;;  %v2636_v54 = vld [vmem:[%s6877_s9] sm:$0x3] }
 0x2f0   :  { %3178 = vmatprep.subr.bf16.mxu0 %v6378_v29  ;;  %v2641_v29 = vrot.slane %v2636_v54, %v6727_v28 }
 0x2f3   :  { %3179 = vmatpush2.bf16.msra.mxu0 %v6376_v55  ;;  %v2645_v55 = vrot.slane %v2636_v54, %v6735_v30  ;;  %v3339_v54 = vld [vmem:[#allocation9 + $0x400] sm:$0xff] }
 0x2f4   :  { %3180 = vmatprep.subr.bf16.mxu0 %v6384_v56 }
 0x2f7   :  { %3181 = vmatpush2.bf16.msra.mxu0 %v6382_v57 }
 0x2f8   :  { %3182 = vmatprep.subr.bf16.mxu0 %v6390_v35 }
 0x2fb   :  { %3183 = vmatpush2.bf16.msra.mxu0 %v6388_v58  ;;  %v3259_v58 = vld [vmem:[#allocation9 + $0x180] sm:$0xff] }
 0x2fc   :  { %3184 = vmatprep.subr.bf16.mxu0 %v6396_v59 }
 0x2ff   :  { %3185 = vmatpush2.bf16.msra.mxu0 %v6394_v60  ;;  %v3263_v60 = vld [vmem:[#allocation9 + $0x1a0] sm:$0xff] }
 0x300   :  { %3186 = vmatprep.subr.bf16.mxu0 %v6402_v61  ;;  %v3387_v61 = vld [vmem:[#allocation9 + $0x580] sm:$0xff] }
 0x303   :  { %3187 = vmatpush2.bf16.msra.mxu0 %v6400_v62  ;;  %v3391_v62 = vld [vmem:[#allocation9 + $0x5a0] sm:$0xff] }
 0x304   :  { %3188 = vmatprep.subr.bf16.mxu0 %v6408_v63 }
 0x307   :  { %3189 = vmatpush2.bf16.msra.mxu0 %v6406_v0 }
 0x392   :  { %v5823_v25 = vpop.f32.mrf.mxu0 }
 0x394   :  { %v5824_v27 = vpop.f32.mrf.mxu0 }
 0x395   :  { %v5825_v33 = vadd.f32 %v5824_v27, %v5823_v25  ;;  %v6373_v25 = vld [vmem:[#allocation7 + $0x1e0] ss:$16 sps:$4 sm:$0xff]  }
 0x396   :  { %v6379_v27 = vld [vmem:[#allocation7 + $0x1c0] ss:$16 sps:$4 sm:$0xff]  }
 0x397   :  { %v6779_v36 = vadd.f32 %v5825_v33, %v5465_v26  ;;  %v6381_v26 = vld [vmem:[#allocation7 + $0x1c4] ss:$16 sps:$4 sm:$0xff]  }
 0x398   :  { %v6387_v33 = vld [vmem:[#allocation7 + $0x1a4] ss:$16 sps:$4 sm:$0xff]  }
 0x399   :  { %v2617_v38 = vmul.f32 0.5, %v6779_v36  ;;  %5133 = vst [vmem:[%s6883_s15] sm:$0xff] %v6779_v36 }
 0x39b   :  { %v2618_v39 = vmul.f32 1.442695, %v2617_v38  ;;  %v6393_v38 = vld [vmem:[#allocation7 + $0x184] ss:$16 sps:$4 sm:$0xff]  }
 0x39d   :  { %6421 = vpow2.f32 %v2618_v39  ;;  %v6391_v39 = vld [vmem:[#allocation7 + $0x180] ss:$16 sps:$4 sm:$0xff]  }
 0x3aa   :  { %v6422_v44 = vpop.eup %6421 }
 0x3ab   :  { %v2625_v40 = vmul.f32 %v6422_v44, %v2623_v21  ;;  %v6414_v21 = vld [vmem:[#allocation7 + $0x12c] ss:$16 sps:$4 sm:$0xff]   ;;  %v6412_v44 = vld [vmem:[#allocation7 + $0x128] ss:$16 sps:$4 sm:$0xff]  }
 0x3ac   :  { %3190 = vmatprep.subr.bf16.mxu0 %v6414_v21  ;;  %v3359_v21 = vld [vmem:[#allocation9 + $0x4a0] sm:$0xff] }
 0x3ad   :  { %2627 = vrot.lane.b32.xlu0 %v2625_v40, %s6557_s7  ;;  %3191 = vmatpush2.bf16.msra.mxu0 %v6412_v44  ;;  %v6420_v40 = vld [vmem:[#allocation7 + $0x10c] ss:$16 sps:$4 sm:$0xff]  }
 0x3ae   :  { %3192 = vmatprep.subr.bf16.mxu0 %v6420_v40 }
 0x3b1   :  { %3193 = vmatpush2.bf16.msra.mxu0 %v6418_v46  ;;  %v3223_v46 = vld [vmem:[#allocation9 + $0x60] sm:$0xff] }
 0x3b2   :  { %4830 = vmatprep.subr.bf16.mxu0 %v5720_v53  ;;  %v3215_v53 = vld [vmem:[#allocation9 + $0x20] sm:$0xff] }
 0x41f   :  { %v2628_v1 = vpop.permute.xlu0 %2627 }
 0x420   :  { %v2630_v2 = vadd.f32 %v2628_v1, %v6779_v36  ;;  %v6385_v36 = vld [vmem:[#allocation7 + $0x1a0] ss:$16 sps:$4 sm:$0xff]  }
 0x422   :  { %v2631_v4 = vpack.c.bf16 %v2630_v2, %v2630_v2 }
 0x424   :  { %5470 = vmatmul.mubr.msk.bf16.vlgmr.msra.gmra.mxu1 %vm2668_vm0, %v2631_v4  ;;  %v5712_v4 = vcombine.high %v3387_v61, %v3391_v62 }
 0x425   :  { %3122 = vmatpush1.bf16.msra.mxu1 %v6325_v3  ;;  %v5584_v3 = vcombine.high %v3259_v58, %v3263_v60 }
 0x426   :  { %3123 = vmatprep.subr.bf16.mxu1 %v6333_v5  ;;  %v3251_v5 = vld [vmem:[#allocation9 + $0x140] sm:$0xff] }
 0x429   :  { %3124 = vmatpush1.bf16.msra.mxu1 %v6331_v6  ;;  %v3255_v6 = vld [vmem:[#allocation9 + $0x160] sm:$0xff] }
 0x42a   :  { %3125 = vmatprep.subr.bf16.mxu1 %v6339_v7  ;;  %v3379_v7 = vld [vmem:[#allocation9 + $0x540] sm:$0xff] }
 0x42d   :  { %3126 = vmatpush1.bf16.msra.mxu1 %v6337_v10  ;;  %v3383_v10 = vld [vmem:[#allocation9 + $0x560] sm:$0xff] }
 0x42e   :  { %3127 = vmatprep.subr.bf16.mxu1 %v6345_v11  ;;  %v5583_v11 = vcombine.low %v3259_v58, %v3263_v60  ;;  %v3331_v58 = vld [vmem:[#allocation9 + $0x3c0] sm:$0xff] }
 0x42f   :  { %v3459_v60 = vld [vmem:[#allocation9 + $0x7c0] sm:$0xff] }
 0x431   :  { %3128 = vmatpush1.bf16.msra.mxu1 %v6343_v12  ;;  %v5711_v12 = vcombine.low %v3387_v61, %v3391_v62  ;;  %v3463_v61 = vld [vmem:[#allocation9 + $0x7e0] sm:$0xff] }
 0x432   :  { %3129 = vmatprep.subr.bf16.mxu1 %v6351_v13  ;;  %v5576_v13 = vcombine.high %v3251_v5, %v3255_v6 }
 0x435   :  { %3130 = vmatpush1.bf16.msra.mxu1 %v6349_v14  ;;  %v5704_v14 = vcombine.high %v3379_v7, %v3383_v10 }
 0x436   :  { %3131 = vmatprep.subr.bf16.mxu1 %v6357_v15  ;;  %v3243_v15 = vld [vmem:[#allocation9 + $0x100] sm:$0xff] }
 0x439   :  { %3132 = vmatpush1.bf16.msra.mxu1 %v6355_v16  ;;  %v3247_v16 = vld [vmem:[#allocation9 + $0x120] sm:$0xff] }
 0x43a   :  { %3133 = vmatprep.subr.bf16.mxu1 %v6363_v17  ;;  %v3371_v17 = vld [vmem:[#allocation9 + $0x500] sm:$0xff] }
 0x43d   :  { %3134 = vmatpush1.bf16.msra.mxu1 %v6361_v18  ;;  %v3375_v18 = vld [vmem:[#allocation9 + $0x520] sm:$0xff] }
 0x43e   :  { %3135 = vmatprep.subr.bf16.mxu1 %v6369_v19  ;;  %v5575_v19 = vcombine.low %v3251_v5, %v3255_v6  ;;  %v3455_v5 = vld [vmem:[#allocation9 + $0x7a0] sm:$0xff] }
 0x441   :  { %3136 = vmatpush1.bf16.msra.mxu1 %v6367_v22  ;;  %v5703_v22 = vcombine.low %v3379_v7, %v3383_v10  ;;  %v5783_v7 = vcombine.low %v3459_v60, %v3463_v61 }
 0x442   :  { %3137 = vmatprep.subr.bf16.mxu1 %v6375_v24  ;;  %v5568_v24 = vcombine.high %v3243_v15, %v3247_v16 }
 0x445   :  { %3138 = vmatpush2.bf16.msra.mxu1 %v6373_v25  ;;  %v5696_v25 = vcombine.high %v3371_v17, %v3375_v18 }
 0x446   :  { %3139 = vmatprep.subr.bf16.mxu1 %v6381_v26  ;;  %v3235_v26 = vld [vmem:[#allocation9 + $0xc0] sm:$0xff] }
 0x449   :  { %3140 = vmatpush2.bf16.msra.mxu1 %v6379_v27  ;;  %v3239_v27 = vld [vmem:[#allocation9 + $0xe0] sm:$0xff] }
 0x44a   :  { %3141 = vmatprep.subr.bf16.mxu1 %v6387_v33  ;;  %v3363_v33 = vld [vmem:[#allocation9 + $0x4c0] sm:$0xff] }
 0x44d   :  { %3142 = vmatpush2.bf16.msra.mxu1 %v6385_v36  ;;  %v3367_v36 = vld [vmem:[#allocation9 + $0x4e0] sm:$0xff] }
 0x44e   :  { %3143 = vmatprep.subr.bf16.mxu1 %v6393_v38  ;;  %v5567_v38 = vcombine.low %v3243_v15, %v3247_v16  ;;  %v5687_v44 = vcombine.low %v3363_v33, %v3367_v36  ;;  %v3447_v15 = vld [vmem:[#allocation9 + $0x760] sm:$0xff] }
 0x451   :  { %3144 = vmatpush2.bf16.msra.mxu1 %v6391_v39  ;;  %v5695_v39 = vcombine.low %v3371_v17, %v3375_v18 }
 0x452   :  { %3145 = vmatprep.subr.bf16.mxu1 %v6399_v9  ;;  %v5560_v9 = vcombine.high %v3235_v26, %v3239_v27 }
 0x455   :  { %3146 = vmatpush2.bf16.msra.mxu1 %v6397_v52  ;;  %v5688_v52 = vcombine.high %v3363_v33, %v3367_v36 }
 0x456   :  { %3147 = vmatprep.subr.bf16.mxu1 %v6405_v41  ;;  %v3227_v41 = vld [vmem:[#allocation9 + $0x80] sm:$0xff] }
 0x459   :  { %3148 = vmatpush2.bf16.msra.mxu1 %v6403_v20  ;;  %v3231_v20 = vld [vmem:[#allocation9 + $0xa0] sm:$0xff] }
 0x45a   :  { %3149 = vmatprep.subr.bf16.mxu1 %v6411_v42  ;;  %v3355_v42 = vld [vmem:[#allocation9 + $0x480] sm:$0xff]  ;;  %v5551_v31 = vcombine.low %v3227_v41, %v3231_v20 }
 0x45b   :  { %v5680_v40 = vcombine.high %v3355_v42, %v3359_v21 }
 0x45d   :  { %3150 = vmatpush2.bf16.msra.mxu1 %v6409_v43  ;;  %v5559_v43 = vcombine.low %v3235_v26, %v3239_v27  ;;  %v3439_v26 = vld [vmem:[#allocation9 + $0x720] sm:$0xff] }
 0x45e   :  { %3151 = vmatprep.subr.bf16.mxu1 %v6417_v37  ;;  %v5552_v37 = vcombine.high %v3227_v41, %v3231_v20  ;;  %v3431_v41 = vld [vmem:[#allocation9 + $0x6e0] sm:$0xff] }
 0x461   :  { %3152 = vmatpush2.bf16.msra.mxu1 %v6415_v45  ;;  %v3219_v45 = vld [vmem:[#allocation9 + $0x40] sm:$0xff] }
 0x462   :  { %4789 = vmatprep.subr.bf16.mxu1 %v5592_v34  ;;  %v5544_v34 = vcombine.high %v3219_v45, %v3223_v46 }
 0x4e4   :  { %v2706_v56 = vpop.f32.mrf.mxu1 }
 0x4e5   :  { %v2707_v57 = vadd.f32 %v2706_v56, %v2641_v29  ;;  %v3343_v29 = vld [vmem:[#allocation9 + $0x420] sm:$0xff]  ;;  %v5671_v56 = vcombine.low %v3347_v47, %v3351_v48 }
 0x4e6   :  { %v2708_v35 = vpop.f32.mrf.mxu1 }
 0x4e7   :  { %v2709_v59 = vadd.f32 %v2708_v35, %v2645_v55  ;;  %v2713_v1 = vpack.c.bf16 %v2707_v57, %v2707_v57  ;;  %v5543_v55 = vcombine.low %v3219_v45, %v3223_v46  ;;  %v5664_v35 = vcombine.high %v3339_v54, %v3343_v29  ;;  %v3423_v45 = vld [vmem:[#allocation9 + $0x6a0] sm:$0xff] }
 0x4e8   :  { %v2710_v63 = vpop.f32.mrf.mxu1 }
 0x4e9   :  { %v2714_v0 = vpack.c.bf16 %v2709_v59, %v2709_v59  ;;  %v3335_v59 = vld [vmem:[#allocation9 + $0x3e0] sm:$0xff]  ;;  %v5663_v63 = vcombine.low %v3339_v54, %v3343_v29 }
 0x4ea   :  { %v2711_v2 = vpop.f32.mrf.mxu1  ;;  %v5655_v6 = vcombine.low %v3331_v58, %v3335_v59  ;;  %v3415_v29 = vld [vmem:[#allocation9 + $0x660] sm:$0xff] }
 0x4eb   :  { %3153 = vmatprep.mubr.bf16.mxu1 %v2714_v0  ;;  %3194 = vmatprep.mubr.bf16.mxu0 %v2714_v0  ;;  %v5656_v0 = vcombine.high %v3331_v58, %v3335_v59  ;;  %v3323_v2 = vld [vmem:[#allocation9 + $0x380] sm:$0xff] }
 0x4ec   :  { %3154 = vmatmul.mubr.bf16.vlgmr.msra.gmra.mxu1 %v2713_v1  ;;  %3195 = vmatmul.mubr.bf16.vlgmr.msra.gmra.mxu0 %v2713_v1  ;;  %v5784_v1 = vcombine.high %v3459_v60, %v3463_v61  ;;  %v3279_v58 = vld [vmem:[#allocation9 + $0x220] sm:$0xff] }
 0x4ed   :  { %4790 = vmatpush1.bf16.msra.mxu1 %v5591_v50  ;;  %4831 = vmatpush1.bf16.msra.mxu0 %v5719_v32  ;;  %v5679_v50 = vcombine.low %v3355_v42, %v3359_v21  ;;  %v3211_v32 = vld [vmem:[#allocation9] sm:$0xff] }
 0x4ee   :  { %4791 = vmatprep.subr.bf16.mxu1 %v5584_v3  ;;  %4832 = vmatprep.subr.bf16.mxu0 %v5712_v4  ;;  %v5536_v57 = vcombine.high %v3211_v32, %v3215_v53  ;;  %v5535_v62 = vcombine.low %v3211_v32, %v3215_v53  ;;  %v3327_v3 = vld [vmem:[#allocation9 + $0x3a0] sm:$0xff] }
 0x4ef   :  { %v3451_v4 = vld [vmem:[#allocation9 + $0x780] sm:$0xff]  ;;  %v5648_v10 = vcombine.high %v3323_v2, %v3327_v3  ;;  %v5647_v16 = vcombine.low %v3323_v2, %v3327_v3  ;;  %v3272_v2 = vld [vmem:[#allocation9 + $0x1e8] sm:$0xff] }
 0x4f0   :  { %v5775_v17 = vcombine.low %v3451_v4, %v3455_v5  ;;  %v3287_v32 = vld [vmem:[#allocation9 + $0x260] sm:$0xff]  ;;  %v3396_v3 = vld [vmem:[#allocation9 + $0x5c8] sm:$0xff] }
 0x4f1   :  { %4792 = vmatpush1.bf16.msra.mxu1 %v5583_v11  ;;  %4833 = vmatpush1.bf16.msra.mxu0 %v5711_v12  ;;  %v5776_v11 = vcombine.high %v3451_v4, %v3455_v5  ;;  %v3315_v12 = vld [vmem:[#allocation9 + $0x340] sm:$0xff]  ;;  %v3400_v5 = vld [vmem:[#allocation9 + $0x5e8] sm:$0xff] }
 0x4f2   :  { %4793 = vmatprep.subr.bf16.mxu1 %v5576_v13  ;;  %4834 = vmatprep.subr.bf16.mxu0 %v5704_v14  ;;  %v3319_v13 = vld [vmem:[#allocation9 + $0x360] sm:$0xff] }
 0x4f3   :  { %v3443_v14 = vld [vmem:[#allocation9 + $0x740] sm:$0xff]  ;;  %v5640_v18 = vcombine.high %v3315_v12, %v3319_v13  ;;  %v5639_v27 = vcombine.low %v3315_v12, %v3319_v13 }
 0x4f4   :  { %v5767_v33 = vcombine.low %v3443_v14, %v3447_v15  ;;  %v3411_v53 = vld [vmem:[#allocation9 + $0x640] sm:$0xff] }
 0x4f5   :  { %4794 = vmatpush1.bf16.msra.mxu1 %v5575_v19  ;;  %4835 = vmatpush1.bf16.msra.mxu0 %v5703_v22  ;;  %v5768_v19 = vcombine.high %v3443_v14, %v3447_v15  ;;  %v3307_v22 = vld [vmem:[#allocation9 + $0x300] sm:$0xff] }
 0x4f6   :  { %4795 = vmatprep.subr.bf16.mxu1 %v5568_v24  ;;  %4836 = vmatprep.subr.bf16.mxu0 %v5696_v25  ;;  %v3311_v24 = vld [vmem:[#allocation9 + $0x320] sm:$0xff] }
 0x4f7   :  { %v3435_v25 = vld [vmem:[#allocation9 + $0x700] sm:$0xff]  ;;  %v5632_v36 = vcombine.high %v3307_v22, %v3311_v24  ;;  %v5631_v20 = vcombine.low %v3307_v22, %v3311_v24 }
 0x4f8   :  { %v5759_v42 = vcombine.low %v3435_v25, %v3439_v26  ;;  %v3403_v59 = vld [vmem:[#allocation9 + $0x600] sm:$0xff] }
 0x4f9   :  { %4796 = vmatpush1.bf16.msra.mxu1 %v5567_v38  ;;  %4837 = vmatpush1.bf16.msra.mxu0 %v5695_v39  ;;  %v5760_v38 = vcombine.high %v3435_v25, %v3439_v26  ;;  %v3299_v39 = vld [vmem:[#allocation9 + $0x2c0] sm:$0xff] }
 0x4fa   :  { %4797 = vmatprep.subr.bf16.mxu1 %v5560_v9  ;;  %4838 = vmatprep.subr.bf16.mxu0 %v5688_v52  ;;  %v3303_v9 = vld [vmem:[#allocation9 + $0x2e0] sm:$0xff] }
 0x4fb   :  { %v3427_v52 = vld [vmem:[#allocation9 + $0x6c0] sm:$0xff]  ;;  %v5624_v21 = vcombine.high %v3299_v39, %v3303_v9  ;;  %v5623_v46 = vcombine.low %v3299_v39, %v3303_v9 }
 0x4fc   :  { %v5751_v47 = vcombine.low %v3427_v52, %v3431_v41  ;;  %v3407_v61 = vld [vmem:[#allocation9 + $0x620] sm:$0xff] }
 0x4fd   :  { %4798 = vmatpush1.bf16.msra.mxu1 %v5559_v43  ;;  %4839 = vmatpush1.bf16.msra.mxu0 %v5687_v44  ;;  %v5752_v43 = vcombine.high %v3427_v52, %v3431_v41  ;;  %v3291_v44 = vld [vmem:[#allocation9 + $0x280] sm:$0xff]  ;;  %v3260_v52 = vld [vmem:[#allocation9 + $0x188] sm:$0xff] }
 0x4fe   :  { %4799 = vmatprep.subr.bf16.mxu1 %v5552_v37  ;;  %4840 = vmatprep.subr.bf16.mxu0 %v5680_v40  ;;  %v3295_v37 = vld [vmem:[#allocation9 + $0x2a0] sm:$0xff] }
 0x4ff   :  { %v3419_v40 = vld [vmem:[#allocation9 + $0x680] sm:$0xff]  ;;  %v5616_v48 = vcombine.high %v3291_v44, %v3295_v37 }
 0x501   :  { %4800 = vmatpush1.bf16.msra.mxu1 %v5551_v31  ;;  %4841 = vmatpush1.bf16.msra.mxu0 %v5679_v50  ;;  %v5744_v31 = vcombine.high %v3419_v40, %v3423_v45  ;;  %v5615_v50 = vcombine.low %v3291_v44, %v3295_v37 }
 0x502   :  { %4801 = vmatprep.subr.bf16.mxu1 %v5544_v34  ;;  %4842 = vmatprep.subr.bf16.mxu0 %v5672_v51  ;;  %v5743_v34 = vcombine.low %v3419_v40, %v3423_v45  ;;  %v3283_v51 = vld [vmem:[#allocation9 + $0x240] sm:$0xff] }
 0x503   :  { %v5608_v54 = vcombine.high %v3283_v51, %v3287_v32 }
 0x505   :  { %4802 = vmatpush1.bf16.msra.mxu1 %v5543_v55  ;;  %4843 = vmatpush1.bf16.msra.mxu0 %v5671_v56  ;;  %v5607_v55 = vcombine.low %v3283_v51, %v3287_v32  ;;  %v5735_v56 = vcombine.low %v3411_v53, %v3415_v29 }
 0x506   :  { %4803 = vmatprep.subr.bf16.mxu1 %v5536_v57  ;;  %4844 = vmatprep.subr.bf16.mxu0 %v5664_v35  ;;  %v5736_v57 = vcombine.high %v3411_v53, %v3415_v29  ;;  %v3275_v35 = vld [vmem:[#allocation9 + $0x200] sm:$0xff]  ;;  %v3244_v29 = vld [vmem:[#allocation9 + $0x108] sm:$0xff] }
 0x507   :  { %v5600_v60 = vcombine.high %v3275_v35, %v3279_v58 }
 0x509   :  { %4804 = vmatpush1.bf16.msra.mxu1 %v5535_v62  ;;  %4845 = vmatpush1.bf16.msra.mxu0 %v5663_v63  ;;  %v5599_v62 = vcombine.low %v3275_v35, %v3279_v58  ;;  %v5727_v63 = vcombine.low %v3403_v59, %v3407_v61 }
 0x50a   :  { %4805 = vmatprep.subr.bf16.mxu1 %v5656_v0  ;;  %4846 = vmatprep.subr.bf16.mxu0 %v5784_v1  ;;  %v5728_v0 = vcombine.high %v3403_v59, %v3407_v61  ;;  %v3268_v1 = vld [vmem:[#allocation9 + $0x1c8] sm:$0xff] }
 0x50b   :  { %v5594_v4 = vcombine.high %v3268_v1, %v3272_v2  ;;  %v3236_v61 = vld [vmem:[#allocation9 + $0xc8] sm:$0xff] }
 0x50d   :  { %4806 = vmatpush2.bf16.msra.mxu1 %v5655_v6  ;;  %4847 = vmatpush2.bf16.msra.mxu0 %v5783_v7  ;;  %v5593_v6 = vcombine.low %v3268_v1, %v3272_v2  ;;  %v5721_v7 = vcombine.low %v3396_v3, %v3400_v5 }
 0x50e   :  { %4807 = vmatprep.subr.bf16.mxu1 %v5648_v10  ;;  %4848 = vmatprep.subr.bf16.mxu0 %v5776_v11  ;;  %v5722_v10 = vcombine.high %v3396_v3, %v3400_v5  ;;  %v2779_v11 = vld [vmem:[%s6879_s11] sm:$0xf]  ;;  %v3228_v5 = vld [vmem:[#allocation9 + $0x88] sm:$0xff] }
 0x50f   :  { %v2784_v12 = vrot.slane %v2779_v11, %v6727_v28  ;;  %v2792_v13 = vrot.slane %v2779_v11, %v6746_v8  ;;  %v2788_v14 = vrot.slane %v2779_v11, %v6735_v30  ;;  %v2796_v15 = vrot.slane %v2779_v11, %v6749_v49 }
 0x511   :  { %4808 = vmatpush2.bf16.msra.mxu1 %v5647_v16  ;;  %4849 = vmatpush2.bf16.msra.mxu0 %v5775_v17 }
 0x512   :  { %4809 = vmatprep.subr.bf16.mxu1 %v5640_v18  ;;  %4850 = vmatprep.subr.bf16.mxu0 %v5768_v19 }
 0x515   :  { %4810 = vmatpush2.bf16.msra.mxu1 %v5639_v27  ;;  %4851 = vmatpush2.bf16.msra.mxu0 %v5767_v33 }
 0x516   :  { %4811 = vmatprep.subr.bf16.mxu1 %v5632_v36  ;;  %4852 = vmatprep.subr.bf16.mxu0 %v5760_v38 }
 0x519   :  { %4812 = vmatpush2.bf16.msra.mxu1 %v5631_v20  ;;  %4853 = vmatpush2.bf16.msra.mxu0 %v5759_v42  ;;  %v3264_v42 = vld [vmem:[#allocation9 + $0x1a8] sm:$0xff] }
 0x51a   :  { %4813 = vmatprep.subr.bf16.mxu1 %v5624_v21  ;;  %4854 = vmatprep.subr.bf16.mxu0 %v5752_v43  ;;  %v3388_v21 = vld [vmem:[#allocation9 + $0x588] sm:$0xff]  ;;  %v5585_v51 = vcombine.low %v3260_v52, %v3264_v42 }
 0x51b   :  { %v3392_v43 = vld [vmem:[#allocation9 + $0x5a8] sm:$0xff] }
 0x51c   :  { %v5713_v32 = vcombine.low %v3388_v21, %v3392_v43 }
 0x51d   :  { %4814 = vmatpush2.bf16.msra.mxu1 %v5623_v46  ;;  %4855 = vmatpush2.bf16.msra.mxu0 %v5751_v47  ;;  %v3252_v46 = vld [vmem:[#allocation9 + $0x148] sm:$0xff]  ;;  %v5586_v47 = vcombine.high %v3260_v52, %v3264_v42 }
 0x51e   :  { %4815 = vmatprep.subr.bf16.mxu1 %v5616_v48  ;;  %4856 = vmatprep.subr.bf16.mxu0 %v5744_v31  ;;  %v5714_v48 = vcombine.high %v3388_v21, %v3392_v43  ;;  %v3256_v31 = vld [vmem:[#allocation9 + $0x168] sm:$0xff] }
 0x51f   :  { %v5578_v53 = vcombine.high %v3252_v46, %v3256_v31  ;;  %v5577_v35 = vcombine.low %v3252_v46, %v3256_v31  ;;  %v3460_v42 = vld [vmem:[#allocation9 + $0x7c8] sm:$0xff] }
 0x520   :  { %v3464_v21 = vld [vmem:[#allocation9 + $0x7e8] sm:$0xff] }
 0x521   :  { %4816 = vmatpush2.bf16.msra.mxu1 %v5615_v50  ;;  %4857 = vmatpush2.bf16.msra.mxu0 %v5743_v34  ;;  %v3380_v50 = vld [vmem:[#allocation9 + $0x548] sm:$0xff] }
 0x522   :  { %4817 = vmatprep.subr.bf16.mxu1 %v5608_v54  ;;  %4858 = vmatprep.subr.bf16.mxu0 %v5736_v57  ;;  %v3384_v34 = vld [vmem:[#allocation9 + $0x568] sm:$0xff] }
 0x523   :  { %v5706_v54 = vcombine.high %v3380_v50, %v3384_v34  ;;  %v3376_v57 = vld [vmem:[#allocation9 + $0x528] sm:$0xff]  ;;  %v5705_v58 = vcombine.low %v3380_v50, %v3384_v34 }
 0x524   :  { %v3324_v31 = vld [vmem:[#allocation9 + $0x388] sm:$0xff] }
 0x525   :  { %4818 = vmatpush2.bf16.msra.mxu1 %v5607_v55  ;;  %4859 = vmatpush2.bf16.msra.mxu0 %v5735_v56  ;;  %v3248_v55 = vld [vmem:[#allocation9 + $0x128] sm:$0xff] }
 0x526   :  { %4819 = vmatprep.subr.bf16.mxu1 %v5600_v60  ;;  %4860 = vmatprep.subr.bf16.mxu0 %v5728_v0  ;;  %v3372_v56 = vld [vmem:[#allocation9 + $0x508] sm:$0xff]  ;;  %v5570_v59 = vcombine.high %v3244_v29, %v3248_v55  ;;  %v5569_v1 = vcombine.low %v3244_v29, %v3248_v55 }
 0x527   :  { %v5698_v60 = vcombine.high %v3372_v56, %v3376_v57  ;;  %v3368_v0 = vld [vmem:[#allocation9 + $0x4e8] sm:$0xff]  ;;  %v5697_v2 = vcombine.low %v3372_v56, %v3376_v57 }
 0x528   :  { %v3328_v50 = vld [vmem:[#allocation9 + $0x3a8] sm:$0xff] }
 0x529   :  { %4820 = vmatpush2.bf16.msra.mxu1 %v5599_v62  ;;  %4861 = vmatpush2.bf16.msra.mxu0 %v5727_v63  ;;  %v3240_v62 = vld [vmem:[#allocation9 + $0xe8] sm:$0xff] }
 0x52a   :  { %4871 = vmatprep.subr.bf16.mxu1 %v5594_v4  ;;  %4912 = vmatprep.subr.bf16.mxu0 %v5722_v10  ;;  %v3364_v63 = vld [vmem:[#allocation9 + $0x4c8] sm:$0xff]  ;;  %v5562_v3 = vcombine.high %v3236_v61, %v3240_v62  ;;  %v5561_v11 = vcombine.low %v3236_v61, %v3240_v62 }
 0x52b   :  { %v5690_v4 = vcombine.high %v3364_v63, %v3368_v0  ;;  %v3360_v10 = vld [vmem:[#allocation9 + $0x4a8] sm:$0xff] }
 0x52c   :  { %v3452_v34 = vld [vmem:[#allocation9 + $0x788] sm:$0xff] }
 0x52d   :  { %v3316_v55 = vld [vmem:[#allocation9 + $0x348] sm:$0xff] }
 0x52e   :  { %v3320_v56 = vld [vmem:[#allocation9 + $0x368] sm:$0xff] }
 0x52f   :  { %v3444_v57 = vld [vmem:[#allocation9 + $0x748] sm:$0xff] }
 0x530   :  { %v3308_v62 = vld [vmem:[#allocation9 + $0x308] sm:$0xff] }
 0x5ac   :  { %v3155_v16 = vpop.f32.mrf.mxu1  ;;  %v3196_v17 = vpop.f32.mrf.mxu0 }
 0x5ad   :  { %v3156_v18 = vadd.f32 %v3155_v16, %v2784_v12  ;;  %v3197_v19 = vadd.f32 %v3196_v17, %v2792_v13  ;;  %v5689_v12 = vcombine.low %v3364_v63, %v3368_v0  ;;  %v3224_v16 = vld [vmem:[#allocation9 + $0x68] sm:$0xff] }
 0x5ae   :  { %v3157_v22 = vpop.f32.mrf.mxu1  ;;  %v3198_v24 = vpop.f32.mrf.mxu0  ;;  %v3348_v17 = vld [vmem:[#allocation9 + $0x448] sm:$0xff] }
 0x5af   :  { %v3158_v25 = vadd.f32 %v3157_v22, %v2788_v14  ;;  %v3199_v26 = vadd.f32 %v3198_v24, %v2796_v15  ;;  %v3203_v27 = vmax.f32 %v3156_v18, 0.0  ;;  %v3205_v33 = vmax.f32 %v3197_v19, 0.0  ;;  %v3220_v15 = vld [vmem:[#allocation9 + $0x48] sm:$0xff] }
 0x5b0   :  { %v3159_v36 = vpop.f32.mrf.mxu1  ;;  %v3200_v38 = vpop.f32.mrf.mxu0  ;;  %v3352_v18 = vld [vmem:[#allocation9 + $0x468] sm:$0xff]  ;;  %v5546_v24 = vcombine.high %v3220_v15, %v3224_v16 }
 0x5b1   :  { %v3204_v39 = vmax.f32 %v3158_v25, 0.0  ;;  %v3206_v9 = vmax.f32 %v3199_v26, 0.0  ;;  %v6803_v40 = vpack.c.bf16 %v3203_v27, %v3203_v27  ;;  %v6805_v45 = vpack.c.bf16 %v3205_v33, %v3205_v33  ;;  %v3212_v26 = vld [vmem:[#allocation9 + $0x8] sm:$0xff] }
 0x5b2   :  { %v3160_v41 = vpop.f32.mrf.mxu1  ;;  %v3201_v20 = vpop.f32.mrf.mxu0  ;;  %v5674_v25 = vcombine.high %v3348_v17, %v3352_v18  ;;  %v3216_v27 = vld [vmem:[#allocation9 + $0x28] sm:$0xff]  ;;  %v5545_v38 = vcombine.low %v3220_v15, %v3224_v16 }
 0x5b3   :  { %v6799_v44 = vpack.c.bf16 %v3204_v39, %v3204_v39  ;;  %v6801_v37 = vpack.c.bf16 %v3206_v9, %v3206_v9  ;;  %v3340_v33 = vld [vmem:[#allocation9 + $0x408] sm:$0xff]  ;;  %v5673_v39 = vcombine.low %v3348_v17, %v3352_v18  ;;  %v5538_v9 = vcombine.high %v3212_v26, %v3216_v27 }
 0x5b4   :  { %v3344_v36 = vld [vmem:[#allocation9 + $0x428] sm:$0xff]  ;;  %v5537_v43 = vcombine.low %v3212_v26, %v3216_v27 }
 0x5b5   :  { %4821 = vmatprep.mubr.bf16.mxu1 %v6799_v44  ;;  %4862 = vmatprep.mubr.bf16.mxu0 %v6801_v37  ;;  %v5666_v52 = vcombine.high %v3340_v33, %v3344_v36  ;;  %v3332_v41 = vld [vmem:[#allocation9 + $0x3c8] sm:$0xff]  ;;  %v5665_v46 = vcombine.low %v3340_v33, %v3344_v36 }
 0x5b6   :  { %4822 = vmatmul.mubr.bf16.vlgmr.msra.gmra.mxu1 %v6803_v40  ;;  %4863 = vmatmul.mubr.bf16.vlgmr.msra.gmra.mxu0 %v6805_v45  ;;  %v3336_v20 = vld [vmem:[#allocation9 + $0x3e8] sm:$0xff] }
 0x5b7   :  { %4872 = vmatpush1.bf16.msra.mxu1 %v5593_v6  ;;  %4913 = vmatpush1.bf16.msra.mxu0 %v5721_v7  ;;  %v3232_v6 = vld [vmem:[#allocation9 + $0xa8] sm:$0xff] }
 0x5b8   :  { %4903 = vmatprep.mubr.bf16.mxu1 %v6799_v44  ;;  %4944 = vmatprep.mubr.bf16.mxu0 %v6801_v37  ;;  %v3356_v7 = vld [vmem:[#allocation9 + $0x488] sm:$0xff]  ;;  %v5554_v13 = vcombine.high %v3228_v5, %v3232_v6  ;;  %v5553_v19 = vcombine.low %v3228_v5, %v3232_v6 }
 0x5b9   :  { %4873 = vmatprep.subr.bf16.mxu1 %v5586_v47  ;;  %4914 = vmatprep.subr.bf16.mxu0 %v5714_v48  ;;  %v5682_v14 = vcombine.high %v3356_v7, %v3360_v10  ;;  %v5681_v22 = vcombine.low %v3356_v7, %v3360_v10  ;;  %v5658_v47 = vcombine.high %v3332_v41, %v3336_v20  ;;  %v3312_v63 = vld [vmem:[#allocation9 + $0x328] sm:$0xff] }
 0x5ba   :  { %v5786_v48 = vcombine.high %v3460_v42, %v3464_v21  ;;  %v3436_v0 = vld [vmem:[#allocation9 + $0x708] sm:$0xff] }
 0x5bb   :  { %4874 = vmatpush1.bf16.msra.mxu1 %v5585_v51  ;;  %4915 = vmatpush1.bf16.msra.mxu0 %v5713_v32  ;;  %v3456_v51 = vld [vmem:[#allocation9 + $0x7a8] sm:$0xff]  ;;  %v5657_v32 = vcombine.low %v3332_v41, %v3336_v20 }
 0x5bc   :  { %4875 = vmatprep.subr.bf16.mxu1 %v5578_v53  ;;  %4916 = vmatprep.subr.bf16.mxu0 %v5706_v54  ;;  %v5785_v53 = vcombine.low %v3460_v42, %v3464_v21  ;;  %v5650_v54 = vcombine.high %v3324_v31, %v3328_v50  ;;  %v5778_v29 = vcombine.high %v3452_v34, %v3456_v51  ;;  %v3300_v6 = vld [vmem:[#allocation9 + $0x2c8] sm:$0xff] }
 0x5bd   :  { %v3304_v7 = vld [vmem:[#allocation9 + $0x2e8] sm:$0xff] }
 0x5be   :  { %v3428_v10 = vld [vmem:[#allocation9 + $0x6c8] sm:$0xff] }
 0x5bf   :  { %4876 = vmatpush1.bf16.msra.mxu1 %v5577_v35  ;;  %4917 = vmatpush1.bf16.msra.mxu0 %v5705_v58  ;;  %v3448_v35 = vld [vmem:[#allocation9 + $0x768] sm:$0xff]  ;;  %v5649_v58 = vcombine.low %v3324_v31, %v3328_v50  ;;  %v3269_v50 = vld [vmem:[#allocation9 + $0x1d0] sm:$0xff] }
 0x5c0   :  { %4877 = vmatprep.subr.bf16.mxu1 %v5570_v59  ;;  %4918 = vmatprep.subr.bf16.mxu0 %v5698_v60  ;;  %v5777_v59 = vcombine.low %v3452_v34, %v3456_v51  ;;  %v5642_v60 = vcombine.high %v3316_v55, %v3320_v56  ;;  %v5770_v61 = vcombine.high %v3444_v57, %v3448_v35  ;;  %v3292_v16 = vld [vmem:[#allocation9 + $0x288] sm:$0xff]  ;;  %v3273_v34 = vld [vmem:[#allocation9 + $0x1f0] sm:$0xff] }
 0x5c1   :  { %v3296_v17 = vld [vmem:[#allocation9 + $0x2a8] sm:$0xff]  ;;  %v3397_v51 = vld [vmem:[#allocation9 + $0x5d0] sm:$0xff] }
 0x5c2   :  { %v3420_v18 = vld [vmem:[#allocation9 + $0x688] sm:$0xff] }
 0x5c3   :  { %4878 = vmatpush1.bf16.msra.mxu1 %v5569_v1  ;;  %4919 = vmatpush1.bf16.msra.mxu0 %v5697_v2  ;;  %v3440_v1 = vld [vmem:[#allocation9 + $0x728] sm:$0xff]  ;;  %v5641_v2 = vcombine.low %v3316_v55, %v3320_v56  ;;  %v3261_v56 = vld [vmem:[#allocation9 + $0x190] sm:$0xff] }
 0x5c4   :  { %4879 = vmatprep.subr.bf16.mxu1 %v5562_v3  ;;  %4920 = vmatprep.subr.bf16.mxu0 %v5690_v4  ;;  %v5769_v3 = vcombine.low %v3444_v57, %v3448_v35  ;;  %v5634_v4 = vcombine.high %v3308_v62, %v3312_v63  ;;  %v5762_v5 = vcombine.high %v3436_v0, %v3440_v1  ;;  %v3284_v27 = vld [vmem:[#allocation9 + $0x248] sm:$0xff]  ;;  %v3265_v57 = vld [vmem:[#allocation9 + $0x1b0] sm:$0xff] }
 0x5c5   :  { %v3288_v33 = vld [vmem:[#allocation9 + $0x268] sm:$0xff]  ;;  %v3389_v35 = vld [vmem:[#allocation9 + $0x590] sm:$0xff] }
 0x5c6   :  { %v3412_v36 = vld [vmem:[#allocation9 + $0x648] sm:$0xff] }
 0x5c7   :  { %4880 = vmatpush1.bf16.msra.mxu1 %v5561_v11  ;;  %4921 = vmatpush1.bf16.msra.mxu0 %v5689_v12  ;;  %v3432_v11 = vld [vmem:[#allocation9 + $0x6e8] sm:$0xff]  ;;  %v5633_v12 = vcombine.low %v3308_v62, %v3312_v63  ;;  %v3253_v63 = vld [vmem:[#allocation9 + $0x150] sm:$0xff] }
 0x5c8   :  { %4881 = vmatprep.subr.bf16.mxu1 %v5554_v13  ;;  %4922 = vmatprep.subr.bf16.mxu0 %v5682_v14  ;;  %v5761_v13 = vcombine.low %v3436_v0, %v3440_v1  ;;  %v5626_v14 = vcombine.high %v3300_v6, %v3304_v7  ;;  %v5754_v15 = vcombine.high %v3428_v10, %v3432_v11  ;;  %v3276_v20 = vld [vmem:[#allocation9 + $0x208] sm:$0xff]  ;;  %v3257_v0 = vld [vmem:[#allocation9 + $0x170] sm:$0xff] }
 0x5c9   :  { %v3280_v42 = vld [vmem:[#allocation9 + $0x228] sm:$0xff]  ;;  %v3381_v1 = vld [vmem:[#allocation9 + $0x550] sm:$0xff] }
 0x5ca   :  { %v3404_v21 = vld [vmem:[#allocation9 + $0x608] sm:$0xff] }
 0x5cb   :  { %4882 = vmatpush1.bf16.msra.mxu1 %v5553_v19  ;;  %4923 = vmatpush1.bf16.msra.mxu0 %v5681_v22  ;;  %v3424_v19 = vld [vmem:[#allocation9 + $0x6a8] sm:$0xff]  ;;  %v5625_v22 = vcombine.low %v3300_v6, %v3304_v7  ;;  %v3245_v7 = vld [vmem:[#allocation9 + $0x110] sm:$0xff] }
 0x5cc   :  { %4883 = vmatprep.subr.bf16.mxu1 %v5546_v24  ;;  %4924 = vmatprep.subr.bf16.mxu0 %v5674_v25  ;;  %v5753_v24 = vcombine.low %v3428_v10, %v3432_v11  ;;  %v5618_v25 = vcombine.high %v3292_v16, %v3296_v17  ;;  %v5746_v26 = vcombine.high %v3420_v18, %v3424_v19  ;;  %v3249_v10 = vld [vmem:[#allocation9 + $0x130] sm:$0xff] }
 0x5cd   :  { %v3373_v11 = vld [vmem:[#allocation9 + $0x510] sm:$0xff] }
 0x5cf   :  { %4884 = vmatpush1.bf16.msra.mxu1 %v5545_v38  ;;  %4925 = vmatpush1.bf16.msra.mxu0 %v5673_v39  ;;  %v3416_v38 = vld [vmem:[#allocation9 + $0x668] sm:$0xff]  ;;  %v5617_v39 = vcombine.low %v3292_v16, %v3296_v17  ;;  %v3237_v17 = vld [vmem:[#allocation9 + $0xd0] sm:$0xff] }
 0x5d0   :  { %4885 = vmatprep.subr.bf16.mxu1 %v5538_v9  ;;  %4926 = vmatprep.subr.bf16.mxu0 %v5666_v52  ;;  %v5745_v9 = vcombine.low %v3420_v18, %v3424_v19  ;;  %v5610_v52 = vcombine.high %v3284_v27, %v3288_v33  ;;  %v5738_v41 = vcombine.high %v3412_v36, %v3416_v38  ;;  %v3241_v18 = vld [vmem:[#allocation9 + $0xf0] sm:$0xff] }
 0x5d1   :  { %v3365_v19 = vld [vmem:[#allocation9 + $0x4d0] sm:$0xff] }
 0x5d3   :  { %4886 = vmatpush1.bf16.msra.mxu1 %v5537_v43  ;;  %4927 = vmatpush1.bf16.msra.mxu0 %v5665_v46  ;;  %v3408_v43 = vld [vmem:[#allocation9 + $0x628] sm:$0xff]  ;;  %v5609_v46 = vcombine.low %v3284_v27, %v3288_v33  ;;  %v3229_v33 = vld [vmem:[#allocation9 + $0x90] sm:$0xff] }
 0x5d4   :  { %4887 = vmatprep.subr.bf16.mxu1 %v5658_v47  ;;  %4928 = vmatprep.subr.bf16.mxu0 %v5786_v48  ;;  %v5737_v47 = vcombine.low %v3412_v36, %v3416_v38  ;;  %v5602_v48 = vcombine.high %v3276_v20, %v3280_v42  ;;  %v5730_v31 = vcombine.high %v3404_v21, %v3408_v43  ;;  %v3233_v36 = vld [vmem:[#allocation9 + $0xb0] sm:$0xff] }
 0x5d5   :  { %v3357_v38 = vld [vmem:[#allocation9 + $0x490] sm:$0xff] }
 0x5d7   :  { %4888 = vmatpush2.bf16.msra.mxu1 %v5657_v32  ;;  %4929 = vmatpush2.bf16.msra.mxu0 %v5785_v53  ;;  %v3401_v32 = vld [vmem:[#allocation9 + $0x5f0] sm:$0xff]  ;;  %v5601_v53 = vcombine.low %v3276_v20, %v3280_v42 }
 0x5d8   :  { %4889 = vmatprep.subr.bf16.mxu1 %v5650_v54  ;;  %4930 = vmatprep.subr.bf16.mxu0 %v5778_v29  ;;  %v5729_v54 = vcombine.low %v3404_v21, %v3408_v43  ;;  %v5596_v29 = vcombine.high %v3269_v50, %v3273_v34  ;;  %v5724_v55 = vcombine.high %v3397_v51, %v3401_v32  ;;  %v3221_v42 = vld [vmem:[#allocation9 + $0x50] sm:$0xff] }
 0x5d9   :  { %v3225_v21 = vld [vmem:[#allocation9 + $0x70] sm:$0xff] }
 0x5da   :  { %v3349_v43 = vld [vmem:[#allocation9 + $0x450] sm:$0xff] }
 0x5db   :  { %4890 = vmatpush2.bf16.msra.mxu1 %v5649_v58  ;;  %4931 = vmatpush2.bf16.msra.mxu0 %v5777_v59  ;;  %v3393_v58 = vld [vmem:[#allocation9 + $0x5b0] sm:$0xff]  ;;  %v5595_v59 = vcombine.low %v3269_v50, %v3273_v34 }
 0x5dc   :  { %4891 = vmatprep.subr.bf16.mxu1 %v5642_v60  ;;  %4932 = vmatprep.subr.bf16.mxu0 %v5770_v61  ;;  %v5723_v60 = vcombine.low %v3397_v51, %v3401_v32  ;;  %v5588_v61 = vcombine.high %v3261_v56, %v3265_v57  ;;  %v5716_v62 = vcombine.high %v3389_v35, %v3393_v58  ;;  %v3213_v34 = vld [vmem:[#allocation9 + $0x10] sm:$0xff] }
 0x5dd   :  { %v3217_v51 = vld [vmem:[#allocation9 + $0x30] sm:$0xff] }
 0x5de   :  { %v3341_v32 = vld [vmem:[#allocation9 + $0x410] sm:$0xff] }
 0x5df   :  { %4892 = vmatpush2.bf16.msra.mxu1 %v5641_v2  ;;  %4933 = vmatpush2.bf16.msra.mxu0 %v5769_v3  ;;  %v3385_v2 = vld [vmem:[#allocation9 + $0x570] sm:$0xff]  ;;  %v5587_v3 = vcombine.low %v3261_v56, %v3265_v57 }
 0x5e0   :  { %4893 = vmatprep.subr.bf16.mxu1 %v5634_v4  ;;  %4934 = vmatprep.subr.bf16.mxu0 %v5762_v5  ;;  %v5715_v4 = vcombine.low %v3389_v35, %v3393_v58  ;;  %v5580_v5 = vcombine.high %v3253_v63, %v3257_v0  ;;  %v5708_v6 = vcombine.high %v3381_v1, %v3385_v2  ;;  %v3333_v57 = vld [vmem:[#allocation9 + $0x3d0] sm:$0xff] }
 0x5e1   :  { %v3337_v35 = vld [vmem:[#allocation9 + $0x3f0] sm:$0xff] }
 0x5e2   :  { %v3461_v58 = vld [vmem:[#allocation9 + $0x7d0] sm:$0xff] }
 0x5e3   :  { %4894 = vmatpush2.bf16.msra.mxu1 %v5633_v12  ;;  %4935 = vmatpush2.bf16.msra.mxu0 %v5761_v13  ;;  %v3377_v12 = vld [vmem:[#allocation9 + $0x530] sm:$0xff]  ;;  %v5579_v13 = vcombine.low %v3253_v63, %v3257_v0 }
 0x5e4   :  { %4895 = vmatprep.subr.bf16.mxu1 %v5626_v14  ;;  %4936 = vmatprep.subr.bf16.mxu0 %v5754_v15  ;;  %v5707_v14 = vcombine.low %v3381_v1, %v3385_v2  ;;  %v5572_v15 = vcombine.high %v3245_v7, %v3249_v10  ;;  %v5700_v16 = vcombine.high %v3373_v11, %v3377_v12  ;;  %v3325_v0 = vld [vmem:[#allocation9 + $0x390] sm:$0xff] }
 0x5e5   :  { %v3329_v1 = vld [vmem:[#allocation9 + $0x3b0] sm:$0xff] }
 0x5e6   :  { %v3453_v2 = vld [vmem:[#allocation9 + $0x790] sm:$0xff] }
 0x5e7   :  { %4896 = vmatpush2.bf16.msra.mxu1 %v5625_v22  ;;  %4937 = vmatpush2.bf16.msra.mxu0 %v5753_v24  ;;  %v3369_v22 = vld [vmem:[#allocation9 + $0x4f0] sm:$0xff]  ;;  %v5571_v24 = vcombine.low %v3245_v7, %v3249_v10 }
 0x5e8   :  { %4897 = vmatprep.subr.bf16.mxu1 %v5618_v25  ;;  %4938 = vmatprep.subr.bf16.mxu0 %v5746_v26  ;;  %v5699_v25 = vcombine.low %v3373_v11, %v3377_v12  ;;  %v5564_v26 = vcombine.high %v3237_v17, %v3241_v18  ;;  %v5692_v27 = vcombine.high %v3365_v19, %v3369_v22  ;;  %v3317_v10 = vld [vmem:[#allocation9 + $0x350] sm:$0xff] }
 0x5e9   :  { %v3321_v11 = vld [vmem:[#allocation9 + $0x370] sm:$0xff] }
 0x5ea   :  { %v3445_v12 = vld [vmem:[#allocation9 + $0x750] sm:$0xff] }
 0x5eb   :  { %4898 = vmatpush2.bf16.msra.mxu1 %v5617_v39  ;;  %4939 = vmatpush2.bf16.msra.mxu0 %v5745_v9  ;;  %v3361_v39 = vld [vmem:[#allocation9 + $0x4b0] sm:$0xff]  ;;  %v5563_v9 = vcombine.low %v3237_v17, %v3241_v18 }
 0x5ec   :  { %4899 = vmatprep.subr.bf16.mxu1 %v5610_v52  ;;  %4940 = vmatprep.subr.bf16.mxu0 %v5738_v41  ;;  %v5691_v52 = vcombine.low %v3365_v19, %v3369_v22  ;;  %v5556_v41 = vcombine.high %v3229_v33, %v3233_v36  ;;  %v5684_v20 = vcombine.high %v3357_v38, %v3361_v39  ;;  %v3309_v18 = vld [vmem:[#allocation9 + $0x310] sm:$0xff] }
 0x5ed   :  { %v3313_v19 = vld [vmem:[#allocation9 + $0x330] sm:$0xff] }
 0x5ee   :  { %v3437_v22 = vld [vmem:[#allocation9 + $0x710] sm:$0xff] }
 0x5ef   :  { %4900 = vmatpush2.bf16.msra.mxu1 %v5609_v46  ;;  %4941 = vmatpush2.bf16.msra.mxu0 %v5737_v47  ;;  %v3353_v46 = vld [vmem:[#allocation9 + $0x470] sm:$0xff]  ;;  %v5555_v47 = vcombine.low %v3229_v33, %v3233_v36 }
 0x5f0   :  { %4901 = vmatprep.subr.bf16.mxu1 %v5602_v48  ;;  %4942 = vmatprep.subr.bf16.mxu0 %v5730_v31  ;;  %v5683_v48 = vcombine.low %v3357_v38, %v3361_v39  ;;  %v5548_v31 = vcombine.high %v3221_v42, %v3225_v21  ;;  %v5676_v50 = vcombine.high %v3349_v43, %v3353_v46  ;;  %v3301_v36 = vld [vmem:[#allocation9 + $0x2d0] sm:$0xff] }
 0x5f1   :  { %v3305_v38 = vld [vmem:[#allocation9 + $0x2f0] sm:$0xff] }
 0x5f2   :  { %v3429_v39 = vld [vmem:[#allocation9 + $0x6d0] sm:$0xff] }
 0x5f3   :  { %4902 = vmatpush2.bf16.msra.mxu1 %v5601_v53  ;;  %4943 = vmatpush2.bf16.msra.mxu0 %v5729_v54  ;;  %v3345_v53 = vld [vmem:[#allocation9 + $0x430] sm:$0xff]  ;;  %v5547_v54 = vcombine.low %v3221_v42, %v3225_v21 }
 0x5f4   :  { %4953 = vmatprep.subr.bf16.mxu1 %v5596_v29  ;;  %4994 = vmatprep.subr.bf16.mxu0 %v5724_v55  ;;  %v5675_v29 = vcombine.low %v3349_v43, %v3353_v46  ;;  %v5540_v55 = vcombine.high %v3213_v34, %v3217_v51  ;;  %v5668_v56 = vcombine.high %v3341_v32, %v3345_v53  ;;  %v3293_v21 = vld [vmem:[#allocation9 + $0x290] sm:$0xff] }
 0x5f5   :  { %v3297_v43 = vld [vmem:[#allocation9 + $0x2b0] sm:$0xff] }
 0x5f6   :  { %4904 = vmatmul.mubr.bf16.vlgmr.msra.gmra.mxu1 %v6803_v40  ;;  %4945 = vmatmul.mubr.bf16.vlgmr.msra.gmra.mxu0 %v6805_v45  ;;  %v3421_v46 = vld [vmem:[#allocation9 + $0x690] sm:$0xff] }
 0x5f7   :  { %4954 = vmatpush1.bf16.msra.mxu1 %v5595_v59  ;;  %4985 = vmatprep.mubr.bf16.mxu1 %v6799_v44  ;;  %v3465_v59 = vld [vmem:[#allocation9 + $0x7f0] sm:$0xff] }
 0x5f8   :  { %4995 = vmatpush1.bf16.msra.mxu0 %v5723_v60  ;;  %5026 = vmatprep.mubr.bf16.mxu0 %v6801_v37  ;;  %v5539_v60 = vcombine.low %v3213_v34, %v3217_v51  ;;  %v5788_v63 = vcombine.high %v3461_v58, %v3465_v59  ;;  %v3285_v51 = vld [vmem:[#allocation9 + $0x250] sm:$0xff] }
 0x5f9   :  { %4955 = vmatprep.subr.bf16.mxu1 %v5588_v61  ;;  %4996 = vmatprep.subr.bf16.mxu0 %v5716_v62  ;;  %v5667_v61 = vcombine.low %v3341_v32, %v3345_v53  ;;  %v5660_v62 = vcombine.high %v3333_v57, %v3337_v35  ;;  %v3289_v32 = vld [vmem:[#allocation9 + $0x270] sm:$0xff] }
 0x5fa   :  { %v3413_v53 = vld [vmem:[#allocation9 + $0x650] sm:$0xff] }
 0x5fb   :  { %4956 = vmatpush1.bf16.msra.mxu1 %v5587_v3  ;;  %v3457_v3 = vld [vmem:[#allocation9 + $0x7b0] sm:$0xff] }
 0x5fc   :  { %4997 = vmatpush1.bf16.msra.mxu0 %v5715_v4  ;;  %4957 = vmatprep.subr.bf16.mxu1 %v5580_v5  ;;  %v5659_v4 = vcombine.low %v3333_v57, %v3337_v35  ;;  %v5787_v5 = vcombine.low %v3461_v58, %v3465_v59  ;;  %v5780_v7 = vcombine.high %v3453_v2, %v3457_v3  ;;  %v3277_v35 = vld [vmem:[#allocation9 + $0x210] sm:$0xff] }
 0x5fd   :  { %4998 = vmatprep.subr.bf16.mxu0 %v5708_v6  ;;  %v5652_v6 = vcombine.high %v3325_v0, %v3329_v1  ;;  %v3281_v58 = vld [vmem:[#allocation9 + $0x230] sm:$0xff] }
 0x5fe   :  { %v3405_v59 = vld [vmem:[#allocation9 + $0x610] sm:$0xff] }
 0x5ff   :  { %4958 = vmatpush1.bf16.msra.mxu1 %v5579_v13  ;;  %v3449_v13 = vld [vmem:[#allocation9 + $0x770] sm:$0xff] }
 0x600   :  { %4999 = vmatpush1.bf16.msra.mxu0 %v5707_v14  ;;  %4959 = vmatprep.subr.bf16.mxu1 %v5572_v15  ;;  %v5651_v14 = vcombine.low %v3325_v0, %v3329_v1  ;;  %v5779_v15 = vcombine.low %v3453_v2, %v3457_v3  ;;  %v5772_v17 = vcombine.high %v3445_v12, %v3449_v13  ;;  %v3270_v1 = vld [vmem:[#allocation9 + $0x1d8] sm:$0xff] }
 0x601   :  { %5000 = vmatprep.subr.bf16.mxu0 %v5700_v16  ;;  %v5644_v16 = vcombine.high %v3317_v10, %v3321_v11  ;;  %v3274_v2 = vld [vmem:[#allocation9 + $0x1f8] sm:$0xff] }
 0x602   :  { %v3398_v3 = vld [vmem:[#allocation9 + $0x5d8] sm:$0xff] }
 0x603   :  { %4960 = vmatpush1.bf16.msra.mxu1 %v5571_v24  ;;  %v3441_v24 = vld [vmem:[#allocation9 + $0x730] sm:$0xff] }
 0x604   :  { %5001 = vmatpush1.bf16.msra.mxu0 %v5699_v25  ;;  %4961 = vmatprep.subr.bf16.mxu1 %v5564_v26  ;;  %v5643_v25 = vcombine.low %v3317_v10, %v3321_v11  ;;  %v5771_v26 = vcombine.low %v3445_v12, %v3449_v13  ;;  %v5764_v33 = vcombine.high %v3437_v22, %v3441_v24  ;;  %v3262_v11 = vld [vmem:[#allocation9 + $0x198] sm:$0xff] }
 0x605   :  { %5002 = vmatprep.subr.bf16.mxu0 %v5692_v27  ;;  %v5636_v27 = vcombine.high %v3309_v18, %v3313_v19  ;;  %v3266_v12 = vld [vmem:[#allocation9 + $0x1b8] sm:$0xff]  ;;  %v5597_v13 = vcombine.low %v3270_v1, %v3274_v2 }
 0x607   :  { %4962 = vmatpush1.bf16.msra.mxu1 %v5563_v9  ;;  %v3433_v9 = vld [vmem:[#allocation9 + $0x6f0] sm:$0xff] }
 0x608   :  { %5003 = vmatpush1.bf16.msra.mxu0 %v5691_v52  ;;  %4963 = vmatprep.subr.bf16.mxu1 %v5556_v41  ;;  %v5635_v52 = vcombine.low %v3309_v18, %v3313_v19  ;;  %v5763_v41 = vcombine.low %v3437_v22, %v3441_v24  ;;  %v5756_v42 = vcombine.high %v3429_v39, %v3433_v9  ;;  %v3254_v18 = vld [vmem:[#allocation9 + $0x158] sm:$0xff] }
 0x609   :  { %5004 = vmatprep.subr.bf16.mxu0 %v5684_v20  ;;  %v5628_v20 = vcombine.high %v3301_v36, %v3305_v38  ;;  %v3258_v19 = vld [vmem:[#allocation9 + $0x178] sm:$0xff] }
 0x60a   :  { %v3382_v24 = vld [vmem:[#allocation9 + $0x558] sm:$0xff] }
 0x60b   :  { %4964 = vmatpush1.bf16.msra.mxu1 %v5555_v47  ;;  %v3425_v47 = vld [vmem:[#allocation9 + $0x6b0] sm:$0xff] }
 0x60c   :  { %5005 = vmatpush1.bf16.msra.mxu0 %v5683_v48  ;;  %4965 = vmatprep.subr.bf16.mxu1 %v5548_v31  ;;  %v5627_v48 = vcombine.low %v3301_v36, %v3305_v38  ;;  %v5755_v31 = vcombine.low %v3429_v39, %v3433_v9  ;;  %v5748_v34 = vcombine.high %v3421_v46, %v3425_v47  ;;  %v3246_v38 = vld [vmem:[#allocation9 + $0x118] sm:$0xff] }
 0x60d   :  { %5006 = vmatprep.subr.bf16.mxu0 %v5676_v50  ;;  %v5620_v50 = vcombine.high %v3293_v21, %v3297_v43  ;;  %v3250_v39 = vld [vmem:[#allocation9 + $0x138] sm:$0xff] }
 0x60e   :  { %v3374_v9 = vld [vmem:[#allocation9 + $0x518] sm:$0xff] }
 0x60f   :  { %4966 = vmatpush1.bf16.msra.mxu1 %v5547_v54  ;;  %v3417_v54 = vld [vmem:[#allocation9 + $0x670] sm:$0xff] }
 0x610   :  { %5007 = vmatpush1.bf16.msra.mxu0 %v5675_v29  ;;  %4967 = vmatprep.subr.bf16.mxu1 %v5540_v55  ;;  %v5619_v29 = vcombine.low %v3293_v21, %v3297_v43  ;;  %v5747_v55 = vcombine.low %v3421_v46, %v3425_v47  ;;  %v5740_v57 = vcombine.high %v3413_v53, %v3417_v54  ;;  %v3238_v21 = vld [vmem:[#allocation9 + $0xd8] sm:$0xff] }
 0x611   :  { %5008 = vmatprep.subr.bf16.mxu0 %v5668_v56  ;;  %v5612_v56 = vcombine.high %v3285_v51, %v3289_v32  ;;  %v3242_v43 = vld [vmem:[#allocation9 + $0xf8] sm:$0xff] }
 0x612   :  { %v3366_v46 = vld [vmem:[#allocation9 + $0x4d8] sm:$0xff] }
 0x613   :  { %4968 = vmatpush1.bf16.msra.mxu1 %v5539_v60  ;;  %v3409_v60 = vld [vmem:[#allocation9 + $0x630] sm:$0xff]  ;;  %v3370_v47 = vld [vmem:[#allocation9 + $0x4f8] sm:$0xff] }
 0x614   :  { %5009 = vmatpush1.bf16.msra.mxu0 %v5667_v61  ;;  %4969 = vmatprep.subr.bf16.mxu1 %v5660_v62  ;;  %v5611_v61 = vcombine.low %v3285_v51, %v3289_v32  ;;  %v5739_v62 = vcombine.low %v3413_v53, %v3417_v54  ;;  %v5732_v0 = vcombine.high %v3405_v59, %v3409_v60  ;;  %v3234_v51 = vld [vmem:[#allocation9 + $0xb8] sm:$0xff] }
 0x615   :  { %5010 = vmatprep.subr.bf16.mxu0 %v5788_v63  ;;  %v5604_v63 = vcombine.high %v3277_v35, %v3281_v58  ;;  %v3358_v32 = vld [vmem:[#allocation9 + $0x498] sm:$0xff]  ;;  %v5565_v54 = vcombine.low %v3238_v21, %v3242_v43 }
 0x616   :  { %v3362_v53 = vld [vmem:[#allocation9 + $0x4b8] sm:$0xff] }
 0x617   :  { %4970 = vmatpush2.bf16.msra.mxu1 %v5659_v4  ;;  %v3402_v4 = vld [vmem:[#allocation9 + $0x5f8] sm:$0xff] }
 0x618   :  { %5011 = vmatpush2.bf16.msra.mxu0 %v5787_v5  ;;  %4971 = vmatprep.subr.bf16.mxu1 %v5652_v6  ;;  %v5603_v5 = vcombine.low %v3277_v35, %v3281_v58  ;;  %v5731_v6 = vcombine.low %v3405_v59, %v3409_v60  ;;  %v5726_v10 = vcombine.high %v3398_v3, %v3402_v4  ;;  %v3226_v35 = vld [vmem:[#allocation9 + $0x78] sm:$0xff] }
 0x619   :  { %5012 = vmatprep.subr.bf16.mxu0 %v5780_v7  ;;  %v5598_v7 = vcombine.high %v3270_v1, %v3274_v2  ;;  %v3350_v58 = vld [vmem:[#allocation9 + $0x458] sm:$0xff] }
 0x61a   :  { %v3354_v59 = vld [vmem:[#allocation9 + $0x478] sm:$0xff] }
 0x61b   :  { %4972 = vmatpush2.bf16.msra.mxu1 %v5651_v14  ;;  %v3390_v14 = vld [vmem:[#allocation9 + $0x598] sm:$0xff] }
 0x61c   :  { %5013 = vmatpush2.bf16.msra.mxu0 %v5779_v15  ;;  %4973 = vmatprep.subr.bf16.mxu1 %v5644_v16  ;;  %v3394_v15 = vld [vmem:[#allocation9 + $0x5b8] sm:$0xff]  ;;  %v5725_v16 = vcombine.low %v3398_v3, %v3402_v4 }
 0x61d   :  { %5014 = vmatprep.subr.bf16.mxu0 %v5772_v17  ;;  %v5590_v17 = vcombine.high %v3262_v11, %v3266_v12  ;;  %v5718_v22 = vcombine.high %v3390_v14, %v3394_v15  ;;  %v3218_v1 = vld [vmem:[#allocation9 + $0x38] sm:$0xff] }
 0x61e   :  { %v3342_v2 = vld [vmem:[#allocation9 + $0x418] sm:$0xff] }
 0x61f   :  { %4974 = vmatpush2.bf16.msra.mxu1 %v5643_v25  ;;  %v3386_v25 = vld [vmem:[#allocation9 + $0x578] sm:$0xff] }
 0x620   :  { %5015 = vmatpush2.bf16.msra.mxu0 %v5771_v26  ;;  %4975 = vmatprep.subr.bf16.mxu1 %v5636_v27  ;;  %v5589_v26 = vcombine.low %v3262_v11, %v3266_v12  ;;  %v5717_v27 = vcombine.low %v3390_v14, %v3394_v15  ;;  %v5710_v36 = vcombine.high %v3382_v24, %v3386_v25  ;;  %v3346_v3 = vld [vmem:[#allocation9 + $0x438] sm:$0xff] }
 0x621   :  { %5016 = vmatprep.subr.bf16.mxu0 %v5764_v33  ;;  %v5582_v33 = vcombine.high %v3254_v18, %v3258_v19  ;;  %v3338_v11 = vld [vmem:[#allocation9 + $0x3f8] sm:$0xff]  ;;  %v5669_v15 = vcombine.low %v3342_v2, %v3346_v3 }
 0x622   :  { %v3462_v12 = vld [vmem:[#allocation9 + $0x7d8] sm:$0xff] }
 0x623   :  { %4976 = vmatpush2.bf16.msra.mxu1 %v5635_v52  ;;  %v3378_v52 = vld [vmem:[#allocation9 + $0x538] sm:$0xff] }
 0x624   :  { %5017 = vmatpush2.bf16.msra.mxu0 %v5763_v41  ;;  %4977 = vmatprep.subr.bf16.mxu1 %v5628_v20  ;;  %v5581_v41 = vcombine.low %v3254_v18, %v3258_v19  ;;  %v5709_v20 = vcombine.low %v3382_v24, %v3386_v25  ;;  %v3326_v18 = vld [vmem:[#allocation9 + $0x398] sm:$0xff] }
 0x625   :  { %5018 = vmatprep.subr.bf16.mxu0 %v5756_v42  ;;  %v5574_v42 = vcombine.high %v3246_v38, %v3250_v39  ;;  %v3330_v19 = vld [vmem:[#allocation9 + $0x3b8] sm:$0xff] }
 0x626   :  { %v3458_v24 = vld [vmem:[#allocation9 + $0x7b8] sm:$0xff] }
 0x627   :  { %4978 = vmatpush2.bf16.msra.mxu1 %v5627_v48  ;;  %v5701_v48 = vcombine.low %v3374_v9, %v3378_v52 }
 0x628   :  { %5019 = vmatpush2.bf16.msra.mxu0 %v5755_v31  ;;  %4979 = vmatprep.subr.bf16.mxu1 %v5620_v50  ;;  %v5566_v31 = vcombine.high %v3238_v21, %v3242_v43  ;;  %v5694_v50 = vcombine.high %v3366_v46, %v3370_v47  ;;  %v3314_v21 = vld [vmem:[#allocation9 + $0x338] sm:$0xff] }
 0x629   :  { %5020 = vmatprep.subr.bf16.mxu0 %v5748_v34  ;;  %v3230_v34 = vld [vmem:[#allocation9 + $0x98] sm:$0xff] }
 0x62a   :  { %v5557_v60 = vcombine.low %v3230_v34, %v3234_v51  ;;  %v3438_v43 = vld [vmem:[#allocation9 + $0x718] sm:$0xff] }
 0x62b   :  { %4980 = vmatpush2.bf16.msra.mxu1 %v5619_v29  ;;  %v5693_v29 = vcombine.low %v3366_v46, %v3370_v47  ;;  %v3442_v46 = vld [vmem:[#allocation9 + $0x738] sm:$0xff] }
 0x62c   :  { %5021 = vmatpush2.bf16.msra.mxu0 %v5747_v55  ;;  %4981 = vmatprep.subr.bf16.mxu1 %v5612_v56  ;;  %v5558_v55 = vcombine.high %v3230_v34, %v3234_v51  ;;  %v5686_v56 = vcombine.high %v3358_v32, %v3362_v53  ;;  %v3306_v34 = vld [vmem:[#allocation9 + $0x2f8] sm:$0xff] }
 0x62d   :  { %5022 = vmatprep.subr.bf16.mxu0 %v5740_v57  ;;  %v3222_v57 = vld [vmem:[#allocation9 + $0x58] sm:$0xff] }
 0x62e   :  { %v5549_v4 = vcombine.low %v3222_v57, %v3226_v35  ;;  %v3430_v51 = vld [vmem:[#allocation9 + $0x6d8] sm:$0xff] }
 0x62f   :  { %4982 = vmatpush2.bf16.msra.mxu1 %v5611_v61  ;;  %v5685_v61 = vcombine.low %v3358_v32, %v3362_v53  ;;  %v3434_v32 = vld [vmem:[#allocation9 + $0x6f8] sm:$0xff] }
 0x630   :  { %5023 = vmatpush2.bf16.msra.mxu0 %v5739_v62  ;;  %4983 = vmatprep.subr.bf16.mxu1 %v5604_v63  ;;  %v5550_v62 = vcombine.high %v3222_v57, %v3226_v35  ;;  %v5678_v63 = vcombine.high %v3350_v58, %v3354_v59  ;;  %v3298_v57 = vld [vmem:[#allocation9 + $0x2b8] sm:$0xff] }
 0x631   :  { %5024 = vmatprep.subr.bf16.mxu0 %v5732_v0  ;;  %v3214_v0 = vld [vmem:[#allocation9 + $0x18] sm:$0xff] }
 0x632   :  { %v5541_v14 = vcombine.low %v3214_v0, %v3218_v1  ;;  %v3422_v35 = vld [vmem:[#allocation9 + $0x698] sm:$0xff] }
 0x633   :  { %4984 = vmatpush2.bf16.msra.mxu1 %v5603_v5  ;;  %v5677_v5 = vcombine.low %v3350_v58, %v3354_v59  ;;  %v3426_v58 = vld [vmem:[#allocation9 + $0x6b8] sm:$0xff] }
 0x634   :  { %5025 = vmatpush2.bf16.msra.mxu0 %v5731_v6  ;;  %5035 = vmatprep.subr.bf16.mxu1 %v5598_v7  ;;  %v5542_v6 = vcombine.high %v3214_v0, %v3218_v1  ;;  %v5670_v7 = vcombine.high %v3342_v2, %v3346_v3  ;;  %v3290_v0 = vld [vmem:[#allocation9 + $0x278] sm:$0xff] }
 0x635   :  { %5076 = vmatprep.subr.bf16.mxu0 %v5726_v10  ;;  %v3334_v10 = vld [vmem:[#allocation9 + $0x3d8] sm:$0xff] }
 0x636   :  { %4986 = vmatmul.mubr.bf16.vlgmr.msra.gmra.mxu1 %v6803_v40  ;;  %v5661_v25 = vcombine.low %v3334_v10, %v3338_v11  ;;  %v3414_v1 = vld [vmem:[#allocation9 + $0x658] sm:$0xff] }
 0x637   :  { %5027 = vmatmul.mubr.bf16.vlgmr.msra.gmra.mxu0 %v6805_v45  ;;  %5036 = vmatpush1.bf16.msra.mxu1 %v5597_v13  ;;  %v3466_v13 = vld [vmem:[#allocation9 + $0x7f8] sm:$0xff] }
 0x638   :  { %5067 = vmatprep.mubr.bf16.mxu1 %v6799_v44  ;;  %5077 = vmatpush1.bf16.msra.mxu0 %v5725_v16  ;;  %v5702_v44 = vcombine.high %v3374_v9, %v3378_v52  ;;  %v5662_v16 = vcombine.high %v3334_v10, %v3338_v11  ;;  %v3450_v9 = vld [vmem:[#allocation9 + $0x778] sm:$0xff]  ;;  %v5653_v52 = vcombine.low %v3326_v18, %v3330_v19 }
 0x639   :  { %5108 = vmatprep.mubr.bf16.mxu0 %v6801_v37  ;;  %5037 = vmatprep.subr.bf16.mxu1 %v5590_v17  ;;  %v5573_v37 = vcombine.low %v3246_v38, %v3250_v39  ;;  %v5790_v17 = vcombine.high %v3462_v12, %v3466_v13  ;;  %v3322_v38 = vld [vmem:[#allocation9 + $0x378] sm:$0xff] }
 0x63a   :  { %5078 = vmatprep.subr.bf16.mxu0 %v5718_v22  ;;  %v3454_v22 = vld [vmem:[#allocation9 + $0x798] sm:$0xff] }
 0x63b   :  { %5038 = vmatpush1.bf16.msra.mxu1 %v5589_v26  ;;  %v5789_v26 = vcombine.low %v3462_v12, %v3466_v13  ;;  %v3446_v39 = vld [vmem:[#allocation9 + $0x758] sm:$0xff] }
 0x63c   :  { %5079 = vmatpush1.bf16.msra.mxu0 %v5717_v27  ;;  %5039 = vmatprep.subr.bf16.mxu1 %v5582_v33  ;;  %v5654_v27 = vcombine.high %v3326_v18, %v3330_v19  ;;  %v5782_v33 = vcombine.high %v3454_v22, %v3458_v24  ;;  %v3418_v2 = vld [vmem:[#allocation9 + $0x678] sm:$0xff]  ;;  %v6824_v19 = vld [vmem:[%s6881_s13] sm:$0xff] }
 0x63d   :  { %5080 = vmatprep.subr.bf16.mxu0 %v5710_v36  ;;  %v3318_v36 = vld [vmem:[#allocation9 + $0x358] sm:$0xff] }
 0x63e   :  { %v5645_v47 = vcombine.low %v3318_v36, %v3322_v38  ;;  %v3282_v10 = vld [vmem:[#allocation9 + $0x238] sm:$0xff] }
 0x63f   :  { %5040 = vmatpush1.bf16.msra.mxu1 %v5581_v41  ;;  %v5781_v41 = vcombine.low %v3454_v22, %v3458_v24  ;;  %v3406_v11 = vld [vmem:[#allocation9 + $0x618] sm:$0xff]  ;;  %v3472_v22 = vrot.slane %v6824_v19, %v6727_v28  ;;  %v3476_v24 = vrot.slane %v6824_v19, %v6735_v30 }
 0x640   :  { %5081 = vmatpush1.bf16.msra.mxu0 %v5709_v20  ;;  %5041 = vmatprep.subr.bf16.mxu1 %v5574_v42  ;;  %v5646_v20 = vcombine.high %v3318_v36, %v3322_v38  ;;  %v5774_v42 = vcombine.high %v3446_v39, %v3450_v9  ;;  %v3410_v12 = vld [vmem:[#allocation9 + $0x638] sm:$0xff] }
 0x641   :  { %5082 = vmatprep.subr.bf16.mxu0 %v5702_v44  ;;  %v3310_v44 = vld [vmem:[#allocation9 + $0x318] sm:$0xff]  ;;  %v5733_v18 = vcombine.low %v3406_v11, %v3410_v12 }
 0x642   :  { %v5637_v53 = vcombine.low %v3310_v44, %v3314_v21 }
 0x643   :  { %5042 = vmatpush1.bf16.msra.mxu1 %v5573_v37  ;;  %v5773_v37 = vcombine.low %v3446_v39, %v3450_v9 }
 0x644   :  { %5083 = vmatpush1.bf16.msra.mxu0 %v5701_v48  ;;  %5043 = vmatprep.subr.bf16.mxu1 %v5566_v31  ;;  %v5638_v48 = vcombine.high %v3310_v44, %v3314_v21  ;;  %v5766_v31 = vcombine.high %v3438_v43, %v3442_v46 }
 0x645   :  { %5084 = vmatprep.subr.bf16.mxu0 %v5694_v50  ;;  %v3302_v50 = vld [vmem:[#allocation9 + $0x2d8] sm:$0xff] }
 0x646   :  { %v5629_v59 = vcombine.low %v3302_v50, %v3306_v34 }
 0x647   :  { %5044 = vmatpush1.bf16.msra.mxu1 %v5565_v54  ;;  %v5765_v54 = vcombine.low %v3438_v43, %v3442_v46 }
 0x648   :  { %5085 = vmatpush1.bf16.msra.mxu0 %v5693_v29  ;;  %5045 = vmatprep.subr.bf16.mxu1 %v5558_v55  ;;  %v5630_v29 = vcombine.high %v3302_v50, %v3306_v34  ;;  %v5758_v55 = vcombine.high %v3430_v51, %v3434_v32 }
 0x649   :  { %5086 = vmatprep.subr.bf16.mxu0 %v5686_v56  ;;  %v3294_v56 = vld [vmem:[#allocation9 + $0x298] sm:$0xff] }
 0x64a   :  { %v5621_v3 = vcombine.low %v3294_v56, %v3298_v57 }
 0x64b   :  { %5046 = vmatpush1.bf16.msra.mxu1 %v5557_v60  ;;  %v5757_v60 = vcombine.low %v3430_v51, %v3434_v32 }
 0x64c   :  { %5087 = vmatpush1.bf16.msra.mxu0 %v5685_v61  ;;  %5047 = vmatprep.subr.bf16.mxu1 %v5550_v62  ;;  %v5622_v61 = vcombine.high %v3294_v56, %v3298_v57  ;;  %v5750_v62 = vcombine.high %v3422_v35, %v3426_v58 }
 0x64d   :  { %5088 = vmatprep.subr.bf16.mxu0 %v5678_v63  ;;  %v3286_v63 = vld [vmem:[#allocation9 + $0x258] sm:$0xff] }
 0x64e   :  { %v5613_v13 = vcombine.low %v3286_v63, %v3290_v0 }
 0x64f   :  { %5048 = vmatpush1.bf16.msra.mxu1 %v5549_v4  ;;  %v5749_v4 = vcombine.low %v3422_v35, %v3426_v58 }
 0x650   :  { %5089 = vmatpush1.bf16.msra.mxu0 %v5677_v5  ;;  %5049 = vmatprep.subr.bf16.mxu1 %v5542_v6  ;;  %v5614_v5 = vcombine.high %v3286_v63, %v3290_v0  ;;  %v5742_v6 = vcombine.high %v3414_v1, %v3418_v2 }
 0x651   :  { %5090 = vmatprep.subr.bf16.mxu0 %v5670_v7  ;;  %v3278_v7 = vld [vmem:[#allocation9 + $0x218] sm:$0xff] }
 0x653   :  { %5050 = vmatpush1.bf16.msra.mxu1 %v5541_v14  ;;  %v5741_v14 = vcombine.low %v3414_v1, %v3418_v2 }
 0x654   :  { %5091 = vmatpush1.bf16.msra.mxu0 %v5669_v15  ;;  %5051 = vmatprep.subr.bf16.mxu1 %v5662_v16  ;;  %v5606_v15 = vcombine.high %v3278_v7, %v3282_v10  ;;  %v5734_v16 = vcombine.high %v3406_v11, %v3410_v12 }
 0x655   :  { %5092 = vmatprep.subr.bf16.mxu0 %v5790_v17  ;;  %v5605_v17 = vcombine.low %v3278_v7, %v3282_v10 }
 0x657   :  { %5052 = vmatpush2.bf16.msra.mxu1 %v5661_v25 }
 0x658   :  { %5093 = vmatpush2.bf16.msra.mxu0 %v5789_v26  ;;  %5053 = vmatprep.subr.bf16.mxu1 %v5654_v27 }
 0x659   :  { %5094 = vmatprep.subr.bf16.mxu0 %v5782_v33 }
 0x65b   :  { %5054 = vmatpush2.bf16.msra.mxu1 %v5653_v52 }
 0x65c   :  { %5095 = vmatpush2.bf16.msra.mxu0 %v5781_v41  ;;  %5055 = vmatprep.subr.bf16.mxu1 %v5646_v20 }
 0x65d   :  { %5096 = vmatprep.subr.bf16.mxu0 %v5774_v42 }
 0x65f   :  { %5056 = vmatpush2.bf16.msra.mxu1 %v5645_v47 }
 0x660   :  { %5097 = vmatpush2.bf16.msra.mxu0 %v5773_v37  ;;  %5057 = vmatprep.subr.bf16.mxu1 %v5638_v48 }
 0x661   :  { %5098 = vmatprep.subr.bf16.mxu0 %v5766_v31 }
 0x663   :  { %5058 = vmatpush2.bf16.msra.mxu1 %v5637_v53 }
 0x664   :  { %5099 = vmatpush2.bf16.msra.mxu0 %v5765_v54  ;;  %5059 = vmatprep.subr.bf16.mxu1 %v5630_v29  ;;  %v3491_v54 = vsub.s32 5, %v6724_v23 }
 0x665   :  { %5100 = vmatprep.subr.bf16.mxu0 %v5758_v55 }
 0x666   :  { %v3492_v55 = vrot.slane %v6824_v19, %v3491_v54 }
 0x667   :  { %5060 = vmatpush2.bf16.msra.mxu1 %v5629_v59 }
 0x668   :  { %5101 = vmatpush2.bf16.msra.mxu0 %v5757_v60  ;;  %5061 = vmatprep.subr.bf16.mxu1 %v5622_v61 }
 0x669   :  { %5102 = vmatprep.subr.bf16.mxu0 %v5750_v62 }
 0x66b   :  { %5062 = vmatpush2.bf16.msra.mxu1 %v5621_v3 }
 0x66c   :  { %5103 = vmatpush2.bf16.msra.mxu0 %v5749_v4  ;;  %5063 = vmatprep.subr.bf16.mxu1 %v5614_v5  ;;  %v3495_v5 = vsub.s32 6, %v6724_v23 }
 0x66d   :  { %5104 = vmatprep.subr.bf16.mxu0 %v5742_v6  ;;  %v3499_v6 = vsub.s32 7, %v6724_v23 }
 0x66e   :  { %v3496_v7 = vrot.slane %v6824_v19, %v3495_v5 }
 0x66f   :  { %5064 = vmatpush2.bf16.msra.mxu1 %v5613_v13  ;;  %v3500_v10 = vrot.slane %v6824_v19, %v3499_v6 }
 0x670   :  { %5105 = vmatpush2.bf16.msra.mxu0 %v5741_v14  ;;  %5065 = vmatprep.subr.bf16.mxu1 %v5606_v15 }
 0x671   :  { %5106 = vmatprep.subr.bf16.mxu0 %v5734_v16 }
 0x673   :  { %5066 = vmatpush2.bf16.msra.mxu1 %v5605_v17 }
 0x674   :  { %5107 = vmatpush2.bf16.msra.mxu0 %v5733_v18 }
 0x676   :  { %5068 = vmatmul.mubr.bf16.vlgmr.msra.gmra.mxu1 %v6803_v40  ;;  %v4823_v25 = vpop.f32.mrf.mxu1  ;;  %v4864_v26 = vpop.f32.mrf.mxu0  ;;  %v3480_v40 = vrot.slane %v6824_v19, %v6746_v8 }
 0x677   :  { %5109 = vmatmul.mubr.bf16.vlgmr.msra.gmra.mxu0 %v6805_v45  ;;  %v4824_v27 = vadd.f32 %v4823_v25, %v3472_v22  ;;  %v3484_v45 = vrot.slane %v6824_v19, %v6749_v49  ;;  %v3487_v49 = vsub.s32 4, %v6724_v23 }
 0x678   :  { %v4825_v33 = vpop.f32.mrf.mxu1  ;;  %v4866_v36 = vpop.f32.mrf.mxu0 }
 0x679   :  { %v4865_v38 = vadd.f32 %v4864_v26, %v4824_v27  ;;  %v4826_v39 = vadd.f32 %v4825_v33, %v3476_v24  ;;  %v3488_v29 = vrot.slane %v6824_v19, %v3487_v49 }
 0x67a   :  { %v4827_v9 = vpop.f32.mrf.mxu1  ;;  %v4868_v52 = vpop.f32.mrf.mxu0 }
 0x67b   :  { %6423 = vtanh.f32 %v4865_v38  ;;  %v4867_v41 = vadd.f32 %v4866_v36, %v4826_v39 }
 0x67c   :  { %v4828_v28 = vpop.f32.mrf.mxu1  ;;  %v4869_v20 = vpop.f32.mrf.mxu0 }
 0x67d   :  { %6425 = vtanh.f32 %v4867_v41 }
 0x688   :  { %v6424_v42 = vpop.eup %6423 }
 0x689   :  { %5125 = vst [vmem:[%s6882_s14] sm:$0xff] %v6424_v42 }
 0x68a   :  { %v6426_v30 = vpop.eup %6425 }
 0x68b   :  { %5126 = vst [vmem:[%s6882_s14 + $0x8] sm:$0xff] %v6426_v30 }
 0x6b6   :  { %v4905_v44 = vpop.f32.mrf.mxu1  ;;  %v4946_v21 = vpop.f32.mrf.mxu0 }
 0x6b7   :  { %v4906_v43 = vadd.f32 %v4905_v44, %v3480_v40 }
 0x6b8   :  { %v4907_v46 = vpop.f32.mrf.mxu1  ;;  %v4948_v47 = vpop.f32.mrf.mxu0 }
 0x6b9   :  { %v4947_v37 = vadd.f32 %v4946_v21, %v4906_v43  ;;  %v4908_v48 = vadd.f32 %v4907_v46, %v3484_v45 }
 0x6ba   :  { %v4909_v31 = vpop.f32.mrf.mxu1  ;;  %v4950_v50 = vpop.f32.mrf.mxu0 }
 0x6bb   :  { %6427 = vtanh.f32 %v4947_v37  ;;  %v4949_v34 = vadd.f32 %v4948_v47, %v4908_v48 }
 0x6bc   :  { %v4910_v51 = vpop.f32.mrf.mxu1  ;;  %v4951_v32 = vpop.f32.mrf.mxu0 }
 0x6bd   :  { %6429 = vtanh.f32 %v4949_v34 }
 0x6c8   :  { %v6428_v53 = vpop.eup %6427 }
 0x6c9   :  { %5127 = vst [vmem:[%s6882_s14 + $0x10] sm:$0xff] %v6428_v53 }
 0x6ca   :  { %v6430_v8 = vpop.eup %6429 }
 0x6cb   :  { %5128 = vst [vmem:[%s6882_s14 + $0x18] sm:$0xff] %v6430_v8 }
 0x6f6   :  { %v4987_v56 = vpop.f32.mrf.mxu1 }
 0x6f7   :  { %v4988_v57 = vadd.f32 %v4987_v56, %v3488_v29  ;;  %v5028_v35 = vpop.f32.mrf.mxu0 }
 0x6f8   :  { %v4989_v58 = vpop.f32.mrf.mxu1 }
 0x6f9   :  { %v5029_v59 = vadd.f32 %v5028_v35, %v4988_v57  ;;  %v4990_v60 = vadd.f32 %v4989_v58, %v3492_v55  ;;  %v5030_v61 = vpop.f32.mrf.mxu0 }
 0x6fa   :  { %v4991_v62 = vpop.f32.mrf.mxu1 }
 0x6fb   :  { %6431 = vtanh.f32 %v5029_v59  ;;  %v5031_v63 = vadd.f32 %v5030_v61, %v4990_v60  ;;  %v5032_v0 = vpop.f32.mrf.mxu0 }
 0x6fc   :  { %v4992_v1 = vpop.f32.mrf.mxu1 }
 0x6fd   :  { %6433 = vtanh.f32 %v5031_v63  ;;  %v5033_v2 = vpop.f32.mrf.mxu0 }
 0x708   :  { %v6432_v3 = vpop.eup %6431 }
 0x709   :  { %5129 = vst [vmem:[%s6882_s14 + $0x20] sm:$0xff] %v6432_v3 }
 0x70a   :  { %v6434_v4 = vpop.eup %6433 }
 0x70b   :  { %5130 = vst [vmem:[%s6882_s14 + $0x28] sm:$0xff] %v6434_v4 }
 0x736   :  { %v5069_v11 = vpop.f32.mrf.mxu1 }
 0x737   :  { %v5070_v12 = vadd.f32 %v5069_v11, %v3496_v7  ;;  %v5110_v13 = vpop.f32.mrf.mxu0 }
 0x738   :  { %v5071_v14 = vpop.f32.mrf.mxu1 }
 0x739   :  { %v5111_v15 = vadd.f32 %v5110_v13, %v5070_v12  ;;  %v5072_v16 = vadd.f32 %v5071_v14, %v3500_v10  ;;  %v5112_v17 = vpop.f32.mrf.mxu0 }
 0x73a   :  { %v5073_v18 = vpop.f32.mrf.mxu1 }
 0x73b   :  { %6435 = vtanh.f32 %v5111_v15  ;;  %v5113_v22 = vadd.f32 %v5112_v17, %v5072_v16  ;;  %v5114_v24 = vpop.f32.mrf.mxu0 }
 0x73c   :  { %v5074_v25 = vpop.f32.mrf.mxu1 }
 0x73d   :  { %6437 = vtanh.f32 %v5113_v22  ;;  %v5115_v26 = vpop.f32.mrf.mxu0 }
 0x748   :  { %v6436_v27 = vpop.eup %6435 }
 0x749   :  { %5131 = vst [vmem:[%s6882_s14 + $0x30] sm:$0xff] %v6436_v27 }
 0x74a   :  { %v6438_v23 = vpop.eup %6437 }
 0x74b   :  { %5132 = vst [vmem:[%s6882_s14 + $0x38] sm:$0xff] %v6438_v23 }
 0x74c   :  { %5142 = vsyncpa [#allocation3], 1 }
 0x74d   :  { %5143 = vsyncpa [#allocation5], 1 }
 0x74e   :  { %5144 = vsyncpa [#allocation8], 1 }

</bundles_post_ra>
